<compile_context>
chip_gen: v7x
topology: tpu7x:2x2x1
jax: 0.10.0
libtpu: 0.0.40
codegen_flags: <defaults>
</compile_context>

<pallas_src>
import functools

import jax
import jax.numpy as jnp
from jax import lax
from jax.experimental import pallas as pl
from jax.experimental.pallas import tpu as pltpu


def _round_up(n, m):
    return -(-n // m) * m


_UNROLL_T_MAX = 16  # fully unroll the time loop only for tiny T


# ---------------------------------------------------------------------------
# Fused kernel: all GRU layers + final Linear.
# ---------------------------------------------------------------------------
def make_gru_fc_kernel(num_layers, T, B_pad, H_pad):
    def kernel(*refs):
        x_ref = refs[0]                                   # (T*B_pad, I_pad) bf16
        layer_refs = refs[1:1 + 4 * num_layers]           # (wi, wh, bc, bn) per layer
        wfc_ref = refs[1 + 4 * num_layers]                # (H_pad, O_pad) bf16
        bfc_ref = refs[2 + 4 * num_layers]                # (1, O_pad) f32
        o_ref = refs[3 + 4 * num_layers]                  # (B_pad, O_pad) f32
        seq_ref = refs[4 + 4 * num_layers]                # (T*B_pad, H_pad) bf16 scratch
        gi_ref = refs[5 + 4 * num_layers]                 # (T*B_pad, 3*H_pad) f32 scratch

        h = jnp.zeros((B_pad, H_pad), jnp.float32)
        for l in range(num_layers):
            wi_ref, wh_ref, bc_ref, bn_ref = layer_refs[4 * l:4 * l + 4]

            # Non-recurrent input projection for ALL timesteps at once
            # (bf16 x bf16 MXU matmul, f32 accumulation).  Combined r/z biases
            # + input-side n bias folded in off the recurrent critical path.
            inp = x_ref[...] if l == 0 else seq_ref[...]
            gi_ref[...] = (
                jnp.dot(inp, wi_ref[...], preferred_element_type=jnp.float32)
                + bc_ref[...])

            wh = wh_ref[...]                                           # bf16, loaded once
            bn_b = jnp.broadcast_to(bn_ref[...], (B_pad, H_pad))       # hoisted broadcast
            write_seq = (l + 1 < num_layers)
            h = jnp.zeros((B_pad, H_pad), jnp.float32)                 # h0 = 0 (PyTorch)

            def step(t, h):
                if isinstance(t, int):
                    r0 = t * B_pad
                else:
                    r0 = pl.multiple_of(t * B_pad, B_pad)
                gi = gi_ref[pl.ds(r0, B_pad), :]
                gh = jnp.dot(h.astype(jnp.bfloat16), wh,
                             preferred_element_type=jnp.float32)
                # Fused r/z sigmoid over the contiguous [r|z] slab.
                rz = jax.nn.sigmoid(gi[:, :2 * H_pad] + gh[:, :2 * H_pad])
                r = rz[:, :H_pad]
                z = rz[:, H_pad:]
                n = jnp.tanh(gi[:, 2 * H_pad:] + r * (gh[:, 2 * H_pad:] + bn_b))
                h = n + z * (h - n)                      # == (1-z)*n + z*h
                if write_seq:
                    # Only layers with a successor need the full hidden sequence.
                    seq_ref[pl.ds(r0, B_pad), :] = h.astype(seq_ref.dtype)
                return h

            if T <= _UNROLL_T_MAX:
                for t in range(T):
                    h = step(t, h)
            else:
                h = lax.fori_loop(0, T, step, h, unroll=4)

        # Final Linear on the last timestep's hidden state of the last layer.
        o_ref[...] = (
            jnp.dot(h.astype(jnp.bfloat16), wfc_ref[...],
                    preferred_element_type=jnp.float32)
            + bfc_ref[...])

    return kernel


# ---------------------------------------------------------------------------
# One-time parameter packing (plain JAX, run OUTSIDE the jitted forward):
# transpose to x @ W layout, zero-pad so gate blocks [r|z|n] land on 128-lane
# boundaries, pre-combine r/z biases, cast weights to bf16.
# ---------------------------------------------------------------------------
def _pack_gate_weight(w, f_pad, H, H_pad):
    """(3H, F_in) PyTorch gate weight -> (f_pad, 3*H_pad) bf16 for x @ W."""
    f_in = w.shape[1]
    out = jnp.zeros((f_pad, 3 * H_pad), jnp.float32)
    for g in range(3):
        out = out.at[:f_in, g * H_pad:g * H_pad + H].set(
            jnp.transpose(w[g * H:(g + 1) * H, :]))
    return out.astype(jnp.bfloat16)


def _pack_bias_combined(b_ih, b_hh, H, H_pad):
    """r/z biases pre-combined (b_ih + b_hh); n slot carries b_ih only."""
    out = jnp.zeros((1, 3 * H_pad), jnp.float32)
    out = out.at[0, 0:H].set(b_ih[0:H] + b_hh[0:H])
    out = out.at[0, H_pad:H_pad + H].set(b_ih[H:2 * H] + b_hh[H:2 * H])
    out = out.at[0, 2 * H_pad:2 * H_pad + H].set(b_ih[2 * H:3 * H])
    return out


def _pack_bias_n(b_hh, H, H_pad):
    return jnp.zeros((1, H_pad), jnp.float32).at[0, :H].set(b_hh[2 * H:3 * H])


def pack_params(params, input_size):
    H = params["gru"][0]["w_hh"].shape[1]
    O = params["fc"]["w"].shape[0]
    I = input_size
    I_pad = _round_up(I, 128)
    H_pad = _round_up(H, 128)
    O_pad = _round_up(O, 128)

    flat = []
    for l, lp in enumerate(params["gru"]):
        f_pad = I_pad if l == 0 else H_pad
        flat.append(_pack_gate_weight(lp["w_ih"], f_pad, H, H_pad))
        flat.append(_pack_gate_weight(lp["w_hh"], H_pad, H, H_pad))
        flat.append(_pack_bias_combined(lp["b_ih"], lp["b_hh"], H, H_pad))
        flat.append(_pack_bias_n(lp["b_hh"], H, H_pad))
    wfc = (jnp.zeros((H_pad, O_pad), jnp.float32)
           .at[:H, :O].set(jnp.transpose(params["fc"]["w"]))
           .astype(jnp.bfloat16))
    bfc = jnp.zeros((1, O_pad), jnp.float32).at[0, :O].set(params["fc"]["b"])
    flat += [wfc, bfc]

    meta = dict(num_layers=len(params["gru"]), I=I, O=O,
                I_pad=I_pad, H_pad=H_pad, O_pad=O_pad)
    return tuple(flat), meta


# ---------------------------------------------------------------------------
# Jitted forward: x padding + the single fused pallas_call.
# ---------------------------------------------------------------------------
def gru_model_forward(packed, x, *, num_layers, I, O, I_pad, H_pad, O_pad):
    """x: (B, T, input_size), batch_first — same as the PyTorch module."""
    B, T, I_in = x.shape
    assert I_in == I
    B_pad = _round_up(B, 8)

    # Time-major, zero-padded, flattened to a lane/sublane-aligned bf16 slab.
    xt = jnp.transpose(x, (1, 0, 2)).astype(jnp.float32)
    xt = jnp.pad(xt, ((0, 0), (0, B_pad - B), (0, I_pad - I)))
    x_flat = xt.reshape(T * B_pad, I_pad).astype(jnp.bfloat16)

    # Explicit VMEM budget (inputs + scratch + output, plus margin).
    scratch_bytes = T * B_pad * H_pad * 2 + T * B_pad * 3 * H_pad * 4
    in_bytes = (x_flat.size * x_flat.dtype.itemsize
                + sum(int(a.size) * a.dtype.itemsize for a in packed))
    out_bytes = B_pad * O_pad * 4
    vmem_limit = int(min(
        64 << 20,
        max(16 << 20, 1.5 * (scratch_bytes + in_bytes + out_bytes) + (2 << 20))))

    kernel = make_gru_fc_kernel(num_layers, T, B_pad, H_pad)
    out_pad = pl.pallas_call(
        kernel,
        out_shape=jax.ShapeDtypeStruct((B_pad, O_pad), jnp.float32),
        scratch_shapes=[
            pltpu.VMEM((T * B_pad, H_pad), jnp.bfloat16),      # hidden sequence
            pltpu.VMEM((T * B_pad, 3 * H_pad), jnp.float32),   # hoisted input proj
        ],
        compiler_params=pltpu.CompilerParams(vmem_limit_bytes=vmem_limit),
    )(x_flat, *packed)
    return out_pad[:B, :O]


# ---------------------------------------------------------------------------
# Parameter init (mirrors GRUModel.init_weights: xavier_uniform weights,
# zero biases).
# ---------------------------------------------------------------------------
def xavier_uniform(key, shape):
    fan_out, fan_in = shape
    bound = (6.0 / (fan_in + fan_out)) ** 0.5
    return jax.random.uniform(key, shape, jnp.float32, -bound, bound)


def init_gru_model(key, input_size, hidden_size, output_size, num_layers):
    params = {"gru": [], "fc": None}
    for layer in range(num_layers):
        in_sz = input_size if layer == 0 else hidden_size
        key, k1, k2 = jax.random.split(key, 3)
        params["gru"].append({
            "w_ih": xavier_uniform(k1, (3 * hidden_size, in_sz)),
            "w_hh": xavier_uniform(k2, (3 * hidden_size, hidden_size)),
            "b_ih": jnp.zeros((3 * hidden_size,), jnp.float32),
            "b_hh": jnp.zeros((3 * hidden_size,), jnp.float32),
        })
    key, kf = jax.random.split(key)
    params["fc"] = {
        "w": xavier_uniform(kf, (output_size, hidden_size)),
        "b": jnp.zeros((output_size,), jnp.float32),
    }
    return params


# ---------------------------------------------------------------------------
# Pure-JAX f32 reference (same math) for a correctness check.
# ---------------------------------------------------------------------------
def gru_model_ref(params, x):
    def cell(h, x_t, w_ih, w_hh, b_ih, b_hh):
        H = h.shape[1]
        gi = x_t @ w_ih.T + b_ih
        gh = h @ w_hh.T + b_hh
        r = jax.nn.sigmoid(gi[:, :H] + gh[:, :H])
        z = jax.nn.sigmoid(gi[:, H:2 * H] + gh[:, H:2 * H])
        n = jnp.tanh(gi[:, 2 * H:] + r * gh[:, 2 * H:])
        return (1.0 - z) * n + z * h

    seq = jnp.transpose(x, (1, 0, 2))
    for lp in params["gru"]:
        B = seq.shape[1]
        H = lp["w_hh"].shape[1]

        def step(h, x_t, lp=lp):
            hn = cell(h, x_t, lp["w_ih"], lp["w_hh"], lp["b_ih"], lp["b_hh"])
            return hn, hn

        _, seq = jax.lax.scan(step, jnp.zeros((B, H), jnp.float32), seq)
    return seq[-1] @ params["fc"]["w"].T + params["fc"]["b"]


if __name__ == "__main__":
    B, T = 2, 8
    input_size, hidden_size, output_size, num_layers = 16, 32, 8, 2

    key = jax.random.PRNGKey(0)
    kp, kx = jax.random.split(key)
    params = init_gru_model(kp, input_size, hidden_size, output_size, num_layers)
    x = jax.random.normal(kx, (B, T, input_size), jnp.float32)

    # Pack once, outside the jitted forward (no per-call packing HLO).
    packed, meta = pack_params(params, input_size)
    fwd = jax.jit(functools.partial(gru_model_forward, **meta))
    out = jax.block_until_ready(fwd(packed, x))

    ref = gru_model_ref(params, x)
    assert out.shape == (B, output_size)
    # bf16 weights / bf16 matmul operands with f32 accumulation -> ~1e-2 rel.
    assert jnp.allclose(out, ref, atol=3e-2, rtol=3e-2), "Pallas GRU mismatch vs reference"

    print("KERNEL_OK")
</pallas_src>

<mosaic_0001>
module attributes {stable_mosaic.version = 11 : i64} {
  func.func @kernel(%arg0: memref<64x128xbf16, #tpu.memory_space<vmem>>, %arg1: memref<128x384xbf16, #tpu.memory_space<vmem>>, %arg2: memref<128x384xbf16, #tpu.memory_space<vmem>>, %arg3: memref<1x384xf32, #tpu.memory_space<vmem>>, %arg4: memref<1x128xf32, #tpu.memory_space<vmem>>, %arg5: memref<128x384xbf16, #tpu.memory_space<vmem>>, %arg6: memref<128x384xbf16, #tpu.memory_space<vmem>>, %arg7: memref<1x384xf32, #tpu.memory_space<vmem>>, %arg8: memref<1x128xf32, #tpu.memory_space<vmem>>, %arg9: memref<128x128xbf16, #tpu.memory_space<vmem>>, %arg10: memref<1x128xf32, #tpu.memory_space<vmem>>, %arg11: memref<8x128xf32, #tpu.memory_space<vmem>>, %arg12: memref<64x128xbf16, #tpu.memory_space<vmem>>, %arg13: memref<64x384xf32, #tpu.memory_space<vmem>>) attributes {dimension_semantics = [], scalar_prefetch = 0 : i64, scratch_operands = 2 : i64, tpu.core_type = #tpu.core_type<tc>} {
    %c0 = arith.constant 0 : index
    %c0_0 = arith.constant 0 : index
    %0 = vector.load %arg0[%c0, %c0_0] : memref<64x128xbf16, #tpu.memory_space<vmem>>, vector<64x128xbf16>
    %c0_1 = arith.constant 0 : index
    %c0_2 = arith.constant 0 : index
    %1 = vector.load %arg1[%c0_1, %c0_2] : memref<128x384xbf16, #tpu.memory_space<vmem>>, vector<128x384xbf16>
    %cst = arith.constant dense<0.000000e+00> : vector<64x384xf32>
    %2 = tpu.matmul %0, %1, %cst {dimension_numbers = #tpu.dot_dimension_numbers<[1], [0], [0], [1], [0, 0, 1, 1], [], []>} : vector<64x128xbf16>, vector<128x384xbf16>, vector<64x384xf32> -> vector<64x384xf32>
    %c0_3 = arith.constant 0 : index
    %c0_4 = arith.constant 0 : index
    %3 = vector.load %arg3[%c0_3, %c0_4] : memref<1x384xf32, #tpu.memory_space<vmem>>, vector<1x384xf32>
    %4 = vector.broadcast %3 : vector<1x384xf32> to vector<64x384xf32>
    %5 = arith.addf %2, %4 : vector<64x384xf32>
    %c0_5 = arith.constant 0 : index
    %c0_6 = arith.constant 0 : index
    %6 = vector.load %arg13[%c0_5, %c0_6] : memref<64x384xf32, #tpu.memory_space<vmem>>, vector<64x384xf32>
    tpu.vector_store %arg13[%c0_5, %c0_6], %5 {strides = array<i32>} : memref<64x384xf32, #tpu.memory_space<vmem>>, vector<64x384xf32>,
    %c0_7 = arith.constant 0 : index
    %c0_8 = arith.constant 0 : index
    %7 = vector.load %arg2[%c0_7, %c0_8] : memref<128x384xbf16, #tpu.memory_space<vmem>>, vector<128x384xbf16>
    %c0_9 = arith.constant 0 : index
    %c0_10 = arith.constant 0 : index
    %8 = vector.load %arg4[%c0_9, %c0_10] : memref<1x128xf32, #tpu.memory_space<vmem>>, vector<1x128xf32>
    %9 = vector.shape_cast %8 : vector<1x128xf32> to vector<1x128xf32>
    %10 = vector.broadcast %9 : vector<1x128xf32> to vector<8x128xf32>
    %cst_11 = arith.constant 0.000000e+00 : f32
    %11 = vector.broadcast %cst_11 : f32 to vector<8x128xf32>
    %c0_12 = arith.constant 0 : index
    %c0_13 = arith.constant 0 : index
    %12 = vector.load %arg13[%c0_12, %c0_13] : memref<64x384xf32, #tpu.memory_space<vmem>>, vector<8x384xf32>
    %13 = arith.truncf %11 : vector<8x128xf32> to vector<8x128xbf16>
    %cst_14 = arith.constant dense<0.000000e+00> : vector<8x384xf32>
    %14 = tpu.matmul %13, %7, %cst_14 {dimension_numbers = #tpu.dot_dimension_numbers<[1], [0], [0], [1], [0, 0, 1, 1], [], []>} : vector<8x128xbf16>, vector<128x384xbf16>, vector<8x384xf32> -> vector<8x384xf32>
    %15 = vector.extract_strided_slice %12 {offsets = [0, 0], sizes = [8, 256], strides = [1, 1]} : vector<8x384xf32> to vector<8x256xf32>
    %16 = vector.extract_strided_slice %14 {offsets = [0, 0], sizes = [8, 256], strides = [1, 1]} : vector<8x384xf32> to vector<8x256xf32>
    %17 = arith.addf %15, %16 : vector<8x256xf32>
    %18 = arith.negf %17 : vector<8x256xf32>
    %19 = math.exp %18 : vector<8x256xf32>
    %cst_15 = arith.constant 1.000000e+00 : f32
    %20 = vector.broadcast %cst_15 : f32 to vector<8x256xf32>
    %21 = arith.addf %20, %19 : vector<8x256xf32>
    %22 = arith.divf %20, %21 : vector<8x256xf32>
    %23 = vector.extract_strided_slice %22 {offsets = [0, 0], sizes = [8, 128], strides = [1, 1]} : vector<8x256xf32> to vector<8x128xf32>
    %24 = vector.extract_strided_slice %22 {offsets = [0, 128], sizes = [8, 128], strides = [1, 1]} : vector<8x256xf32> to vector<8x128xf32>
    %25 = vector.extract_strided_slice %12 {offsets = [0, 256], sizes = [8, 128], strides = [1, 1]} : vector<8x384xf32> to vector<8x128xf32>
    %26 = vector.extract_strided_slice %14 {offsets = [0, 256], sizes = [8, 128], strides = [1, 1]} : vector<8x384xf32> to vector<8x128xf32>
    %27 = arith.addf %26, %10 : vector<8x128xf32>
    %28 = arith.mulf %23, %27 : vector<8x128xf32>
    %29 = arith.addf %25, %28 : vector<8x128xf32>
    %30 = math.tanh %29 : vector<8x128xf32>
    %31 = arith.subf %11, %30 : vector<8x128xf32>
    %32 = arith.mulf %24, %31 : vector<8x128xf32>
    %33 = arith.addf %30, %32 : vector<8x128xf32>
    %34 = arith.truncf %33 : vector<8x128xf32> to vector<8x128xbf16>
    %c0_16 = arith.constant 0 : index
    %c0_17 = arith.constant 0 : index
    %35 = vector.load %arg12[%c0_16, %c0_17] : memref<64x128xbf16, #tpu.memory_space<vmem>>, vector<8x128xbf16>
    tpu.vector_store %arg12[%c0_16, %c0_17], %34 {strides = array<i32>} : memref<64x128xbf16, #tpu.memory_space<vmem>>, vector<8x128xbf16>,
    %c8 = arith.constant 8 : index
    %c0_18 = arith.constant 0 : index
    %36 = vector.load %arg13[%c8, %c0_18] : memref<64x384xf32, #tpu.memory_space<vmem>>, vector<8x384xf32>
    %37 = arith.truncf %33 : vector<8x128xf32> to vector<8x128xbf16>
    %cst_19 = arith.constant dense<0.000000e+00> : vector<8x384xf32>
    %38 = tpu.matmul %37, %7, %cst_19 {dimension_numbers = #tpu.dot_dimension_numbers<[1], [0], [0], [1], [0, 0, 1, 1], [], []>} : vector<8x128xbf16>, vector<128x384xbf16>, vector<8x384xf32> -> vector<8x384xf32>
    %39 = vector.extract_strided_slice %36 {offsets = [0, 0], sizes = [8, 256], strides = [1, 1]} : vector<8x384xf32> to vector<8x256xf32>
    %40 = vector.extract_strided_slice %38 {offsets = [0, 0], sizes = [8, 256], strides = [1, 1]} : vector<8x384xf32> to vector<8x256xf32>
    %41 = arith.addf %39, %40 : vector<8x256xf32>
    %42 = arith.negf %41 : vector<8x256xf32>
    %43 = math.exp %42 : vector<8x256xf32>
    %cst_20 = arith.constant 1.000000e+00 : f32
    %44 = vector.broadcast %cst_20 : f32 to vector<8x256xf32>
    %45 = arith.addf %44, %43 : vector<8x256xf32>
    %46 = arith.divf %44, %45 : vector<8x256xf32>
    %47 = vector.extract_strided_slice %46 {offsets = [0, 0], sizes = [8, 128], strides = [1, 1]} : vector<8x256xf32> to vector<8x128xf32>
    %48 = vector.extract_strided_slice %46 {offsets = [0, 128], sizes = [8, 128], strides = [1, 1]} : vector<8x256xf32> to vector<8x128xf32>
    %49 = vector.extract_strided_slice %36 {offsets = [0, 256], sizes = [8, 128], strides = [1, 1]} : vector<8x384xf32> to vector<8x128xf32>
    %50 = vector.extract_strided_slice %38 {offsets = [0, 256], sizes = [8, 128], strides = [1, 1]} : vector<8x384xf32> to vector<8x128xf32>
    %51 = arith.addf %50, %10 : vector<8x128xf32>
    %52 = arith.mulf %47, %51 : vector<8x128xf32>
    %53 = arith.addf %49, %52 : vector<8x128xf32>
    %54 = math.tanh %53 : vector<8x128xf32>
    %55 = arith.subf %33, %54 : vector<8x128xf32>
    %56 = arith.mulf %48, %55 : vector<8x128xf32>
    %57 = arith.addf %54, %56 : vector<8x128xf32>
    %58 = arith.truncf %57 : vector<8x128xf32> to vector<8x128xbf16>
    %c8_21 = arith.constant 8 : index
    %c0_22 = arith.constant 0 : index
    %59 = vector.load %arg12[%c8_21, %c0_22] : memref<64x128xbf16, #tpu.memory_space<vmem>>, vector<8x128xbf16>
    tpu.vector_store %arg12[%c8_21, %c0_22], %58 {strides = array<i32>} : memref<64x128xbf16, #tpu.memory_space<vmem>>, vector<8x128xbf16>,
    %c16 = arith.constant 16 : index
    %c0_23 = arith.constant 0 : index
    %60 = vector.load %arg13[%c16, %c0_23] : memref<64x384xf32, #tpu.memory_space<vmem>>, vector<8x384xf32>
    %61 = arith.truncf %57 : vector<8x128xf32> to vector<8x128xbf16>
    %cst_24 = arith.constant dense<0.000000e+00> : vector<8x384xf32>
    %62 = tpu.matmul %61, %7, %cst_24 {dimension_numbers = #tpu.dot_dimension_numbers<[1], [0], [0], [1], [0, 0, 1, 1], [], []>} : vector<8x128xbf16>, vector<128x384xbf16>, vector<8x384xf32> -> vector<8x384xf32>
    %63 = vector.extract_strided_slice %60 {offsets = [0, 0], sizes = [8, 256], strides = [1, 1]} : vector<8x384xf32> to vector<8x256xf32>
    %64 = vector.extract_strided_slice %62 {offsets = [0, 0], sizes = [8, 256], strides = [1, 1]} : vector<8x384xf32> to vector<8x256xf32>
    %65 = arith.addf %63, %64 : vector<8x256xf32>
    %66 = arith.negf %65 : vector<8x256xf32>
    %67 = math.exp %66 : vector<8x256xf32>
    %cst_25 = arith.constant 1.000000e+00 : f32
    %68 = vector.broadcast %cst_25 : f32 to vector<8x256xf32>
    %69 = arith.addf %68, %67 : vector<8x256xf32>
    %70 = arith.divf %68, %69 : vector<8x256xf32>
    %71 = vector.extract_strided_slice %70 {offsets = [0, 0], sizes = [8, 128], strides = [1, 1]} : vector<8x256xf32> to vector<8x128xf32>
    %72 = vector.extract_strided_slice %70 {offsets = [0, 128], sizes = [8, 128], strides = [1, 1]} : vector<8x256xf32> to vector<8x128xf32>
    %73 = vector.extract_strided_slice %60 {offsets = [0, 256], sizes = [8, 128], strides = [1, 1]} : vector<8x384xf32> to vector<8x128xf32>
    %74 = vector.extract_strided_slice %62 {offsets = [0, 256], sizes = [8, 128], strides = [1, 1]} : vector<8x384xf32> to vector<8x128xf32>
    %75 = arith.addf %74, %10 : vector<8x128xf32>
    %76 = arith.mulf %71, %75 : vector<8x128xf32>
    %77 = arith.addf %73, %76 : vector<8x128xf32>
    %78 = math.tanh %77 : vector<8x128xf32>
    %79 = arith.subf %57, %78 : vector<8x128xf32>
    %80 = arith.mulf %72, %79 : vector<8x128xf32>
    %81 = arith.addf %78, %80 : vector<8x128xf32>
    %82 = arith.truncf %81 : vector<8x128xf32> to vector<8x128xbf16>
    %c16_26 = arith.constant 16 : index
    %c0_27 = arith.constant 0 : index
    %83 = vector.load %arg12[%c16_26, %c0_27] : memref<64x128xbf16, #tpu.memory_space<vmem>>, vector<8x128xbf16>
    tpu.vector_store %arg12[%c16_26, %c0_27], %82 {strides = array<i32>} : memref<64x128xbf16, #tpu.memory_space<vmem>>, vector<8x128xbf16>,
    %c24 = arith.constant 24 : index
    %c0_28 = arith.constant 0 : index
    %84 = vector.load %arg13[%c24, %c0_28] : memref<64x384xf32, #tpu.memory_space<vmem>>, vector<8x384xf32>
    %85 = arith.truncf %81 : vector<8x128xf32> to vector<8x128xbf16>
    %cst_29 = arith.constant dense<0.000000e+00> : vector<8x384xf32>
    %86 = tpu.matmul %85, %7, %cst_29 {dimension_numbers = #tpu.dot_dimension_numbers<[1], [0], [0], [1], [0, 0, 1, 1], [], []>} : vector<8x128xbf16>, vector<128x384xbf16>, vector<8x384xf32> -> vector<8x384xf32>
    %87 = vector.extract_strided_slice %84 {offsets = [0, 0], sizes = [8, 256], strides = [1, 1]} : vector<8x384xf32> to vector<8x256xf32>
    %88 = vector.extract_strided_slice %86 {offsets = [0, 0], sizes = [8, 256], strides = [1, 1]} : vector<8x384xf32> to vector<8x256xf32>
    %89 = arith.addf %87, %88 : vector<8x256xf32>
    %90 = arith.negf %89 : vector<8x256xf32>
    %91 = math.exp %90 : vector<8x256xf32>
    %cst_30 = arith.constant 1.000000e+00 : f32
    %92 = vector.broadcast %cst_30 : f32 to vector<8x256xf32>
    %93 = arith.addf %92, %91 : vector<8x256xf32>
    %94 = arith.divf %92, %93 : vector<8x256xf32>
    %95 = vector.extract_strided_slice %94 {offsets = [0, 0], sizes = [8, 128], strides = [1, 1]} : vector<8x256xf32> to vector<8x128xf32>
    %96 = vector.extract_strided_slice %94 {offsets = [0, 128], sizes = [8, 128], strides = [1, 1]} : vector<8x256xf32> to vector<8x128xf32>
    %97 = vector.extract_strided_slice %84 {offsets = [0, 256], sizes = [8, 128], strides = [1, 1]} : vector<8x384xf32> to vector<8x128xf32>
    %98 = vector.extract_strided_slice %86 {offsets = [0, 256], sizes = [8, 128], strides = [1, 1]} : vector<8x384xf32> to vector<8x128xf32>
    %99 = arith.addf %98, %10 : vector<8x128xf32>
    %100 = arith.mulf %95, %99 : vector<8x128xf32>
    %101 = arith.addf %97, %100 : vector<8x128xf32>
    %102 = math.tanh %101 : vector<8x128xf32>
    %103 = arith.subf %81, %102 : vector<8x128xf32>
    %104 = arith.mulf %96, %103 : vector<8x128xf32>
    %105 = arith.addf %102, %104 : vector<8x128xf32>
    %106 = arith.truncf %105 : vector<8x128xf32> to vector<8x128xbf16>
    %c24_31 = arith.constant 24 : index
    %c0_32 = arith.constant 0 : index
    %107 = vector.load %arg12[%c24_31, %c0_32] : memref<64x128xbf16, #tpu.memory_space<vmem>>, vector<8x128xbf16>
    tpu.vector_store %arg12[%c24_31, %c0_32], %106 {strides = array<i32>} : memref<64x128xbf16, #tpu.memory_space<vmem>>, vector<8x128xbf16>,
    %c32 = arith.constant 32 : index
    %c0_33 = arith.constant 0 : index
    %108 = vector.load %arg13[%c32, %c0_33] : memref<64x384xf32, #tpu.memory_space<vmem>>, vector<8x384xf32>
    %109 = arith.truncf %105 : vector<8x128xf32> to vector<8x128xbf16>
    %cst_34 = arith.constant dense<0.000000e+00> : vector<8x384xf32>
    %110 = tpu.matmul %109, %7, %cst_34 {dimension_numbers = #tpu.dot_dimension_numbers<[1], [0], [0], [1], [0, 0, 1, 1], [], []>} : vector<8x128xbf16>, vector<128x384xbf16>, vector<8x384xf32> -> vector<8x384xf32>
    %111 = vector.extract_strided_slice %108 {offsets = [0, 0], sizes = [8, 256], strides = [1, 1]} : vector<8x384xf32> to vector<8x256xf32>
    %112 = vector.extract_strided_slice %110 {offsets = [0, 0], sizes = [8, 256], strides = [1, 1]} : vector<8x384xf32> to vector<8x256xf32>
    %113 = arith.addf %111, %112 : vector<8x256xf32>
    %114 = arith.negf %113 : vector<8x256xf32>
    %115 = math.exp %114 : vector<8x256xf32>
    %cst_35 = arith.constant 1.000000e+00 : f32
    %116 = vector.broadcast %cst_35 : f32 to vector<8x256xf32>
    %117 = arith.addf %116, %115 : vector<8x256xf32>
    %118 = arith.divf %116, %117 : vector<8x256xf32>
    %119 = vector.extract_strided_slice %118 {offsets = [0, 0], sizes = [8, 128], strides = [1, 1]} : vector<8x256xf32> to vector<8x128xf32>
    %120 = vector.extract_strided_slice %118 {offsets = [0, 128], sizes = [8, 128], strides = [1, 1]} : vector<8x256xf32> to vector<8x128xf32>
    %121 = vector.extract_strided_slice %108 {offsets = [0, 256], sizes = [8, 128], strides = [1, 1]} : vector<8x384xf32> to vector<8x128xf32>
    %122 = vector.extract_strided_slice %110 {offsets = [0, 256], sizes = [8, 128], strides = [1, 1]} : vector<8x384xf32> to vector<8x128xf32>
    %123 = arith.addf %122, %10 : vector<8x128xf32>
    %124 = arith.mulf %119, %123 : vector<8x128xf32>
    %125 = arith.addf %121, %124 : vector<8x128xf32>
    %126 = math.tanh %125 : vector<8x128xf32>
    %127 = arith.subf %105, %126 : vector<8x128xf32>
    %128 = arith.mulf %120, %127 : vector<8x128xf32>
    %129 = arith.addf %126, %128 : vector<8x128xf32>
    %130 = arith.truncf %129 : vector<8x128xf32> to vector<8x128xbf16>
    %c32_36 = arith.constant 32 : index
    %c0_37 = arith.constant 0 : index
    %131 = vector.load %arg12[%c32_36, %c0_37] : memref<64x128xbf16, #tpu.memory_space<vmem>>, vector<8x128xbf16>
    tpu.vector_store %arg12[%c32_36, %c0_37], %130 {strides = array<i32>} : memref<64x128xbf16, #tpu.memory_space<vmem>>, vector<8x128xbf16>,
    %c40 = arith.constant 40 : index
    %c0_38 = arith.constant 0 : index
    %132 = vector.load %arg13[%c40, %c0_38] : memref<64x384xf32, #tpu.memory_space<vmem>>, vector<8x384xf32>
    %133 = arith.truncf %129 : vector<8x128xf32> to vector<8x128xbf16>
    %cst_39 = arith.constant dense<0.000000e+00> : vector<8x384xf32>
    %134 = tpu.matmul %133, %7, %cst_39 {dimension_numbers = #tpu.dot_dimension_numbers<[1], [0], [0], [1], [0, 0, 1, 1], [], []>} : vector<8x128xbf16>, vector<128x384xbf16>, vector<8x384xf32> -> vector<8x384xf32>
    %135 = vector.extract_strided_slice %132 {offsets = [0, 0], sizes = [8, 256], strides = [1, 1]} : vector<8x384xf32> to vector<8x256xf32>
    %136 = vector.extract_strided_slice %134 {offsets = [0, 0], sizes = [8, 256], strides = [1, 1]} : vector<8x384xf32> to vector<8x256xf32>
    %137 = arith.addf %135, %136 : vector<8x256xf32>
    %138 = arith.negf %137 : vector<8x256xf32>
    %139 = math.exp %138 : vector<8x256xf32>
    %cst_40 = arith.constant 1.000000e+00 : f32
    %140 = vector.broadcast %cst_40 : f32 to vector<8x256xf32>
    %141 = arith.addf %140, %139 : vector<8x256xf32>
    %142 = arith.divf %140, %141 : vector<8x256xf32>
    %143 = vector.extract_strided_slice %142 {offsets = [0, 0], sizes = [8, 128], strides = [1, 1]} : vector<8x256xf32> to vector<8x128xf32>
    %144 = vector.extract_strided_slice %142 {offsets = [0, 128], sizes = [8, 128], strides = [1, 1]} : vector<8x256xf32> to vector<8x128xf32>
    %145 = vector.extract_strided_slice %132 {offsets = [0, 256], sizes = [8, 128], strides = [1, 1]} : vector<8x384xf32> to vector<8x128xf32>
    %146 = vector.extract_strided_slice %134 {offsets = [0, 256], sizes = [8, 128], strides = [1, 1]} : vector<8x384xf32> to vector<8x128xf32>
    %147 = arith.addf %146, %10 : vector<8x128xf32>
    %148 = arith.mulf %143, %147 : vector<8x128xf32>
    %149 = arith.addf %145, %148 : vector<8x128xf32>
    %150 = math.tanh %149 : vector<8x128xf32>
    %151 = arith.subf %129, %150 : vector<8x128xf32>
    %152 = arith.mulf %144, %151 : vector<8x128xf32>
    %153 = arith.addf %150, %152 : vector<8x128xf32>
    %154 = arith.truncf %153 : vector<8x128xf32> to vector<8x128xbf16>
    %c40_41 = arith.constant 40 : index
    %c0_42 = arith.constant 0 : index
    %155 = vector.load %arg12[%c40_41, %c0_42] : memref<64x128xbf16, #tpu.memory_space<vmem>>, vector<8x128xbf16>
    tpu.vector_store %arg12[%c40_41, %c0_42], %154 {strides = array<i32>} : memref<64x128xbf16, #tpu.memory_space<vmem>>, vector<8x128xbf16>,
    %c48 = arith.constant 48 : index
    %c0_43 = arith.constant 0 : index
    %156 = vector.load %arg13[%c48, %c0_43] : memref<64x384xf32, #tpu.memory_space<vmem>>, vector<8x384xf32>
    %157 = arith.truncf %153 : vector<8x128xf32> to vector<8x128xbf16>
    %cst_44 = arith.constant dense<0.000000e+00> : vector<8x384xf32>
    %158 = tpu.matmul %157, %7, %cst_44 {dimension_numbers = #tpu.dot_dimension_numbers<[1], [0], [0], [1], [0, 0, 1, 1], [], []>} : vector<8x128xbf16>, vector<128x384xbf16>, vector<8x384xf32> -> vector<8x384xf32>
    %159 = vector.extract_strided_slice %156 {offsets = [0, 0], sizes = [8, 256], strides = [1, 1]} : vector<8x384xf32> to vector<8x256xf32>
    %160 = vector.extract_strided_slice %158 {offsets = [0, 0], sizes = [8, 256], strides = [1, 1]} : vector<8x384xf32> to vector<8x256xf32>
    %161 = arith.addf %159, %160 : vector<8x256xf32>
    %162 = arith.negf %161 : vector<8x256xf32>
    %163 = math.exp %162 : vector<8x256xf32>
    %cst_45 = arith.constant 1.000000e+00 : f32
    %164 = vector.broadcast %cst_45 : f32 to vector<8x256xf32>
    %165 = arith.addf %164, %163 : vector<8x256xf32>
    %166 = arith.divf %164, %165 : vector<8x256xf32>
    %167 = vector.extract_strided_slice %166 {offsets = [0, 0], sizes = [8, 128], strides = [1, 1]} : vector<8x256xf32> to vector<8x128xf32>
    %168 = vector.extract_strided_slice %166 {offsets = [0, 128], sizes = [8, 128], strides = [1, 1]} : vector<8x256xf32> to vector<8x128xf32>
    %169 = vector.extract_strided_slice %156 {offsets = [0, 256], sizes = [8, 128], strides = [1, 1]} : vector<8x384xf32> to vector<8x128xf32>
    %170 = vector.extract_strided_slice %158 {offsets = [0, 256], sizes = [8, 128], strides = [1, 1]} : vector<8x384xf32> to vector<8x128xf32>
    %171 = arith.addf %170, %10 : vector<8x128xf32>
    %172 = arith.mulf %167, %171 : vector<8x128xf32>
    %173 = arith.addf %169, %172 : vector<8x128xf32>
    %174 = math.tanh %173 : vector<8x128xf32>
    %175 = arith.subf %153, %174 : vector<8x128xf32>
    %176 = arith.mulf %168, %175 : vector<8x128xf32>
    %177 = arith.addf %174, %176 : vector<8x128xf32>
    %178 = arith.truncf %177 : vector<8x128xf32> to vector<8x128xbf16>
    %c48_46 = arith.constant 48 : index
    %c0_47 = arith.constant 0 : index
    %179 = vector.load %arg12[%c48_46, %c0_47] : memref<64x128xbf16, #tpu.memory_space<vmem>>, vector<8x128xbf16>
    tpu.vector_store %arg12[%c48_46, %c0_47], %178 {strides = array<i32>} : memref<64x128xbf16, #tpu.memory_space<vmem>>, vector<8x128xbf16>,
    %c56 = arith.constant 56 : index
    %c0_48 = arith.constant 0 : index
    %180 = vector.load %arg13[%c56, %c0_48] : memref<64x384xf32, #tpu.memory_space<vmem>>, vector<8x384xf32>
    %181 = arith.truncf %177 : vector<8x128xf32> to vector<8x128xbf16>
    %cst_49 = arith.constant dense<0.000000e+00> : vector<8x384xf32>
    %182 = tpu.matmul %181, %7, %cst_49 {dimension_numbers = #tpu.dot_dimension_numbers<[1], [0], [0], [1], [0, 0, 1, 1], [], []>} : vector<8x128xbf16>, vector<128x384xbf16>, vector<8x384xf32> -> vector<8x384xf32>
    %183 = vector.extract_strided_slice %180 {offsets = [0, 0], sizes = [8, 256], strides = [1, 1]} : vector<8x384xf32> to vector<8x256xf32>
    %184 = vector.extract_strided_slice %182 {offsets = [0, 0], sizes = [8, 256], strides = [1, 1]} : vector<8x384xf32> to vector<8x256xf32>
    %185 = arith.addf %183, %184 : vector<8x256xf32>
    %186 = arith.negf %185 : vector<8x256xf32>
    %187 = math.exp %186 : vector<8x256xf32>
    %cst_50 = arith.constant 1.000000e+00 : f32
    %188 = vector.broadcast %cst_50 : f32 to vector<8x256xf32>
    %189 = arith.addf %188, %187 : vector<8x256xf32>
    %190 = arith.divf %188, %189 : vector<8x256xf32>
    %191 = vector.extract_strided_slice %190 {offsets = [0, 0], sizes = [8, 128], strides = [1, 1]} : vector<8x256xf32> to vector<8x128xf32>
    %192 = vector.extract_strided_slice %190 {offsets = [0, 128], sizes = [8, 128], strides = [1, 1]} : vector<8x256xf32> to vector<8x128xf32>
    %193 = vector.extract_strided_slice %180 {offsets = [0, 256], sizes = [8, 128], strides = [1, 1]} : vector<8x384xf32> to vector<8x128xf32>
    %194 = vector.extract_strided_slice %182 {offsets = [0, 256], sizes = [8, 128], strides = [1, 1]} : vector<8x384xf32> to vector<8x128xf32>
    %195 = arith.addf %194, %10 : vector<8x128xf32>
    %196 = arith.mulf %191, %195 : vector<8x128xf32>
    %197 = arith.addf %193, %196 : vector<8x128xf32>
    %198 = math.tanh %197 : vector<8x128xf32>
    %199 = arith.subf %177, %198 : vector<8x128xf32>
    %200 = arith.mulf %192, %199 : vector<8x128xf32>
    %201 = arith.addf %198, %200 : vector<8x128xf32>
    %202 = arith.truncf %201 : vector<8x128xf32> to vector<8x128xbf16>
    %c56_51 = arith.constant 56 : index
    %c0_52 = arith.constant 0 : index
    %203 = vector.load %arg12[%c56_51, %c0_52] : memref<64x128xbf16, #tpu.memory_space<vmem>>, vector<8x128xbf16>
    tpu.vector_store %arg12[%c56_51, %c0_52], %202 {strides = array<i32>} : memref<64x128xbf16, #tpu.memory_space<vmem>>, vector<8x128xbf16>,
    %c0_53 = arith.constant 0 : index
    %c0_54 = arith.constant 0 : index
    %204 = vector.load %arg12[%c0_53, %c0_54] : memref<64x128xbf16, #tpu.memory_space<vmem>>, vector<64x128xbf16>
    %c0_55 = arith.constant 0 : index
    %c0_56 = arith.constant 0 : index
    %205 = vector.load %arg5[%c0_55, %c0_56] : memref<128x384xbf16, #tpu.memory_space<vmem>>, vector<128x384xbf16>
    %cst_57 = arith.constant dense<0.000000e+00> : vector<64x384xf32>
    %206 = tpu.matmul %204, %205, %cst_57 {dimension_numbers = #tpu.dot_dimension_numbers<[1], [0], [0], [1], [0, 0, 1, 1], [], []>} : vector<64x128xbf16>, vector<128x384xbf16>, vector<64x384xf32> -> vector<64x384xf32>
    %c0_58 = arith.constant 0 : index
    %c0_59 = arith.constant 0 : index
    %207 = vector.load %arg7[%c0_58, %c0_59] : memref<1x384xf32, #tpu.memory_space<vmem>>, vector<1x384xf32>
    %208 = vector.broadcast %207 : vector<1x384xf32> to vector<64x384xf32>
    %209 = arith.addf %206, %208 : vector<64x384xf32>
    %c0_60 = arith.constant 0 : index
    %c0_61 = arith.constant 0 : index
    %210 = vector.load %arg13[%c0_60, %c0_61] : memref<64x384xf32, #tpu.memory_space<vmem>>, vector<64x384xf32>
    tpu.vector_store %arg13[%c0_60, %c0_61], %209 {strides = array<i32>} : memref<64x384xf32, #tpu.memory_space<vmem>>, vector<64x384xf32>,
    %c0_62 = arith.constant 0 : index
    %c0_63 = arith.constant 0 : index
    %211 = vector.load %arg6[%c0_62, %c0_63] : memref<128x384xbf16, #tpu.memory_space<vmem>>, vector<128x384xbf16>
    %c0_64 = arith.constant 0 : index
    %c0_65 = arith.constant 0 : index
    %212 = vector.load %arg8[%c0_64, %c0_65] : memref<1x128xf32, #tpu.memory_space<vmem>>, vector<1x128xf32>
    %213 = vector.shape_cast %212 : vector<1x128xf32> to vector<1x128xf32>
    %214 = vector.broadcast %213 : vector<1x128xf32> to vector<8x128xf32>
    %cst_66 = arith.constant 0.000000e+00 : f32
    %215 = vector.broadcast %cst_66 : f32 to vector<8x128xf32>
    %c0_67 = arith.constant 0 : index
    %c0_68 = arith.constant 0 : index
    %216 = vector.load %arg13[%c0_67, %c0_68] : memref<64x384xf32, #tpu.memory_space<vmem>>, vector<8x384xf32>
    %217 = arith.truncf %215 : vector<8x128xf32> to vector<8x128xbf16>
    %cst_69 = arith.constant dense<0.000000e+00> : vector<8x384xf32>
    %218 = tpu.matmul %217, %211, %cst_69 {dimension_numbers = #tpu.dot_dimension_numbers<[1], [0], [0], [1], [0, 0, 1, 1], [], []>} : vector<8x128xbf16>, vector<128x384xbf16>, vector<8x384xf32> -> vector<8x384xf32>
    %219 = vector.extract_strided_slice %216 {offsets = [0, 0], sizes = [8, 256], strides = [1, 1]} : vector<8x384xf32> to vector<8x256xf32>
    %220 = vector.extract_strided_slice %218 {offsets = [0, 0], sizes = [8, 256], strides = [1, 1]} : vector<8x384xf32> to vector<8x256xf32>
    %221 = arith.addf %219, %220 : vector<8x256xf32>
    %222 = arith.negf %221 : vector<8x256xf32>
    %223 = math.exp %222 : vector<8x256xf32>
    %cst_70 = arith.constant 1.000000e+00 : f32
    %224 = vector.broadcast %cst_70 : f32 to vector<8x256xf32>
    %225 = arith.addf %224, %223 : vector<8x256xf32>
    %226 = arith.divf %224, %225 : vector<8x256xf32>
    %227 = vector.extract_strided_slice %226 {offsets = [0, 0], sizes = [8, 128], strides = [1, 1]} : vector<8x256xf32> to vector<8x128xf32>
    %228 = vector.extract_strided_slice %226 {offsets = [0, 128], sizes = [8, 128], strides = [1, 1]} : vector<8x256xf32> to vector<8x128xf32>
    %229 = vector.extract_strided_slice %216 {offsets = [0, 256], sizes = [8, 128], strides = [1, 1]} : vector<8x384xf32> to vector<8x128xf32>
    %230 = vector.extract_strided_slice %218 {offsets = [0, 256], sizes = [8, 128], strides = [1, 1]} : vector<8x384xf32> to vector<8x128xf32>
    %231 = arith.addf %230, %214 : vector<8x128xf32>
    %232 = arith.mulf %227, %231 : vector<8x128xf32>
    %233 = arith.addf %229, %232 : vector<8x128xf32>
    %234 = math.tanh %233 : vector<8x128xf32>
    %235 = arith.subf %215, %234 : vector<8x128xf32>
    %236 = arith.mulf %228, %235 : vector<8x128xf32>
    %237 = arith.addf %234, %236 : vector<8x128xf32>
    %c8_71 = arith.constant 8 : index
    %c0_72 = arith.constant 0 : index
    %238 = vector.load %arg13[%c8_71, %c0_72] : memref<64x384xf32, #tpu.memory_space<vmem>>, vector<8x384xf32>
    %239 = arith.truncf %237 : vector<8x128xf32> to vector<8x128xbf16>
    %cst_73 = arith.constant dense<0.000000e+00> : vector<8x384xf32>
    %240 = tpu.matmul %239, %211, %cst_73 {dimension_numbers = #tpu.dot_dimension_numbers<[1], [0], [0], [1], [0, 0, 1, 1], [], []>} : vector<8x128xbf16>, vector<128x384xbf16>, vector<8x384xf32> -> vector<8x384xf32>
    %241 = vector.extract_strided_slice %238 {offsets = [0, 0], sizes = [8, 256], strides = [1, 1]} : vector<8x384xf32> to vector<8x256xf32>
    %242 = vector.extract_strided_slice %240 {offsets = [0, 0], sizes = [8, 256], strides = [1, 1]} : vector<8x384xf32> to vector<8x256xf32>
    %243 = arith.addf %241, %242 : vector<8x256xf32>
    %244 = arith.negf %243 : vector<8x256xf32>
    %245 = math.exp %244 : vector<8x256xf32>
    %cst_74 = arith.constant 1.000000e+00 : f32
    %246 = vector.broadcast %cst_74 : f32 to vector<8x256xf32>
    %247 = arith.addf %246, %245 : vector<8x256xf32>
    %248 = arith.divf %246, %247 : vector<8x256xf32>
    %249 = vector.extract_strided_slice %248 {offsets = [0, 0], sizes = [8, 128], strides = [1, 1]} : vector<8x256xf32> to vector<8x128xf32>
    %250 = vector.extract_strided_slice %248 {offsets = [0, 128], sizes = [8, 128], strides = [1, 1]} : vector<8x256xf32> to vector<8x128xf32>
    %251 = vector.extract_strided_slice %238 {offsets = [0, 256], sizes = [8, 128], strides = [1, 1]} : vector<8x384xf32> to vector<8x128xf32>
    %252 = vector.extract_strided_slice %240 {offsets = [0, 256], sizes = [8, 128], strides = [1, 1]} : vector<8x384xf32> to vector<8x128xf32>
    %253 = arith.addf %252, %214 : vector<8x128xf32>
    %254 = arith.mulf %249, %253 : vector<8x128xf32>
    %255 = arith.addf %251, %254 : vector<8x128xf32>
    %256 = math.tanh %255 : vector<8x128xf32>
    %257 = arith.subf %237, %256 : vector<8x128xf32>
    %258 = arith.mulf %250, %257 : vector<8x128xf32>
    %259 = arith.addf %256, %258 : vector<8x128xf32>
    %c16_75 = arith.constant 16 : index
    %c0_76 = arith.constant 0 : index
    %260 = vector.load %arg13[%c16_75, %c0_76] : memref<64x384xf32, #tpu.memory_space<vmem>>, vector<8x384xf32>
    %261 = arith.truncf %259 : vector<8x128xf32> to vector<8x128xbf16>
    %cst_77 = arith.constant dense<0.000000e+00> : vector<8x384xf32>
    %262 = tpu.matmul %261, %211, %cst_77 {dimension_numbers = #tpu.dot_dimension_numbers<[1], [0], [0], [1], [0, 0, 1, 1], [], []>} : vector<8x128xbf16>, vector<128x384xbf16>, vector<8x384xf32> -> vector<8x384xf32>
    %263 = vector.extract_strided_slice %260 {offsets = [0, 0], sizes = [8, 256], strides = [1, 1]} : vector<8x384xf32> to vector<8x256xf32>
    %264 = vector.extract_strided_slice %262 {offsets = [0, 0], sizes = [8, 256], strides = [1, 1]} : vector<8x384xf32> to vector<8x256xf32>
    %265 = arith.addf %263, %264 : vector<8x256xf32>
    %266 = arith.negf %265 : vector<8x256xf32>
    %267 = math.exp %266 : vector<8x256xf32>
    %cst_78 = arith.constant 1.000000e+00 : f32
    %268 = vector.broadcast %cst_78 : f32 to vector<8x256xf32>
    %269 = arith.addf %268, %267 : vector<8x256xf32>
    %270 = arith.divf %268, %269 : vector<8x256xf32>
    %271 = vector.extract_strided_slice %270 {offsets = [0, 0], sizes = [8, 128], strides = [1, 1]} : vector<8x256xf32> to vector<8x128xf32>
    %272 = vector.extract_strided_slice %270 {offsets = [0, 128], sizes = [8, 128], strides = [1, 1]} : vector<8x256xf32> to vector<8x128xf32>
    %273 = vector.extract_strided_slice %260 {offsets = [0, 256], sizes = [8, 128], strides = [1, 1]} : vector<8x384xf32> to vector<8x128xf32>
    %274 = vector.extract_strided_slice %262 {offsets = [0, 256], sizes = [8, 128], strides = [1, 1]} : vector<8x384xf32> to vector<8x128xf32>
    %275 = arith.addf %274, %214 : vector<8x128xf32>
    %276 = arith.mulf %271, %275 : vector<8x128xf32>
    %277 = arith.addf %273, %276 : vector<8x128xf32>
    %278 = math.tanh %277 : vector<8x128xf32>
    %279 = arith.subf %259, %278 : vector<8x128xf32>
    %280 = arith.mulf %272, %279 : vector<8x128xf32>
    %281 = arith.addf %278, %280 : vector<8x128xf32>
    %c24_79 = arith.constant 24 : index
    %c0_80 = arith.constant 0 : index
    %282 = vector.load %arg13[%c24_79, %c0_80] : memref<64x384xf32, #tpu.memory_space<vmem>>, vector<8x384xf32>
    %283 = arith.truncf %281 : vector<8x128xf32> to vector<8x128xbf16>
    %cst_81 = arith.constant dense<0.000000e+00> : vector<8x384xf32>
    %284 = tpu.matmul %283, %211, %cst_81 {dimension_numbers = #tpu.dot_dimension_numbers<[1], [0], [0], [1], [0, 0, 1, 1], [], []>} : vector<8x128xbf16>, vector<128x384xbf16>, vector<8x384xf32> -> vector<8x384xf32>
    %285 = vector.extract_strided_slice %282 {offsets = [0, 0], sizes = [8, 256], strides = [1, 1]} : vector<8x384xf32> to vector<8x256xf32>
    %286 = vector.extract_strided_slice %284 {offsets = [0, 0], sizes = [8, 256], strides = [1, 1]} : vector<8x384xf32> to vector<8x256xf32>
    %287 = arith.addf %285, %286 : vector<8x256xf32>
    %288 = arith.negf %287 : vector<8x256xf32>
    %289 = math.exp %288 : vector<8x256xf32>
    %cst_82 = arith.constant 1.000000e+00 : f32
    %290 = vector.broadcast %cst_82 : f32 to vector<8x256xf32>
    %291 = arith.addf %290, %289 : vector<8x256xf32>
    %292 = arith.divf %290, %291 : vector<8x256xf32>
    %293 = vector.extract_strided_slice %292 {offsets = [0, 0], sizes = [8, 128], strides = [1, 1]} : vector<8x256xf32> to vector<8x128xf32>
    %294 = vector.extract_strided_slice %292 {offsets = [0, 128], sizes = [8, 128], strides = [1, 1]} : vector<8x256xf32> to vector<8x128xf32>
    %295 = vector.extract_strided_slice %282 {offsets = [0, 256], sizes = [8, 128], strides = [1, 1]} : vector<8x384xf32> to vector<8x128xf32>
    %296 = vector.extract_strided_slice %284 {offsets = [0, 256], sizes = [8, 128], strides = [1, 1]} : vector<8x384xf32> to vector<8x128xf32>
    %297 = arith.addf %296, %214 : vector<8x128xf32>
    %298 = arith.mulf %293, %297 : vector<8x128xf32>
    %299 = arith.addf %295, %298 : vector<8x128xf32>
    %300 = math.tanh %299 : vector<8x128xf32>
    %301 = arith.subf %281, %300 : vector<8x128xf32>
    %302 = arith.mulf %294, %301 : vector<8x128xf32>
    %303 = arith.addf %300, %302 : vector<8x128xf32>
    %c32_83 = arith.constant 32 : index
    %c0_84 = arith.constant 0 : index
    %304 = vector.load %arg13[%c32_83, %c0_84] : memref<64x384xf32, #tpu.memory_space<vmem>>, vector<8x384xf32>
    %305 = arith.truncf %303 : vector<8x128xf32> to vector<8x128xbf16>
    %cst_85 = arith.constant dense<0.000000e+00> : vector<8x384xf32>
    %306 = tpu.matmul %305, %211, %cst_85 {dimension_numbers = #tpu.dot_dimension_numbers<[1], [0], [0], [1], [0, 0, 1, 1], [], []>} : vector<8x128xbf16>, vector<128x384xbf16>, vector<8x384xf32> -> vector<8x384xf32>
    %307 = vector.extract_strided_slice %304 {offsets = [0, 0], sizes = [8, 256], strides = [1, 1]} : vector<8x384xf32> to vector<8x256xf32>
    %308 = vector.extract_strided_slice %306 {offsets = [0, 0], sizes = [8, 256], strides = [1, 1]} : vector<8x384xf32> to vector<8x256xf32>
    %309 = arith.addf %307, %308 : vector<8x256xf32>
    %310 = arith.negf %309 : vector<8x256xf32>
    %311 = math.exp %310 : vector<8x256xf32>
    %cst_86 = arith.constant 1.000000e+00 : f32
    %312 = vector.broadcast %cst_86 : f32 to vector<8x256xf32>
    %313 = arith.addf %312, %311 : vector<8x256xf32>
    %314 = arith.divf %312, %313 : vector<8x256xf32>
    %315 = vector.extract_strided_slice %314 {offsets = [0, 0], sizes = [8, 128], strides = [1, 1]} : vector<8x256xf32> to vector<8x128xf32>
    %316 = vector.extract_strided_slice %314 {offsets = [0, 128], sizes = [8, 128], strides = [1, 1]} : vector<8x256xf32> to vector<8x128xf32>
    %317 = vector.extract_strided_slice %304 {offsets = [0, 256], sizes = [8, 128], strides = [1, 1]} : vector<8x384xf32> to vector<8x128xf32>
    %318 = vector.extract_strided_slice %306 {offsets = [0, 256], sizes = [8, 128], strides = [1, 1]} : vector<8x384xf32> to vector<8x128xf32>
    %319 = arith.addf %318, %214 : vector<8x128xf32>
    %320 = arith.mulf %315, %319 : vector<8x128xf32>
    %321 = arith.addf %317, %320 : vector<8x128xf32>
    %322 = math.tanh %321 : vector<8x128xf32>
    %323 = arith.subf %303, %322 : vector<8x128xf32>
    %324 = arith.mulf %316, %323 : vector<8x128xf32>
    %325 = arith.addf %322, %324 : vector<8x128xf32>
    %c40_87 = arith.constant 40 : index
    %c0_88 = arith.constant 0 : index
    %326 = vector.load %arg13[%c40_87, %c0_88] : memref<64x384xf32, #tpu.memory_space<vmem>>, vector<8x384xf32>
    %327 = arith.truncf %325 : vector<8x128xf32> to vector<8x128xbf16>
    %cst_89 = arith.constant dense<0.000000e+00> : vector<8x384xf32>
    %328 = tpu.matmul %327, %211, %cst_89 {dimension_numbers = #tpu.dot_dimension_numbers<[1], [0], [0], [1], [0, 0, 1, 1], [], []>} : vector<8x128xbf16>, vector<128x384xbf16>, vector<8x384xf32> -> vector<8x384xf32>
    %329 = vector.extract_strided_slice %326 {offsets = [0, 0], sizes = [8, 256], strides = [1, 1]} : vector<8x384xf32> to vector<8x256xf32>
    %330 = vector.extract_strided_slice %328 {offsets = [0, 0], sizes = [8, 256], strides = [1, 1]} : vector<8x384xf32> to vector<8x256xf32>
    %331 = arith.addf %329, %330 : vector<8x256xf32>
    %332 = arith.negf %331 : vector<8x256xf32>
    %333 = math.exp %332 : vector<8x256xf32>
    %cst_90 = arith.constant 1.000000e+00 : f32
    %334 = vector.broadcast %cst_90 : f32 to vector<8x256xf32>
    %335 = arith.addf %334, %333 : vector<8x256xf32>
    %336 = arith.divf %334, %335 : vector<8x256xf32>
    %337 = vector.extract_strided_slice %336 {offsets = [0, 0], sizes = [8, 128], strides = [1, 1]} : vector<8x256xf32> to vector<8x128xf32>
    %338 = vector.extract_strided_slice %336 {offsets = [0, 128], sizes = [8, 128], strides = [1, 1]} : vector<8x256xf32> to vector<8x128xf32>
    %339 = vector.extract_strided_slice %326 {offsets = [0, 256], sizes = [8, 128], strides = [1, 1]} : vector<8x384xf32> to vector<8x128xf32>
    %340 = vector.extract_strided_slice %328 {offsets = [0, 256], sizes = [8, 128], strides = [1, 1]} : vector<8x384xf32> to vector<8x128xf32>
    %341 = arith.addf %340, %214 : vector<8x128xf32>
    %342 = arith.mulf %337, %341 : vector<8x128xf32>
    %343 = arith.addf %339, %342 : vector<8x128xf32>
    %344 = math.tanh %343 : vector<8x128xf32>
    %345 = arith.subf %325, %344 : vector<8x128xf32>
    %346 = arith.mulf %338, %345 : vector<8x128xf32>
    %347 = arith.addf %344, %346 : vector<8x128xf32>
    %c48_91 = arith.constant 48 : index
    %c0_92 = arith.constant 0 : index
    %348 = vector.load %arg13[%c48_91, %c0_92] : memref<64x384xf32, #tpu.memory_space<vmem>>, vector<8x384xf32>
    %349 = arith.truncf %347 : vector<8x128xf32> to vector<8x128xbf16>
    %cst_93 = arith.constant dense<0.000000e+00> : vector<8x384xf32>
    %350 = tpu.matmul %349, %211, %cst_93 {dimension_numbers = #tpu.dot_dimension_numbers<[1], [0], [0], [1], [0, 0, 1, 1], [], []>} : vector<8x128xbf16>, vector<128x384xbf16>, vector<8x384xf32> -> vector<8x384xf32>
    %351 = vector.extract_strided_slice %348 {offsets = [0, 0], sizes = [8, 256], strides = [1, 1]} : vector<8x384xf32> to vector<8x256xf32>
    %352 = vector.extract_strided_slice %350 {offsets = [0, 0], sizes = [8, 256], strides = [1, 1]} : vector<8x384xf32> to vector<8x256xf32>
    %353 = arith.addf %351, %352 : vector<8x256xf32>
    %354 = arith.negf %353 : vector<8x256xf32>
    %355 = math.exp %354 : vector<8x256xf32>
    %cst_94 = arith.constant 1.000000e+00 : f32
    %356 = vector.broadcast %cst_94 : f32 to vector<8x256xf32>
    %357 = arith.addf %356, %355 : vector<8x256xf32>
    %358 = arith.divf %356, %357 : vector<8x256xf32>
    %359 = vector.extract_strided_slice %358 {offsets = [0, 0], sizes = [8, 128], strides = [1, 1]} : vector<8x256xf32> to vector<8x128xf32>
    %360 = vector.extract_strided_slice %358 {offsets = [0, 128], sizes = [8, 128], strides = [1, 1]} : vector<8x256xf32> to vector<8x128xf32>
    %361 = vector.extract_strided_slice %348 {offsets = [0, 256], sizes = [8, 128], strides = [1, 1]} : vector<8x384xf32> to vector<8x128xf32>
    %362 = vector.extract_strided_slice %350 {offsets = [0, 256], sizes = [8, 128], strides = [1, 1]} : vector<8x384xf32> to vector<8x128xf32>
    %363 = arith.addf %362, %214 : vector<8x128xf32>
    %364 = arith.mulf %359, %363 : vector<8x128xf32>
    %365 = arith.addf %361, %364 : vector<8x128xf32>
    %366 = math.tanh %365 : vector<8x128xf32>
    %367 = arith.subf %347, %366 : vector<8x128xf32>
    %368 = arith.mulf %360, %367 : vector<8x128xf32>
    %369 = arith.addf %366, %368 : vector<8x128xf32>
    %c56_95 = arith.constant 56 : index
    %c0_96 = arith.constant 0 : index
    %370 = vector.load %arg13[%c56_95, %c0_96] : memref<64x384xf32, #tpu.memory_space<vmem>>, vector<8x384xf32>
    %371 = arith.truncf %369 : vector<8x128xf32> to vector<8x128xbf16>
    %cst_97 = arith.constant dense<0.000000e+00> : vector<8x384xf32>
    %372 = tpu.matmul %371, %211, %cst_97 {dimension_numbers = #tpu.dot_dimension_numbers<[1], [0], [0], [1], [0, 0, 1, 1], [], []>} : vector<8x128xbf16>, vector<128x384xbf16>, vector<8x384xf32> -> vector<8x384xf32>
    %373 = vector.extract_strided_slice %370 {offsets = [0, 0], sizes = [8, 256], strides = [1, 1]} : vector<8x384xf32> to vector<8x256xf32>
    %374 = vector.extract_strided_slice %372 {offsets = [0, 0], sizes = [8, 256], strides = [1, 1]} : vector<8x384xf32> to vector<8x256xf32>
    %375 = arith.addf %373, %374 : vector<8x256xf32>
    %376 = arith.negf %375 : vector<8x256xf32>
    %377 = math.exp %376 : vector<8x256xf32>
    %cst_98 = arith.constant 1.000000e+00 : f32
    %378 = vector.broadcast %cst_98 : f32 to vector<8x256xf32>
    %379 = arith.addf %378, %377 : vector<8x256xf32>
    %380 = arith.divf %378, %379 : vector<8x256xf32>
    %381 = vector.extract_strided_slice %380 {offsets = [0, 0], sizes = [8, 128], strides = [1, 1]} : vector<8x256xf32> to vector<8x128xf32>
    %382 = vector.extract_strided_slice %380 {offsets = [0, 128], sizes = [8, 128], strides = [1, 1]} : vector<8x256xf32> to vector<8x128xf32>
    %383 = vector.extract_strided_slice %370 {offsets = [0, 256], sizes = [8, 128], strides = [1, 1]} : vector<8x384xf32> to vector<8x128xf32>
    %384 = vector.extract_strided_slice %372 {offsets = [0, 256], sizes = [8, 128], strides = [1, 1]} : vector<8x384xf32> to vector<8x128xf32>
    %385 = arith.addf %384, %214 : vector<8x128xf32>
    %386 = arith.mulf %381, %385 : vector<8x128xf32>
    %387 = arith.addf %383, %386 : vector<8x128xf32>
    %388 = math.tanh %387 : vector<8x128xf32>
    %389 = arith.subf %369, %388 : vector<8x128xf32>
    %390 = arith.mulf %382, %389 : vector<8x128xf32>
    %391 = arith.addf %388, %390 : vector<8x128xf32>
    %392 = arith.truncf %391 : vector<8x128xf32> to vector<8x128xbf16>
    %c0_99 = arith.constant 0 : index
    %c0_100 = arith.constant 0 : index
    %393 = vector.load %arg9[%c0_99, %c0_100] : memref<128x128xbf16, #tpu.memory_space<vmem>>, vector<128x128xbf16>
    %cst_101 = arith.constant dense<0.000000e+00> : vector<8x128xf32>
    %394 = tpu.matmul %392, %393, %cst_101 {dimension_numbers = #tpu.dot_dimension_numbers<[1], [0], [0], [1], [0, 0, 1, 1], [], []>} : vector<8x128xbf16>, vector<128x128xbf16>, vector<8x128xf32> -> vector<8x128xf32>
    %c0_102 = arith.constant 0 : index
    %c0_103 = arith.constant 0 : index
    %395 = vector.load %arg10[%c0_102, %c0_103] : memref<1x128xf32, #tpu.memory_space<vmem>>, vector<1x128xf32>
    %396 = vector.broadcast %395 : vector<1x128xf32> to vector<8x128xf32>
    %397 = arith.addf %394, %396 : vector<8x128xf32>
    %c0_104 = arith.constant 0 : index
    %c0_105 = arith.constant 0 : index
    %398 = vector.load %arg11[%c0_104, %c0_105] : memref<8x128xf32, #tpu.memory_space<vmem>>, vector<8x128xf32>
    tpu.vector_store %arg11[%c0_104, %c0_105], %397 {strides = array<i32>} : memref<8x128xf32, #tpu.memory_space<vmem>>, vector<8x128xf32>,
    return
  }
}

</mosaic_0001>

<bundles_post_ra>
// kernel: gru_model_forward.1
= control target key start
LH: loop header
LB: loop body
LE: loop exit
PB: predicated region body
PF: predicated region fallthrough
CT: control target
= control target key end

     0   :  { %16 = vsyncpa [#allocation5], 0  ;;  %s5291_s0 = inlined_call_operand.vmem [shape: bf16[64,128], index: 0, kind: input, shape index: {}]   ;;  %s5292_s1 = inlined_call_operand.hbm [shape: bf16[128,384], index: 1, kind: input, shape index: {}]   ;;  %s5293_s2 = inlined_call_operand.hbm [shape: bf16[128,384], index: 2, kind: input, shape index: {}]   ;;  %s5294_s3 = inlined_call_operand.vmem [shape: f32[1,384], index: 3, kind: input, shape index: {}]   ;;  %s5295_s4 = inlined_call_operand.vmem [shape: f32[1,128], index: 4, kind: input, shape index: {}]   ;;  %s5296_s5 = inlined_call_operand.hbm [shape: bf16[128,384], index: 5, kind: input, shape index: {}]   ;;  %s5297_s6 = inlined_call_operand.hbm [shape: bf16[128,384], index: 6, kind: input, shape index: {}]   ;;  %s5298_s7 = inlined_call_operand.vmem [shape: f32[1,384], index: 7, kind: input, shape index: {}]   ;;  %s5299_s8 = inlined_call_operand.vmem [shape: f32[1,128], index: 8, kind: input, shape index: {}]   ;;  %s5300_s9 = inlined_call_operand.vmem [shape: bf16[128,128], index: 9, kind: input, shape index: {}]   ;;  %s5301_s10 = inlined_call_operand.vmem [shape: f32[1,128], index: 10, kind: input, shape index: {}]   ;;  %s5302_s11 = inlined_call_operand.vmem [shape: f32[8,128], index: 11, kind: output, shape index: {}]  }
   0x1   :  { %17 = vsyncpa [#allocation7], 0 }
   0x2   :  { %18 = vsyncpa [#allocation10], 0  ;;  %s4135_s17 = smov [#allocation6]   ;;  %s4136_s19 = smov [#allocation4]  }
   0x3   :  { %s38_s18 = sshll.u32 %s4135_s17, 4  ;;  %s26_s20 = sshll.u32 %s4136_s19, 4  ;;  %s39_s18 = int_to_ptr.vmem [resolvable:$true] %s38_s18  ;;  %s4204_s20 = int_to_ptr.vmem [resolvable:$true] %s26_s20 }
   0x4   :  { %s4041_s23 = scalar_lea.hbm %s5293_s2, 3072 }
   0x5   :  { %p4042_p0 = scmp.ne.s32.totalorder %s5293_s2, %s4041_s23  ;;  %p4045_p1 = scmp.lt.u32.totalorder %s4041_s23, %s5293_s2 }
   0x7   :  { %p4047_p2 = pnand %p4045_p1, %p4042_p0 }
   0x9   :  { %4050 = shalt.err (!%p4047_p2)
}
   0xa   :  { %s4051_s28 = scalar_lea.vmem %s39_s18, 3072  ;;  %p4056_p4 = scmp.lt.s32.totalorder %s39_s18, %s39_s18 }
   0xb   :  { %p4052_p3 = scmp.ne.s32.totalorder %s39_s18, %s4051_s28  ;;  %p4057_p5 = scmp.lt.s32.totalorder %s4051_s28, %s4051_s28 }
   0xd   :  { %p4058_p6 = por %p4057_p5, %p4056_p4 }
   0xf   :  { %p4059_p7 = pnand %p4058_p6, %p4052_p3 }
  0x11   :  { %4062 = shalt.err (!%p4059_p7)
}
  0x12   :  { %s4137_s29 = smov 192   ;;  %s4138_s30 = smov 12  }
  0x13   :  { %44 = dma.hbm_to_vmem [thread:$0]  %s5293_s2, 3072, %s39_s18, [#allocation7], %s4137_s29, %s4137_s29, %s4138_s30  }
  0x14   :  { %s4063_s16 = scalar_lea.hbm %s5292_s1, 3072 }
  0x15   :  { %p4064_p8 = scmp.ne.s32.totalorder %s5292_s1, %s4063_s16  ;;  %p4067_p9 = scmp.lt.u32.totalorder %s4063_s16, %s5292_s1 }
  0x17   :  { %p4069_p10 = pnand %p4067_p9, %p4064_p8 }
  0x19   :  { %4072 = shalt.err (!%p4069_p10)
}
  0x1a   :  { %s4073_s23 = scalar_lea.vmem %s4204_s20, 3072  ;;  %p4078_p12 = scmp.lt.s32.totalorder %s4204_s20, %s4204_s20 }
  0x1b   :  { %p4074_p11 = scmp.ne.s32.totalorder %s4204_s20, %s4073_s23  ;;  %p4079_p13 = scmp.lt.s32.totalorder %s4073_s23, %s4073_s23 }
  0x1d   :  { %p4080_p0 = por %p4079_p13, %p4078_p12 }
  0x1f   :  { %p4081_p1 = pnand %p4080_p0, %p4074_p11 }
  0x21   :  { %4084 = shalt.err (!%p4081_p1)
}
  0x22   :  { %32 = dma.hbm_to_vmem [thread:$0]  %s5292_s1, 3072, %s4204_s20, [#allocation5], %s4137_s29, %s4137_s29, %s4138_s30  }
  0x23   :  { %s4139_s24 = smov [#allocation8]   ;;  %s4140_s26 = smov [#allocation9]  }
  0x24   :  { %s54_s25 = sshll.u32 %s4139_s24, 4  ;;  %s66_s27 = sshll.u32 %s4140_s26, 4  ;;  %s55_s25 = int_to_ptr.vmem [resolvable:$true] %s54_s25  ;;  %s4241_s27 = int_to_ptr.vmem [resolvable:$true] %s66_s27 }
  0x25   :  { %s4085_s13 = scalar_lea.hbm %s5296_s5, 3072 }
  0x26   :  { %p4086_p2 = scmp.ne.s32.totalorder %s5296_s5, %s4085_s13  ;;  %p4089_p3 = scmp.lt.u32.totalorder %s4085_s13, %s5296_s5 }
  0x28   :  { %p4091_p4 = pnand %p4089_p3, %p4086_p2 }
  0x2a   :  { %4094 = shalt.err (!%p4091_p4)
}
  0x2b   :  { %s4095_s1 = scalar_lea.vmem %s55_s25, 3072  ;;  %p4100_p6 = scmp.lt.s32.totalorder %s55_s25, %s55_s25 }
  0x2c   :  { %p4096_p5 = scmp.ne.s32.totalorder %s55_s25, %s4095_s1  ;;  %p4101_p7 = scmp.lt.s32.totalorder %s4095_s1, %s4095_s1 }
  0x2e   :  { %p4102_p8 = por %p4101_p7, %p4100_p6 }
  0x30   :  { %p4103_p9 = pnand %p4102_p8, %p4096_p5 }
  0x32   :  { %4106 = shalt.err (!%p4103_p9)
}
  0x33   :  { %60 = dma.hbm_to_vmem [thread:$0]  %s5296_s5, 3072, %s55_s25, [#allocation7], %s4137_s29, %s4137_s29, %s4138_s30  }
  0x34   :  { %s4107_s23 = scalar_lea.hbm %s5297_s6, 3072 }
  0x35   :  { %p4108_p10 = scmp.ne.s32.totalorder %s5297_s6, %s4107_s23  ;;  %p4111_p11 = scmp.lt.u32.totalorder %s4107_s23, %s5297_s6 }
  0x37   :  { %p4113_p12 = pnand %p4111_p11, %p4108_p10 }
  0x39   :  { %4116 = shalt.err (!%p4113_p12)
}
  0x3a   :  { %s4117_s28 = scalar_lea.vmem %s4241_s27, 3072  ;;  %p4122_p0 = scmp.lt.s32.totalorder %s4241_s27, %s4241_s27 }
  0x3b   :  { %p4118_p13 = scmp.ne.s32.totalorder %s4241_s27, %s4117_s28  ;;  %p4123_p1 = scmp.lt.s32.totalorder %s4117_s28, %s4117_s28 }
  0x3d   :  { %p4124_p2 = por %p4123_p1, %p4122_p0 }
  0x3f   :  { %p4125_p3 = pnand %p4124_p2, %p4118_p13 }
  0x41   :  { %4128 = shalt.err (!%p4125_p3)
}
  0x42   :  { %72 = dma.hbm_to_vmem [thread:$0]  %s5297_s6, 3072, %s4241_s27, [#allocation10], %s4137_s29, %s4137_s29, %s4138_s30  }
  0x43   :  { %4129 = dma.done.wait [#allocation5], 3072  }
  0x44   :  { %4130 = vsyncadd [#allocation5], 4294964224 }
  0x45   :  { %4131 = dma.done.wait [#allocation7], 6144  }
  0x46   :  { %4132 = vsyncadd [#allocation7], 4294961152 }
  0x47   :  { %4133 = dma.done.wait [#allocation10], 3072  }
  0x48   :  { %4134 = vsyncadd [#allocation10], 4294964224  ;;  %v5306_v0 = vmov 0   ;;  %v3694_v1 = vld [vmem:[#allocation4 + $0x4] ss:$12 sps:$4 sm:$0xff]   ;;  %v3729_v31 = vld [vmem:[%s5291_s0 + $0x8] sm:$0xff]   ;;  %v136_v54 = vlaneseq }
  0x49   :  { %335 = vmatprep.mubr.bf16.mxu0 %v5306_v0  ;;  %v3696_v2 = vld [vmem:[#allocation4] ss:$12 sps:$4 sm:$0xff]   ;;  %303 = vmatprep.subr.bf16.mxu0 %v3694_v1  ;;  %v3697_v3 = vld [vmem:[#allocation4 + $0x1c] ss:$12 sps:$4 sm:$0xff]   ;;  %v3699_v4 = vld [vmem:[#allocation4 + $0x18] ss:$12 sps:$4 sm:$0xff]  }
  0x4a   :  { %304 = vmatpush1.bf16.msra.mxu0 %v3696_v2  ;;  %v3700_v5 = vld [vmem:[#allocation4 + $0x34] ss:$12 sps:$4 sm:$0xff]   ;;  %v3702_v6 = vld [vmem:[#allocation4 + $0x30] ss:$12 sps:$4 sm:$0xff]   ;;  %v3703_v7 = vld [vmem:[#allocation4 + $0x4c] ss:$12 sps:$4 sm:$0xff]  }
  0x4b   :  { %305 = vmatprep.subr.bf16.mxu0 %v3697_v3  ;;  %v3714_v8 = vld [vmem:[#allocation4 + $0x8] ss:$12 sps:$4 sm:$0xff]   ;;  %v3706_v10 = vld [vmem:[#allocation4 + $0x64] ss:$12 sps:$4 sm:$0xff]   ;;  %v3718_v11 = vld [vmem:[#allocation4 + $0x20] ss:$12 sps:$4 sm:$0xff]  }
  0x4c   :  { %v3705_v9 = vld [vmem:[#allocation4 + $0x48] ss:$12 sps:$4 sm:$0xff]   ;;  %3297 = vmatprep.subr.bf16.mxu1 %v3714_v8  ;;  %v3720_v12 = vld [vmem:[%s5291_s0] sm:$0xff]   ;;  %v3725_v16 = vld [vmem:[#allocation4 + $0x50] ss:$12 sps:$4 sm:$0xff]   ;;  %v5308_v36 = vmov 0.0  }
  0x4d   :  { %3298 = vmatpush3.bf16.msra.mxu1 %v3714_v8  ;;  %v3721_v13 = vld [vmem:[#allocation4 + $0x38] ss:$12 sps:$4 sm:$0xff]   ;;  %v3708_v14 = vld [vmem:[#allocation4 + $0x60] ss:$12 sps:$4 sm:$0xff]   ;;  %3313 = vmatprep.mubr.bf16.mxu1 %v3720_v12  ;;  %v3709_v15 = vld [vmem:[#allocation4 + $0x7c] ss:$12 sps:$4 sm:$0xff]  }
  0x4e   :  { %306 = vmatpush1.bf16.msra.mxu0 %v3699_v4  ;;  %3299 = vmatprep.subr.bf16.mxu1 %v3718_v11  ;;  %v3711_v17 = vld [vmem:[#allocation4 + $0x78] ss:$12 sps:$4 sm:$0xff]   ;;  %v3712_v18 = vld [vmem:[#allocation4 + $0x94] ss:$12 sps:$4 sm:$0xff]   ;;  %v3715_v20 = vld [vmem:[#allocation4 + $0x90] ss:$12 sps:$4 sm:$0xff]  }
  0x4f   :  { %307 = vmatprep.subr.bf16.mxu0 %v3700_v5  ;;  %v3730_v19 = vld [vmem:[#allocation4 + $0x68] ss:$12 sps:$4 sm:$0xff]   ;;  %v3716_v21 = vld [vmem:[#allocation4 + $0xac] ss:$12 sps:$4 sm:$0xff]   ;;  %v4282_v24 = vld [vmem:[#allocation6 + $0x4] ss:$12 sps:$4 sm:$0xff]  }
  0x50   :  { %v3734_v22 = vld [vmem:[#allocation4 + $0x80] ss:$12 sps:$4 sm:$0xff]   ;;  %v3719_v23 = vld [vmem:[#allocation4 + $0xa8] ss:$12 sps:$4 sm:$0xff]   ;;  %v3739_v25 = vld [vmem:[#allocation4 + $0x98] ss:$12 sps:$4 sm:$0xff]  }
  0x51   :  { %3300 = vmatpush3.bf16.msra.mxu1 %v3718_v11  ;;  %v4284_v26 = vld [vmem:[#allocation6] ss:$12 sps:$4 sm:$0xff]   ;;  %v4287_v27 = vld [vmem:[#allocation6 + $0x1c] ss:$12 sps:$4 sm:$0xff]   ;;  %v4290_v29 = vld [vmem:[#allocation6 + $0x18] ss:$12 sps:$4 sm:$0xff]  }
  0x52   :  { %308 = vmatpush1.bf16.msra.mxu0 %v3702_v6  ;;  %3301 = vmatprep.subr.bf16.mxu1 %v3721_v13  ;;  %v3743_v28 = vld [vmem:[#allocation4 + $0xb0] ss:$12 sps:$4 sm:$0xff]   ;;  %v4294_v30 = vld [vmem:[#allocation6 + $0x34] ss:$12 sps:$4 sm:$0xff]   ;;  %v4303_v33 = vld [vmem:[#allocation6 + $0x4c] ss:$12 sps:$4 sm:$0xff]  }
  0x53   :  { %309 = vmatprep.subr.bf16.mxu0 %v3703_v7  ;;  %v4300_v32 = vld [vmem:[#allocation6 + $0x30] ss:$12 sps:$4 sm:$0xff]   ;;  %v4305_v34 = vld [vmem:[#allocation6 + $0x48] ss:$12 sps:$4 sm:$0xff]   ;;  %v4317_v39 = vld [vmem:[#allocation6 + $0x20] ss:$12 sps:$4 sm:$0xff]  }
  0x54   :  { %v3738_v35 = vld [vmem:[%s5291_s0 + $0x10] sm:$0xff]   ;;  %v4320_v40 = vld [vmem:[#allocation6 + $0x60] ss:$12 sps:$4 sm:$0xff]   ;;  %v4323_v41 = vld [vmem:[#allocation6 + $0x7c] ss:$12 sps:$4 sm:$0xff]   ;;  %vm4143_vm0 = vmmov 0  }
  0x55   :  { %3302 = vmatpush3.bf16.msra.mxu1 %v3721_v13  ;;  %v4311_v37 = vld [vmem:[#allocation6 + $0x8] ss:$12 sps:$4 sm:$0xff]   ;;  %v4313_v38 = vld [vmem:[#allocation6 + $0x64] ss:$12 sps:$4 sm:$0xff]   ;;  %v3747_v43 = vld [vmem:[%s5291_s0 + $0x18] sm:$0xff]   ;;  %v4416_v55 = vshrl.u32 %v136_v54, 7 }
  0x56   :  { %310 = vmatpush1.bf16.msra.mxu0 %v3705_v9  ;;  %3303 = vmatprep.subr.bf16.mxu1 %v3725_v16  ;;  %v4327_v42 = vld [vmem:[#allocation6 + $0x38] ss:$12 sps:$4 sm:$0xff]   ;;  %v4336_v45 = vld [vmem:[#allocation6 + $0x94] ss:$12 sps:$4 sm:$0xff]   ;;  %v4341_v46 = vld [vmem:[#allocation6 + $0x50] ss:$12 sps:$4 sm:$0xff]  }
  0x57   :  { %311 = vmatprep.subr.bf16.mxu0 %v3706_v10  ;;  %v4333_v44 = vld [vmem:[#allocation6 + $0x78] ss:$12 sps:$4 sm:$0xff]   ;;  %v4344_v47 = vld [vmem:[#allocation6 + $0x90] ss:$12 sps:$4 sm:$0xff]   ;;  %v4353_v49 = vld [vmem:[#allocation6 + $0x68] ss:$12 sps:$4 sm:$0xff]  }
  0x58   :  { %v4349_v48 = vld [vmem:[#allocation6 + $0xac] ss:$12 sps:$4 sm:$0xff]   ;;  %v4356_v50 = vld [vmem:[#allocation6 + $0xa8] ss:$12 sps:$4 sm:$0xff]   ;;  %v4378_v53 = vld [vmem:[#allocation6 + $0xb0] ss:$12 sps:$4 sm:$0xff]  }
  0x59   :  { %3304 = vmatpush3.bf16.msra.mxu1 %v3725_v16  ;;  %v4362_v51 = vld [vmem:[#allocation6 + $0x80] ss:$12 sps:$4 sm:$0xff]   ;;  %v4368_v52 = vld [vmem:[#allocation6 + $0x98] ss:$12 sps:$4 sm:$0xff]   ;;  %5312 = vst [vmem:[#allocation14_spill] sm:$0xff] %v4416_v55  ;;  %v5305_v56 = vsub.s32 0, %v4416_v55 }
  0x5a   :  { %312 = vmatpush1.bf16.msra.mxu0 %v3708_v14  ;;  %3305 = vmatprep.subr.bf16.mxu1 %v3730_v19  ;;  %v134_v57 = vld [vmem:[%s5294_s3] sm:$0x7]  ;;  %v5304_v58 = vsub.s32 1, %v4416_v55  ;;  %v5303_v3 = vsub.s32 2, %v4416_v55 }
  0x5b   :  { %313 = vmatprep.subr.bf16.mxu0 %v3709_v15  ;;  %v139_v60 = vrot.slane %v134_v57, %v5305_v56 }
  0x5c   :  { %v143_v62 = vrot.slane %v134_v57, %v5304_v58  ;;  %v4434_v5 = vrot.slane %v134_v57, %v5303_v3 }
  0x5d   :  { %3306 = vmatpush3.bf16.msra.mxu1 %v3730_v19 }
  0x5e   :  { %314 = vmatpush1.bf16.msra.mxu0 %v3711_v17  ;;  %3307 = vmatprep.subr.bf16.mxu1 %v3734_v22 }
  0x5f   :  { %315 = vmatprep.subr.bf16.mxu0 %v3712_v18 }
  0x61   :  { %3308 = vmatpush3.bf16.msra.mxu1 %v3734_v22 }
  0x62   :  { %316 = vmatpush1.bf16.msra.mxu0 %v3715_v20  ;;  %3309 = vmatprep.subr.bf16.mxu1 %v3739_v25 }
  0x63   :  { %317 = vmatprep.subr.bf16.mxu0 %v3716_v21 }
  0x65   :  { %3310 = vmatpush3.bf16.msra.mxu1 %v3739_v25 }
  0x66   :  { %318 = vmatpush1.bf16.msra.mxu0 %v3719_v23  ;;  %3311 = vmatprep.subr.bf16.mxu1 %v3743_v28 }
  0x67   :  { %635 = vmatprep.subr.bf16.mxu0 %v4282_v24 }
  0x69   :  { %336 = vmatmul.mubr.bf16.vlgmr.msra.gmra.mrb[0].mxu0 %v3720_v12  ;;  %3312 = vmatpush3.bf16.msra.mxu1 %v3743_v28 }
  0x6a   :  { %636 = vmatpush1.bf16.msra.mxu0 %v4284_v26  ;;  %345 = vmatprep.mubr.bf16.mxu0 %v5306_v0 }
  0x6b   :  { %637 = vmatprep.subr.bf16.mxu0 %v4287_v27  ;;  %3321 = vmatprep.subr.bf16.mxu1 %v5308_v36 }
  0x6c   :  { %3314 = vmatmul.mubr.bf16.vlgmr.msra.gmra.mrb[0].mxu1 %v3729_v31 }
  0x6d   :  { %3322 = vmatpush3.bf16.msra.mxu1 %v4311_v37  ;;  %3317 = vmatprep.mubr.bf16.mxu1 %v3738_v35 }
  0x6e   :  { %638 = vmatpush1.bf16.msra.mxu0 %v4290_v29  ;;  %3323 = vmatprep.subr.bf16.mxu1 %v5308_v36 }
  0x6f   :  { %639 = vmatprep.subr.bf16.mxu0 %v4294_v30 }
  0x71   :  { %346 = vmatmul.mubr.bf16.gmra.mrb[4].mxu0 %v3729_v31  ;;  %3324 = vmatpush3.bf16.msra.mxu1 %v4317_v39 }
  0x72   :  { %640 = vmatpush1.bf16.msra.mxu0 %v4300_v32  ;;  %355 = vmatprep.mubr.bf16.mxu0 %v5306_v0 }
  0x73   :  { %641 = vmatprep.subr.bf16.mxu0 %v4303_v33  ;;  %3325 = vmatprep.subr.bf16.mxu1 %v5308_v36 }
  0x74   :  { %3318 = vmatmul.mubr.bf16.gmra.mrb[4].mxu1 %v3747_v43 }
  0x75   :  { %3326 = vmatpush3.bf16.msra.mxu1 %v4327_v42  ;;  %3337 = vmatprep.mubr.msk.bf16.mxu1 %vm4143_vm0, %v5308_v36 }
  0x76   :  { %642 = vmatpush1.bf16.msra.mxu0 %v4305_v34  ;;  %3327 = vmatprep.subr.bf16.mxu1 %v5308_v36 }
  0x77   :  { %643 = vmatprep.subr.bf16.mxu0 %v4313_v38 }
  0x79   :  { %356 = vmatmul.mubr.bf16.gmra.mrb[8].mxu0 %v3738_v35  ;;  %3328 = vmatpush3.bf16.msra.mxu1 %v4341_v46 }
  0x7a   :  { %644 = vmatpush1.bf16.msra.mxu0 %v4320_v40  ;;  %365 = vmatprep.mubr.bf16.mxu0 %v5306_v0 }
  0x7b   :  { %645 = vmatprep.subr.bf16.mxu0 %v4323_v41  ;;  %3329 = vmatprep.subr.bf16.mxu1 %v5308_v36 }
  0x7d   :  { %3330 = vmatpush3.bf16.msra.mxu1 %v4353_v49 }
  0x7e   :  { %646 = vmatpush1.bf16.msra.mxu0 %v4333_v44  ;;  %3331 = vmatprep.subr.bf16.mxu1 %v5308_v36 }
  0x7f   :  { %647 = vmatprep.subr.bf16.mxu0 %v4336_v45 }
  0x81   :  { %366 = vmatmul.mubr.bf16.gmra.mrb[12].mxu0 %v3747_v43  ;;  %3332 = vmatpush3.bf16.msra.mxu1 %v4362_v51 }
  0x82   :  { %648 = vmatpush1.bf16.msra.mxu0 %v4344_v47  ;;  %667 = vmatprep.mubr.bf16.mxu0 %v5306_v0 }
  0x83   :  { %649 = vmatprep.subr.bf16.mxu0 %v4349_v48  ;;  %3333 = vmatprep.subr.bf16.mxu1 %v5308_v36 }
  0x85   :  { %3334 = vmatpush3.bf16.msra.mxu1 %v4368_v52 }
  0x86   :  { %650 = vmatpush1.bf16.msra.mxu0 %v4356_v50  ;;  %3335 = vmatprep.subr.bf16.mxu1 %v5308_v36 }
  0x87   :  { %742 = vmatprep.subr.bf16.mxu0 %v4282_v24 }
  0x89   :  { %668 = vmatmul.mubr.bf16.vlgmr.msra.gmra.mrb[16].mxu0 %v5306_v0  ;;  %3336 = vmatpush3.bf16.msra.mxu1 %v4378_v53 }
  0x8a   :  { %743 = vmatpush1.bf16.msra.mxu0 %v4284_v26  ;;  %774 = vmatprep.mubr.bf16.mxu0 %v5306_v0 }
  0x8b   :  { %744 = vmatprep.subr.bf16.mxu0 %v4287_v27  ;;  %3341 = vmatprep.subr.bf16.mxu1 %v5308_v36 }
  0x8c   :  { %3338 = vmatmul.mubr.bf16.vlgmr.msra.gmra.mrb[8].mxu1 %v5306_v0 }
  0x8d   :  { %3342 = vmatpush3.bf16.msra.mxu1 %v4311_v37  ;;  %3357 = vmatprep.mubr.msk.bf16.mxu1 %vm4143_vm0, %v5308_v36 }
  0x8e   :  { %745 = vmatpush1.bf16.msra.mxu0 %v4290_v29  ;;  %3343 = vmatprep.subr.bf16.mxu1 %v5308_v36 }
  0x8f   :  { %746 = vmatprep.subr.bf16.mxu0 %v4294_v30 }
  0x91   :  { %3344 = vmatpush3.bf16.msra.mxu1 %v4317_v39 }
  0x92   :  { %747 = vmatpush1.bf16.msra.mxu0 %v4300_v32  ;;  %3345 = vmatprep.subr.bf16.mxu1 %v5308_v36 }
  0x93   :  { %748 = vmatprep.subr.bf16.mxu0 %v4303_v33 }
  0x95   :  { %3346 = vmatpush3.bf16.msra.mxu1 %v4327_v42 }
  0x96   :  { %749 = vmatpush1.bf16.msra.mxu0 %v4305_v34  ;;  %3347 = vmatprep.subr.bf16.mxu1 %v5308_v36 }
  0x97   :  { %750 = vmatprep.subr.bf16.mxu0 %v4313_v38 }
  0x99   :  { %3348 = vmatpush3.bf16.msra.mxu1 %v4341_v46 }
  0x9a   :  { %751 = vmatpush1.bf16.msra.mxu0 %v4320_v40  ;;  %3349 = vmatprep.subr.bf16.mxu1 %v5308_v36 }
  0x9b   :  { %752 = vmatprep.subr.bf16.mxu0 %v4323_v41 }
  0x9d   :  { %3350 = vmatpush3.bf16.msra.mxu1 %v4353_v49 }
  0x9e   :  { %753 = vmatpush1.bf16.msra.mxu0 %v4333_v44  ;;  %3351 = vmatprep.subr.bf16.mxu1 %v5308_v36 }
  0x9f   :  { %754 = vmatprep.subr.bf16.mxu0 %v4336_v45 }
  0xa1   :  { %3352 = vmatpush3.bf16.msra.mxu1 %v4362_v51 }
  0xa2   :  { %755 = vmatpush1.bf16.msra.mxu0 %v4344_v47  ;;  %3353 = vmatprep.subr.bf16.mxu1 %v5308_v36 }
  0xa3   :  { %756 = vmatprep.subr.bf16.mxu0 %v4349_v48 }
  0xa5   :  { %3354 = vmatpush3.bf16.msra.mxu1 %v4368_v52 }
  0xa6   :  { %757 = vmatpush1.bf16.msra.mxu0 %v4356_v50  ;;  %3355 = vmatprep.subr.bf16.mxu1 %v5308_v36 }
  0xa7   :  { %852 = vmatprep.subr.bf16.mxu0 %v4282_v24 }
  0xa9   :  { %3356 = vmatpush3.bf16.msra.mxu1 %v4378_v53 }
  0xaa   :  { %3361 = vmatprep.subr.bf16.mxu1 %v5308_v36 }
 0x13c   :  { %v337_v59 = vpop.f32.mrb[0].mxu0 }
 0x13d   :  { %v339_v61 = vpop.f32.mrb[1].mxu0 }
 0x13e   :  { %v341_v63 = vpop.f32.mrb[2].mxu0  ;;  %v340_v3 = vadd.f32 %v339_v61, %v143_v62 }
 0x13f   :  { %v4427_v1 = vadd.f32 %v341_v63, %v139_v60  ;;  %v343_v2 = vpop.f32.mrb[3].mxu0  ;;  %v3315_v11 = vpop.f32.mrb[0].mxu1 }
 0x140   :  { %v4430_v4 = vadd.f32 %v343_v2, %v143_v62  ;;  %v4443_v14 = vadd.f32 %v3315_v11, %v4434_v5  ;;  %v410_v15 = vpop.f32.mrb[1].mxu1 }
 0x141   :  { %v3316_v17 = vpop.f32.mrb[2].mxu1 }
 0x142   :  { %v4448_v18 = vadd.f32 %v3316_v17, %v4434_v5  ;;  %v413_v19 = vpop.f32.mrb[3].mxu1 }
 0x143   :  { %v4451_v20 = vadd.f32 %v413_v19, %v4434_v5 }
 0x144   :  { %v347_v6 = vpop.f32.mrb[4].mxu0 }
 0x145   :  { %v4436_v7 = vadd.f32 %v347_v6, %v139_v60  ;;  %v349_v8 = vpop.f32.mrb[5].mxu0 }
 0x146   :  { %v4438_v9 = vadd.f32 %v349_v8, %v143_v62  ;;  %v351_v10 = vpop.f32.mrb[6].mxu0 }
 0x147   :  { %v4440_v12 = vadd.f32 %v351_v10, %v139_v60  ;;  %v353_v13 = vpop.f32.mrb[7].mxu0  ;;  %v3319_v31 = vpop.f32.mrb[4].mxu1 }
 0x148   :  { %v4445_v16 = vadd.f32 %v353_v13, %v143_v62  ;;  %v4460_v54 = vadd.f32 %v3319_v31, %v4434_v5  ;;  %v426_v57 = vpop.f32.mrb[5].mxu1 }
 0x149   :  { %v4465_v2 = vadd.f32 %v426_v57, %v4434_v5  ;;  %v3320_v6 = vpop.f32.mrb[6].mxu1  ;;  %v338_v57 = vadd.f32 %v337_v59, %v139_v60  ;;  %v4484_v59 = vld [vmem:[%s5295_s4] ss:$0 sm:$0xff] }
 0x14a   :  { %5313 = vst [vmem:[#allocation15_spill] sm:$0xff] %v4460_v54  ;;  %v4468_v8 = vadd.f32 %v3320_v6, %v4434_v5  ;;  %v429_v10 = vpop.f32.mrb[7].mxu1 }
 0x14b   :  { %v4471_v11 = vadd.f32 %v429_v10, %v4434_v5 }
 0x14c   :  { %v357_v21 = vpop.f32.mrb[8].mxu0  ;;  %5314 = vst [vmem:[#allocation16_spill] sm:$0xff] %v4468_v8 }
 0x14d   :  { %v4453_v22 = vadd.f32 %v357_v21, %v139_v60  ;;  %v359_v23 = vpop.f32.mrb[9].mxu0 }
 0x14e   :  { %v4455_v25 = vadd.f32 %v359_v23, %v143_v62  ;;  %v361_v28 = vpop.f32.mrb[10].mxu0 }
 0x14f   :  { %v4457_v35 = vadd.f32 %v361_v28, %v139_v60  ;;  %v363_v43 = vpop.f32.mrb[11].mxu0 }
 0x150   :  { %v4462_v63 = vadd.f32 %v363_v43, %v143_v62 }
 0x154   :  { %v367_v13 = vpop.f32.mrb[12].mxu0 }
 0x155   :  { %v4473_v17 = vadd.f32 %v367_v13, %v139_v60  ;;  %v369_v19 = vpop.f32.mrb[13].mxu0 }
 0x156   :  { %v4475_v21 = vadd.f32 %v369_v19, %v143_v62  ;;  %v371_v23 = vpop.f32.mrb[14].mxu0 }
 0x157   :  { %v4477_v28 = vadd.f32 %v371_v23, %v139_v60  ;;  %v373_v31 = vpop.f32.mrb[15].mxu0 }
 0x158   :  { %5315 = vst [vmem:[#allocation17_spill] sm:$0xff] %v4475_v21  ;;  %v4479_v43 = vadd.f32 %v373_v31, %v143_v62 }
 0x159   :  { %5316 = vst [vmem:[#allocation18_spill] sm:$0xff] %v4477_v28 }
 0x15c   :  { %v669_v6 = vpop.f32.mrb[16].mxu0 }
 0x15d   :  { %v716_v58 = vadd.f32 %v669_v6, %v338_v57  ;;  %v671_v56 = vpop.f32.mrb[17].mxu0 }
 0x15e   :  { %v717_v0 = vadd.f32 %v671_v56, %v340_v3  ;;  %v673_v10 = vpop.f32.mrb[18].mxu0 }
 0x15f   :  { %v3030_v36 = vmul.f32 -1.442695, %v716_v58  ;;  %v674_v55 = vpop.f32.mrb[19].mxu0  ;;  %v710_v13 = vpop.f32.mrb[8].mxu1 }
 0x160   :  { %v3339_v8 = vpop.f32.mrb[9].mxu1  ;;  %v3031_v54 = vmul.f32 -1.442695, %v717_v0  ;;  %v730_v56 = vadd.f32 %v4484_v59, %v710_v13 }
 0x161   :  { %3834 = vpow2.f32 %v3030_v36  ;;  %v713_v19 = vpop.f32.mrb[10].mxu1  ;;  %v411_v36 = vadd.f32 %v410_v15, %v4434_v5  ;;  %v5317_v5 = vmov 0.0   ;;  %v5318_v15 = vmov 0  }
 0x162   :  { %v3340_v21 = vpop.f32.mrb[11].mxu1  ;;  %3836 = vpow2.f32 %v3031_v54 }
 0x16b   :  { %v3835_v23 = vpop.eup %3834 }
 0x16c   :  { %v724_v28 = vadd.f32 1.0, %v3835_v23  ;;  %v3837_v60 = vpop.eup %3836 }
 0x16d   :  { %v725_v61 = vadd.f32 1.0, %v3837_v60 }
 0x16e   :  { %3838 = vrcp.f32 %v724_v28 }
 0x178   :  { %v3839_v58 = vpop.eup %3838 }
 0x179   :  { %v731_v55 = vmul.f32 %v3839_v58, %v730_v56 }
 0x17b   :  { %v732_v62 = vadd.f32 %v731_v55, %v411_v36 }
 0x17d   :  { %3840 = vtanh.f32 %v732_v62 }
 0x17e   :  { %3842 = vrcp.f32 %v725_v61 }
 0x187   :  { %v3841_v0 = vpop.eup %3840 }
 0x188   :  { %v734_v3 = vsub.f32 0.0, %v3841_v0  ;;  %v3843_v54 = vpop.eup %3842 }
 0x18a   :  { %v735_v8 = vmul.f32 %v3843_v54, %v734_v3 }
 0x18c   :  { %v4488_v21 = vadd.f32 %v3841_v0, %v735_v8 }
 0x18e   :  { %v737_v28 = vpack.c.bf16 %v4488_v21, %v4488_v21 }
 0x190   :  { %738 = vst [vmem:[#allocation2] sm:$0xf] %v737_v28  ;;  %775 = vmatmul.mubr.bf16.vlgmr.msra.gmra.mrb[20].mxu0 %v737_v28  ;;  %3358 = vmatmul.mubr.bf16.vlgmr.msra.gmra.mrb[12].mxu1 %v737_v28 }
 0x191   :  { %853 = vmatpush1.bf16.msra.mxu0 %v4284_v26  ;;  %3362 = vmatpush3.bf16.msra.mxu1 %v4311_v37 }
 0x192   :  { %854 = vmatprep.subr.bf16.mxu0 %v4287_v27  ;;  %3363 = vmatprep.subr.bf16.mxu1 %v5317_v5 }
 0x193   :  { %884 = vmatprep.mubr.bf16.mxu0 %v5318_v15  ;;  %3377 = vmatprep.mubr.msk.bf16.mxu1 %vm4143_vm0, %v5317_v5 }
 0x195   :  { %855 = vmatpush1.bf16.msra.mxu0 %v4290_v29  ;;  %3364 = vmatpush3.bf16.msra.mxu1 %v4317_v39 }
 0x196   :  { %856 = vmatprep.subr.bf16.mxu0 %v4294_v30  ;;  %3365 = vmatprep.subr.bf16.mxu1 %v5317_v5 }
 0x199   :  { %857 = vmatpush1.bf16.msra.mxu0 %v4300_v32  ;;  %3366 = vmatpush3.bf16.msra.mxu1 %v4327_v42 }
 0x19a   :  { %858 = vmatprep.subr.bf16.mxu0 %v4303_v33  ;;  %3367 = vmatprep.subr.bf16.mxu1 %v5317_v5 }
 0x19d   :  { %859 = vmatpush1.bf16.msra.mxu0 %v4305_v34  ;;  %3368 = vmatpush3.bf16.msra.mxu1 %v4341_v46 }
 0x19e   :  { %860 = vmatprep.subr.bf16.mxu0 %v4313_v38  ;;  %3369 = vmatprep.subr.bf16.mxu1 %v5317_v5 }
 0x1a1   :  { %861 = vmatpush1.bf16.msra.mxu0 %v4320_v40  ;;  %3370 = vmatpush3.bf16.msra.mxu1 %v4353_v49 }
 0x1a2   :  { %862 = vmatprep.subr.bf16.mxu0 %v4323_v41  ;;  %3371 = vmatprep.subr.bf16.mxu1 %v5317_v5 }
 0x1a5   :  { %863 = vmatpush1.bf16.msra.mxu0 %v4333_v44  ;;  %3372 = vmatpush3.bf16.msra.mxu1 %v4362_v51 }
 0x1a6   :  { %864 = vmatprep.subr.bf16.mxu0 %v4336_v45  ;;  %3373 = vmatprep.subr.bf16.mxu1 %v5317_v5 }
 0x1a9   :  { %865 = vmatpush1.bf16.msra.mxu0 %v4344_v47  ;;  %3374 = vmatpush3.bf16.msra.mxu1 %v4368_v52 }
 0x1aa   :  { %866 = vmatprep.subr.bf16.mxu0 %v4349_v48  ;;  %3375 = vmatprep.subr.bf16.mxu1 %v5317_v5 }
 0x1ad   :  { %867 = vmatpush1.bf16.msra.mxu0 %v4356_v50  ;;  %3376 = vmatpush3.bf16.msra.mxu1 %v4378_v53 }
 0x1ae   :  { %959 = vmatprep.subr.bf16.mxu0 %v4282_v24  ;;  %3381 = vmatprep.subr.bf16.mxu1 %v5317_v5 }
 0x263   :  { %v776_v31 = vpop.f32.mrb[20].mxu0  ;;  %v817_v57 = vpop.f32.mrb[12].mxu1 }
 0x264   :  { %v823_v6 = vadd.f32 %v776_v31, %v4427_v1  ;;  %v778_v10 = vpop.f32.mrb[21].mxu0  ;;  %v3359_v13 = vpop.f32.mrb[13].mxu1  ;;  %v837_v3 = vadd.f32 %v4484_v59, %v817_v57 }
 0x265   :  { %v824_v19 = vadd.f32 %v778_v10, %v4430_v4  ;;  %v780_v23 = vpop.f32.mrb[22].mxu0  ;;  %v820_v56 = vpop.f32.mrb[14].mxu1 }
 0x266   :  { %v3032_v60 = vmul.f32 -1.442695, %v823_v6  ;;  %v781_v58 = vpop.f32.mrb[23].mxu0  ;;  %v3360_v36 = vpop.f32.mrb[15].mxu1 }
 0x267   :  { %v3033_v55 = vmul.f32 -1.442695, %v824_v19 }
 0x268   :  { %3844 = vpow2.f32 %v3032_v60 }
 0x269   :  { %3846 = vpow2.f32 %v3033_v55 }
 0x272   :  { %v3845_v61 = vpop.eup %3844 }
 0x273   :  { %v831_v62 = vadd.f32 1.0, %v3845_v61  ;;  %v3847_v0 = vpop.eup %3846 }
 0x274   :  { %v832_v28 = vadd.f32 1.0, %v3847_v0 }
 0x275   :  { %3848 = vrcp.f32 %v831_v62 }
 0x27f   :  { %v3849_v54 = vpop.eup %3848 }
 0x280   :  { %v838_v1 = vmul.f32 %v3849_v54, %v837_v3 }
 0x282   :  { %v839_v8 = vadd.f32 %v838_v1, %v4451_v20 }
 0x284   :  { %3850 = vtanh.f32 %v839_v8 }
 0x285   :  { %3852 = vrcp.f32 %v832_v28 }
 0x28e   :  { %v3851_v4 = vpop.eup %3850 }
 0x28f   :  { %v841_v31 = vsub.f32 %v4488_v21, %v3851_v4  ;;  %v3853_v6 = vpop.eup %3852 }
 0x291   :  { %v842_v10 = vmul.f32 %v3853_v6, %v841_v31 }
 0x293   :  { %v4532_v13 = vadd.f32 %v3851_v4, %v842_v10 }
 0x295   :  { %v844_v19 = vpack.c.bf16 %v4532_v13, %v4532_v13 }
 0x297   :  { %v846_v23 = vrot.slane %v844_v19, 4  ;;  %885 = vmatmul.mubr.bf16.vlgmr.msra.gmra.mrb[24].mxu0 %v844_v19  ;;  %3378 = vmatmul.mubr.bf16.vlgmr.msra.gmra.mrb[16].mxu1 %v844_v19 }
 0x298   :  { %960 = vmatpush1.bf16.msra.mxu0 %v4284_v26  ;;  %3382 = vmatpush3.bf16.msra.mxu1 %v4311_v37 }
 0x299   :  { %848 = vst [vmem:[#allocation2] sm:$0xf0] %v846_v23  ;;  %961 = vmatprep.subr.bf16.mxu0 %v4287_v27  ;;  %3383 = vmatprep.subr.bf16.mxu1 %v5317_v5 }
 0x29a   :  { %991 = vmatprep.mubr.bf16.mxu0 %v5318_v15  ;;  %3397 = vmatprep.mubr.msk.bf16.mxu1 %vm4143_vm0, %v5317_v5 }
 0x29c   :  { %962 = vmatpush1.bf16.msra.mxu0 %v4290_v29  ;;  %3384 = vmatpush3.bf16.msra.mxu1 %v4317_v39 }
 0x29d   :  { %963 = vmatprep.subr.bf16.mxu0 %v4294_v30  ;;  %3385 = vmatprep.subr.bf16.mxu1 %v5317_v5 }
 0x2a0   :  { %964 = vmatpush1.bf16.msra.mxu0 %v4300_v32  ;;  %3386 = vmatpush3.bf16.msra.mxu1 %v4327_v42 }
 0x2a1   :  { %965 = vmatprep.subr.bf16.mxu0 %v4303_v33  ;;  %3387 = vmatprep.subr.bf16.mxu1 %v5317_v5 }
 0x2a4   :  { %966 = vmatpush1.bf16.msra.mxu0 %v4305_v34  ;;  %3388 = vmatpush3.bf16.msra.mxu1 %v4341_v46 }
 0x2a5   :  { %967 = vmatprep.subr.bf16.mxu0 %v4313_v38  ;;  %3389 = vmatprep.subr.bf16.mxu1 %v5317_v5 }
 0x2a8   :  { %968 = vmatpush1.bf16.msra.mxu0 %v4320_v40  ;;  %3390 = vmatpush3.bf16.msra.mxu1 %v4353_v49 }
 0x2a9   :  { %969 = vmatprep.subr.bf16.mxu0 %v4323_v41  ;;  %3391 = vmatprep.subr.bf16.mxu1 %v5317_v5 }
 0x2ac   :  { %970 = vmatpush1.bf16.msra.mxu0 %v4333_v44  ;;  %3392 = vmatpush3.bf16.msra.mxu1 %v4362_v51 }
 0x2ad   :  { %971 = vmatprep.subr.bf16.mxu0 %v4336_v45  ;;  %3393 = vmatprep.subr.bf16.mxu1 %v5317_v5 }
 0x2b0   :  { %972 = vmatpush1.bf16.msra.mxu0 %v4344_v47  ;;  %3394 = vmatpush3.bf16.msra.mxu1 %v4368_v52 }
 0x2b1   :  { %973 = vmatprep.subr.bf16.mxu0 %v4349_v48  ;;  %3395 = vmatprep.subr.bf16.mxu1 %v5317_v5 }
 0x2b4   :  { %974 = vmatpush1.bf16.msra.mxu0 %v4356_v50  ;;  %3396 = vmatpush3.bf16.msra.mxu1 %v4378_v53 }
 0x2b5   :  { %1069 = vmatprep.subr.bf16.mxu0 %v4282_v24  ;;  %3401 = vmatprep.subr.bf16.mxu1 %v5317_v5 }
 0x36a   :  { %v886_v20 = vpop.f32.mrb[24].mxu0  ;;  %v927_v21 = vpop.f32.mrb[16].mxu1 }
 0x36b   :  { %v933_v57 = vadd.f32 %v886_v20, %v4436_v7  ;;  %v888_v56 = vpop.f32.mrb[25].mxu0  ;;  %v3379_v60 = vpop.f32.mrb[17].mxu1  ;;  %v947_v28 = vadd.f32 %v4484_v59, %v927_v21 }
 0x36c   :  { %v934_v58 = vadd.f32 %v888_v56, %v4438_v9  ;;  %v890_v36 = vpop.f32.mrb[26].mxu0  ;;  %v930_v55 = vpop.f32.mrb[18].mxu1 }
 0x36d   :  { %v3034_v61 = vmul.f32 -1.442695, %v933_v57  ;;  %v891_v62 = vpop.f32.mrb[27].mxu0  ;;  %v3380_v0 = vpop.f32.mrb[19].mxu1 }
 0x36e   :  { %v3035_v3 = vmul.f32 -1.442695, %v934_v58 }
 0x36f   :  { %3854 = vpow2.f32 %v3034_v61 }
 0x370   :  { %3856 = vpow2.f32 %v3035_v3 }
 0x379   :  { %v3855_v54 = vpop.eup %3854 }
 0x37a   :  { %v941_v1 = vadd.f32 1.0, %v3855_v54  ;;  %v3857_v8 = vpop.eup %3856 }
 0x37b   :  { %v942_v6 = vadd.f32 1.0, %v3857_v8 }
 0x37c   :  { %3858 = vrcp.f32 %v941_v1 }
 0x386   :  { %v3859_v4 = vpop.eup %3858 }
 0x387   :  { %v948_v7 = vmul.f32 %v3859_v4, %v947_v28 }
 0x389   :  { %v949_v31 = vadd.f32 %v948_v7, %v4443_v14 }
 0x38b   :  { %3860 = vtanh.f32 %v949_v31 }
 0x38c   :  { %3862 = vrcp.f32 %v942_v6 }
 0x395   :  { %v3861_v9 = vpop.eup %3860 }
 0x396   :  { %v951_v10 = vsub.f32 %v4532_v13, %v3861_v9  ;;  %v3863_v19 = vpop.eup %3862 }
 0x398   :  { %v952_v23 = vmul.f32 %v3863_v19, %v951_v10  ;;  %v4624_v19 = vld [vmem:[#allocation6] ss:$12 sps:$4 sm:$0xff]  }
 0x39a   :  { %v4576_v20 = vadd.f32 %v3861_v9, %v952_v23 }
 0x39c   :  { %v954_v57 = vpack.c.bf16 %v4576_v20, %v4576_v20 }
 0x39e   :  { %955 = vst [vmem:[#allocation2 + $0x8] sm:$0xf] %v954_v57  ;;  %992 = vmatmul.mubr.bf16.vlgmr.msra.gmra.mrb[28].mxu0 %v954_v57  ;;  %3398 = vmatmul.mubr.bf16.vlgmr.msra.gmra.mrb[20].mxu1 %v954_v57 }
 0x39f   :  { %1070 = vmatpush1.bf16.msra.mxu0 %v4284_v26  ;;  %3402 = vmatpush3.bf16.msra.mxu1 %v4311_v37 }
 0x3a0   :  { %1071 = vmatprep.subr.bf16.mxu0 %v4287_v27  ;;  %3403 = vmatprep.subr.bf16.mxu1 %v5317_v5 }
 0x3a1   :  { %1101 = vmatprep.mubr.bf16.mxu0 %v5318_v15  ;;  %3417 = vmatprep.mubr.msk.bf16.mxu1 %vm4143_vm0, %v5317_v5 }
 0x3a3   :  { %1072 = vmatpush1.bf16.msra.mxu0 %v4290_v29  ;;  %3404 = vmatpush3.bf16.msra.mxu1 %v4317_v39 }
 0x3a4   :  { %1073 = vmatprep.subr.bf16.mxu0 %v4294_v30  ;;  %3405 = vmatprep.subr.bf16.mxu1 %v5317_v5 }
 0x3a7   :  { %1074 = vmatpush1.bf16.msra.mxu0 %v4300_v32  ;;  %3406 = vmatpush3.bf16.msra.mxu1 %v4327_v42 }
 0x3a8   :  { %1075 = vmatprep.subr.bf16.mxu0 %v4303_v33  ;;  %3407 = vmatprep.subr.bf16.mxu1 %v5317_v5 }
 0x3ab   :  { %1076 = vmatpush1.bf16.msra.mxu0 %v4305_v34  ;;  %3408 = vmatpush3.bf16.msra.mxu1 %v4341_v46 }
 0x3ac   :  { %1077 = vmatprep.subr.bf16.mxu0 %v4313_v38  ;;  %3409 = vmatprep.subr.bf16.mxu1 %v5317_v5 }
 0x3af   :  { %1078 = vmatpush1.bf16.msra.mxu0 %v4320_v40  ;;  %3410 = vmatpush3.bf16.msra.mxu1 %v4353_v49 }
 0x3b0   :  { %1079 = vmatprep.subr.bf16.mxu0 %v4323_v41  ;;  %3411 = vmatprep.subr.bf16.mxu1 %v5317_v5 }
 0x3b3   :  { %1080 = vmatpush1.bf16.msra.mxu0 %v4333_v44  ;;  %3412 = vmatpush3.bf16.msra.mxu1 %v4362_v51 }
 0x3b4   :  { %1081 = vmatprep.subr.bf16.mxu0 %v4336_v45  ;;  %3413 = vmatprep.subr.bf16.mxu1 %v5317_v5 }
 0x3b7   :  { %1082 = vmatpush1.bf16.msra.mxu0 %v4344_v47  ;;  %3414 = vmatpush3.bf16.msra.mxu1 %v4368_v52 }
 0x3b8   :  { %1083 = vmatprep.subr.bf16.mxu0 %v4349_v48  ;;  %3415 = vmatprep.subr.bf16.mxu1 %v5317_v5 }
 0x3bb   :  { %1084 = vmatpush1.bf16.msra.mxu0 %v4356_v50  ;;  %3416 = vmatpush3.bf16.msra.mxu1 %v4378_v53 }
 0x3bc   :  { %1176 = vmatprep.subr.bf16.mxu0 %v4282_v24  ;;  %3421 = vmatprep.subr.bf16.mxu1 %v5317_v5 }
 0x471   :  { %v993_v26 = vpop.f32.mrb[28].mxu0  ;;  %v1034_v27 = vpop.f32.mrb[20].mxu1 }
 0x472   :  { %v1040_v14 = vadd.f32 %v993_v26, %v4440_v12  ;;  %v995_v13 = vpop.f32.mrb[29].mxu0  ;;  %v3399_v21 = vpop.f32.mrb[21].mxu1  ;;  %v1054_v54 = vadd.f32 %v4484_v59, %v1034_v27 }
 0x473   :  { %v1041_v56 = vadd.f32 %v995_v13, %v4445_v16  ;;  %v997_v60 = vpop.f32.mrb[30].mxu0  ;;  %v1037_v58 = vpop.f32.mrb[22].mxu1 }
 0x474   :  { %v3036_v36 = vmul.f32 -1.442695, %v1040_v14  ;;  %v998_v55 = vpop.f32.mrb[31].mxu0  ;;  %v3400_v61 = vpop.f32.mrb[23].mxu1 }
 0x475   :  { %v3037_v62 = vmul.f32 -1.442695, %v1041_v56  ;;  %v4675_v55 = vld [vmem:[#allocation6 + $0x8] ss:$12 sps:$4 sm:$0xff]   ;;  %v4686_v61 = vld [vmem:[#allocation6 + $0x20] ss:$12 sps:$4 sm:$0xff]  }
 0x476   :  { %3864 = vpow2.f32 %v3036_v36 }
 0x477   :  { %3866 = vpow2.f32 %v3037_v62  ;;  %v4689_v62 = vld [vmem:[#allocation6 + $0x34] ss:$12 sps:$4 sm:$0xff]  }
 0x480   :  { %v3865_v0 = vpop.eup %3864 }
 0x481   :  { %v1048_v3 = vadd.f32 1.0, %v3865_v0  ;;  %v3867_v24 = vpop.eup %3866  ;;  %v4693_v0 = vld [vmem:[#allocation6 + $0x30] ss:$12 sps:$4 sm:$0xff]  }
 0x482   :  { %v1049_v28 = vadd.f32 1.0, %v3867_v24  ;;  %v4699_v24 = vld [vmem:[#allocation6 + $0x4c] ss:$12 sps:$4 sm:$0xff]  }
 0x483   :  { %3868 = vrcp.f32 %v1048_v3  ;;  %v4696_v3 = vld [vmem:[#allocation6 + $0x38] ss:$12 sps:$4 sm:$0xff]  }
 0x48d   :  { %v3869_v1 = vpop.eup %3868 }
 0x48e   :  { %v1055_v12 = vmul.f32 %v3869_v1, %v1054_v54  ;;  %v4703_v54 = vld [vmem:[#allocation6 + $0x48] ss:$12 sps:$4 sm:$0xff]   ;;  %v4707_v1 = vld [vmem:[#allocation6 + $0x64] ss:$12 sps:$4 sm:$0xff]  }
 0x490   :  { %v1056_v8 = vadd.f32 %v1055_v12, %v4448_v18  ;;  %v4628_v18 = vld [vmem:[#allocation6 + $0x1c] ss:$12 sps:$4 sm:$0xff]   ;;  %v4711_v12 = vld [vmem:[#allocation6 + $0x60] ss:$12 sps:$4 sm:$0xff]  }
 0x492   :  { %3870 = vtanh.f32 %v1056_v8  ;;  %v4715_v8 = vld [vmem:[#allocation6 + $0x7c] ss:$12 sps:$4 sm:$0xff]  }
 0x493   :  { %3872 = vrcp.f32 %v1049_v28  ;;  %v4719_v28 = vld [vmem:[#allocation6 + $0x78] ss:$12 sps:$4 sm:$0xff]  }
 0x49c   :  { %v3871_v16 = vpop.eup %3870 }
 0x49d   :  { %v1058_v4 = vsub.f32 %v4576_v20, %v3871_v16  ;;  %v3873_v7 = vpop.eup %3872 }
 0x49f   :  { %v1059_v31 = vmul.f32 %v3873_v7, %v1058_v4 }
 0x4a1   :  { %v4620_v6 = vadd.f32 %v3871_v16, %v1059_v31 }
 0x4a3   :  { %v1061_v9 = vpack.c.bf16 %v4620_v6, %v4620_v6 }
 0x4a5   :  { %v1063_v10 = vrot.slane %v1061_v9, 4  ;;  %1102 = vmatmul.mubr.bf16.vlgmr.msra.gmra.mrb[32].mxu0 %v1061_v9  ;;  %3418 = vmatmul.mubr.bf16.vlgmr.msra.gmra.mrb[24].mxu1 %v1061_v9 }
 0x4a6   :  { %1177 = vmatpush1.bf16.msra.mxu0 %v4624_v19  ;;  %3422 = vmatpush3.bf16.msra.mxu1 %v4311_v37 }
 0x4a7   :  { %1065 = vst [vmem:[#allocation2 + $0x8] sm:$0xf0] %v1063_v10  ;;  %1178 = vmatprep.subr.bf16.mxu0 %v4628_v18  ;;  %3423 = vmatprep.subr.bf16.mxu1 %v5317_v5 }
 0x4a8   :  { %1208 = vmatprep.mubr.bf16.mxu0 %v5318_v15  ;;  %3437 = vmatprep.mubr.msk.bf16.mxu1 %vm4143_vm0, %v5317_v5 }
 0x4aa   :  { %1179 = vmatpush1.bf16.msra.mxu0 %v4290_v29  ;;  %3424 = vmatpush3.bf16.msra.mxu1 %v4317_v39  ;;  %v4661_v29 = vld [vmem:[#allocation6 + $0x4] ss:$12 sps:$4 sm:$0xff]  }
 0x4ab   :  { %1180 = vmatprep.subr.bf16.mxu0 %v4294_v30  ;;  %3425 = vmatprep.subr.bf16.mxu1 %v5317_v5 }
 0x4ae   :  { %1181 = vmatpush1.bf16.msra.mxu0 %v4300_v32  ;;  %3426 = vmatpush3.bf16.msra.mxu1 %v4327_v42 }
 0x4af   :  { %1182 = vmatprep.subr.bf16.mxu0 %v4303_v33  ;;  %3427 = vmatprep.subr.bf16.mxu1 %v5317_v5 }
 0x4b2   :  { %1183 = vmatpush1.bf16.msra.mxu0 %v4305_v34  ;;  %3428 = vmatpush3.bf16.msra.mxu1 %v4341_v46 }
 0x4b3   :  { %1184 = vmatprep.subr.bf16.mxu0 %v4313_v38  ;;  %3429 = vmatprep.subr.bf16.mxu1 %v5317_v5 }
 0x4b6   :  { %1185 = vmatpush1.bf16.msra.mxu0 %v4320_v40  ;;  %3430 = vmatpush3.bf16.msra.mxu1 %v4353_v49 }
 0x4b7   :  { %1186 = vmatprep.subr.bf16.mxu0 %v4323_v41  ;;  %3431 = vmatprep.subr.bf16.mxu1 %v5317_v5 }
 0x4ba   :  { %1187 = vmatpush1.bf16.msra.mxu0 %v4333_v44  ;;  %3432 = vmatpush3.bf16.msra.mxu1 %v4362_v51 }
 0x4bb   :  { %1188 = vmatprep.subr.bf16.mxu0 %v4336_v45  ;;  %3433 = vmatprep.subr.bf16.mxu1 %v5317_v5 }
 0x4be   :  { %1189 = vmatpush1.bf16.msra.mxu0 %v4344_v47  ;;  %3434 = vmatpush3.bf16.msra.mxu1 %v4368_v52 }
 0x4bf   :  { %1190 = vmatprep.subr.bf16.mxu0 %v4349_v48  ;;  %3435 = vmatprep.subr.bf16.mxu1 %v5317_v5 }
 0x4c2   :  { %1191 = vmatpush1.bf16.msra.mxu0 %v4356_v50  ;;  %3436 = vmatpush3.bf16.msra.mxu1 %v4378_v53 }
 0x4c3   :  { %1286 = vmatprep.subr.bf16.mxu0 %v4661_v29  ;;  %3441 = vmatprep.subr.bf16.mxu1 %v5317_v5 }
 0x578   :  { %v1103_v30 = vpop.f32.mrb[32].mxu0  ;;  %v1144_v32 = vpop.f32.mrb[24].mxu1 }
 0x579   :  { %v1150_v33 = vadd.f32 %v1103_v30, %v4453_v22  ;;  %v1105_v34 = vpop.f32.mrb[33].mxu0  ;;  %v3419_v37 = vpop.f32.mrb[25].mxu1  ;;  %v1164_v26 = vadd.f32 %v4484_v59, %v1144_v32 }
 0x57a   :  { %v1151_v38 = vadd.f32 %v1105_v34, %v4455_v25  ;;  %v1107_v39 = vpop.f32.mrb[34].mxu0  ;;  %v1147_v40 = vpop.f32.mrb[26].mxu1 }
 0x57b   :  { %v3038_v41 = vmul.f32 -1.442695, %v1150_v33  ;;  %v1108_v42 = vpop.f32.mrb[35].mxu0  ;;  %v3420_v44 = vpop.f32.mrb[27].mxu1 }
 0x57c   :  { %v3039_v45 = vmul.f32 -1.442695, %v1151_v38 }
 0x57d   :  { %3874 = vpow2.f32 %v3038_v41 }
 0x57e   :  { %3876 = vpow2.f32 %v3039_v45  ;;  %v4013_v45 = vld [vmem:[#allocation6 + $0x90] ss:$12 sps:$4 sm:$0xff]  }
 0x587   :  { %v3875_v23 = vpop.eup %3874 }
 0x588   :  { %v1158_v20 = vadd.f32 1.0, %v3875_v23  ;;  %v3877_v57 = vpop.eup %3876  ;;  %v4014_v23 = vld [vmem:[#allocation6 + $0x98] ss:$12 sps:$4 sm:$0xff]  }
 0x589   :  { %v1159_v13 = vadd.f32 1.0, %v3877_v57  ;;  %v4016_v57 = vld [vmem:[#allocation6 + $0xa8] ss:$12 sps:$4 sm:$0xff]  }
 0x58a   :  { %3878 = vrcp.f32 %v1158_v20  ;;  %v4015_v20 = vld [vmem:[#allocation6 + $0xac] ss:$12 sps:$4 sm:$0xff]  }
 0x594   :  { %v3879_v27 = vpop.eup %3878 }
 0x595   :  { %v1165_v22 = vmul.f32 %v3879_v27, %v1164_v26  ;;  %v3764_v26 = vld [vmem:[#allocation8 + $0x4] ss:$12 sps:$4 sm:$0xff]   ;;  %v3765_v27 = vld [vmem:[#allocation8 + $0x8] ss:$12 sps:$4 sm:$0xff]  }
 0x597   :  { %v1166_v14 = vadd.f32 %v1165_v22, %v4465_v2  ;;  %v4683_v2 = vld [vmem:[#allocation6 + $0x18] ss:$12 sps:$4 sm:$0xff]  }
 0x599   :  { %3880 = vtanh.f32 %v1166_v14 }
 0x59a   :  { %3882 = vrcp.f32 %v1159_v13 }
 0x5a3   :  { %v3881_v25 = vpop.eup %3880 }
 0x5a4   :  { %v1168_v21 = vsub.f32 %v4620_v6, %v3881_v25  ;;  %v3883_v56 = vpop.eup %3882 }
 0x5a6   :  { %v1169_v60 = vmul.f32 %v3883_v56, %v1168_v21  ;;  %v5319_v56 = vld [vmem:[#allocation17_spill] sm:$0xff] }
 0x5a8   :  { %v4670_v58 = vadd.f32 %v3881_v25, %v1169_v60 }
 0x5aa   :  { %v1171_v36 = vpack.c.bf16 %v4670_v58, %v4670_v58 }
 0x5ac   :  { %1172 = vst [vmem:[#allocation2 + $0x10] sm:$0xf] %v1171_v36  ;;  %1209 = vmatmul.mubr.bf16.vlgmr.msra.gmra.mrb[36].mxu0 %v1171_v36  ;;  %3438 = vmatmul.mubr.bf16.vlgmr.msra.gmra.mrb[28].mxu1 %v1171_v36 }
 0x5ad   :  { %1287 = vmatpush1.bf16.msra.mxu0 %v4624_v19  ;;  %3442 = vmatpush3.bf16.msra.mxu1 %v4675_v55 }
 0x5ae   :  { %1288 = vmatprep.subr.bf16.mxu0 %v4628_v18  ;;  %3443 = vmatprep.subr.bf16.mxu1 %v5317_v5 }
 0x5af   :  { %1318 = vmatprep.mubr.bf16.mxu0 %v5318_v15  ;;  %3457 = vmatprep.mubr.msk.bf16.mxu1 %vm4143_vm0, %v5317_v5 }
 0x5b1   :  { %1289 = vmatpush1.bf16.msra.mxu0 %v4683_v2  ;;  %3444 = vmatpush3.bf16.msra.mxu1 %v4686_v61 }
 0x5b2   :  { %1290 = vmatprep.subr.bf16.mxu0 %v4689_v62  ;;  %3445 = vmatprep.subr.bf16.mxu1 %v5317_v5 }
 0x5b5   :  { %1291 = vmatpush1.bf16.msra.mxu0 %v4693_v0  ;;  %3446 = vmatpush3.bf16.msra.mxu1 %v4696_v3 }
 0x5b6   :  { %1292 = vmatprep.subr.bf16.mxu0 %v4699_v24  ;;  %3447 = vmatprep.subr.bf16.mxu1 %v5317_v5 }
 0x5b9   :  { %1293 = vmatpush1.bf16.msra.mxu0 %v4703_v54  ;;  %3448 = vmatpush3.bf16.msra.mxu1 %v4341_v46  ;;  %v4723_v46 = vld [vmem:[#allocation6 + $0x94] ss:$12 sps:$4 sm:$0xff]  }
 0x5ba   :  { %1294 = vmatprep.subr.bf16.mxu0 %v4707_v1  ;;  %3449 = vmatprep.subr.bf16.mxu1 %v5317_v5 }
 0x5bd   :  { %1295 = vmatpush1.bf16.msra.mxu0 %v4711_v12  ;;  %3450 = vmatpush3.bf16.msra.mxu1 %v4353_v49 }
 0x5be   :  { %1296 = vmatprep.subr.bf16.mxu0 %v4715_v8  ;;  %3451 = vmatprep.subr.bf16.mxu1 %v5317_v5 }
 0x5c1   :  { %1297 = vmatpush1.bf16.msra.mxu0 %v4719_v28  ;;  %3452 = vmatpush3.bf16.msra.mxu1 %v4362_v51 }
 0x5c2   :  { %1298 = vmatprep.subr.bf16.mxu0 %v4723_v46  ;;  %3453 = vmatprep.subr.bf16.mxu1 %v5317_v5 }
 0x5c5   :  { %1299 = vmatpush1.bf16.msra.mxu0 %v4344_v47  ;;  %3454 = vmatpush3.bf16.msra.mxu1 %v4368_v52 }
 0x5c6   :  { %1300 = vmatprep.subr.bf16.mxu0 %v4349_v48  ;;  %3455 = vmatprep.subr.bf16.mxu1 %v5317_v5 }
 0x5c9   :  { %1301 = vmatpush1.bf16.msra.mxu0 %v4356_v50  ;;  %3456 = vmatpush3.bf16.msra.mxu1 %v4378_v53 }
 0x5ca   :  { %1393 = vmatprep.subr.bf16.mxu0 %v4661_v29  ;;  %3461 = vmatprep.subr.bf16.mxu1 %v5317_v5 }
 0x67f   :  { %v1210_v49 = vpop.f32.mrb[36].mxu0  ;;  %v1251_v51 = vpop.f32.mrb[28].mxu1 }
 0x680   :  { %v1257_v16 = vadd.f32 %v1210_v49, %v4457_v35  ;;  %v1212_v4 = vpop.f32.mrb[37].mxu0  ;;  %v3439_v47 = vpop.f32.mrb[29].mxu1  ;;  %v1271_v32 = vadd.f32 %v4484_v59, %v1251_v51 }
 0x681   :  { %v1258_v52 = vadd.f32 %v1212_v4, %v4462_v63  ;;  %v1214_v7 = vpop.f32.mrb[38].mxu0  ;;  %v1254_v48 = vpop.f32.mrb[30].mxu1  ;;  %v3762_v4 = vld [vmem:[#allocation8] ss:$12 sps:$4 sm:$0xff]  }
 0x682   :  { %v3040_v31 = vmul.f32 -1.442695, %v1257_v16  ;;  %v1215_v6 = vpop.f32.mrb[39].mxu0  ;;  %v3440_v9 = vpop.f32.mrb[31].mxu1  ;;  %v1500_v7 = vld [vmem:[#allocation2] sm:$0xff] }
 0x683   :  { %v3041_v50 = vmul.f32 -1.442695, %v1258_v52  ;;  %v3768_v52 = vld [vmem:[#allocation8 + $0x1c] ss:$12 sps:$4 sm:$0xff]   ;;  %v3766_v48 = vld [vmem:[#allocation8 + $0x18] ss:$12 sps:$4 sm:$0xff]  }
 0x684   :  { %3884 = vpow2.f32 %v3040_v31  ;;  %v3772_v31 = vld [vmem:[#allocation8 + $0x34] ss:$12 sps:$4 sm:$0xff]   ;;  %v3773_v6 = vld [vmem:[#allocation8 + $0x38] ss:$12 sps:$4 sm:$0xff]   ;;  %v3770_v9 = vld [vmem:[#allocation8 + $0x30] ss:$12 sps:$4 sm:$0xff]  }
 0x685   :  { %3886 = vpow2.f32 %v3041_v50  ;;  %v3776_v50 = vld [vmem:[#allocation8 + $0x4c] ss:$12 sps:$4 sm:$0xff]  }
 0x68e   :  { %v3885_v10 = vpop.eup %3884 }
 0x68f   :  { %v1265_v30 = vadd.f32 1.0, %v3885_v10  ;;  %v3887_v29 = vpop.eup %3886  ;;  %v3777_v10 = vld [vmem:[#allocation8 + $0x50] ss:$12 sps:$4 sm:$0xff]  }
 0x690   :  { %v1266_v37 = vadd.f32 1.0, %v3887_v29  ;;  %v3780_v29 = vld [vmem:[#allocation8 + $0x64] ss:$12 sps:$4 sm:$0xff]  }
 0x691   :  { %3888 = vrcp.f32 %v1265_v30  ;;  %v3774_v30 = vld [vmem:[#allocation8 + $0x48] ss:$12 sps:$4 sm:$0xff]  }
 0x69b   :  { %v3889_v33 = vpop.eup %3888 }
 0x69c   :  { %v1272_v35 = vmul.f32 %v3889_v33, %v1271_v32  ;;  %v3781_v32 = vld [vmem:[#allocation8 + $0x68] ss:$12 sps:$4 sm:$0xff]   ;;  %v3778_v33 = vld [vmem:[#allocation8 + $0x60] ss:$12 sps:$4 sm:$0xff]  }
 0x69e   :  { %v1273_v34 = vadd.f32 %v1272_v35, %v4471_v11  ;;  %v4010_v11 = vld [vmem:[#allocation6 + $0x50] ss:$12 sps:$4 sm:$0xff]  }
 0x69f   :  { %v3784_v35 = vld [vmem:[#allocation8 + $0x7c] ss:$12 sps:$4 sm:$0xff]  }
 0x6a0   :  { %3890 = vtanh.f32 %v1273_v34  ;;  %v3785_v34 = vld [vmem:[#allocation8 + $0x80] ss:$12 sps:$4 sm:$0xff]  }
 0x6a1   :  { %3892 = vrcp.f32 %v1266_v37  ;;  %v3782_v37 = vld [vmem:[#allocation8 + $0x78] ss:$12 sps:$4 sm:$0xff]  }
 0x6aa   :  { %v3891_v63 = vpop.eup %3890 }
 0x6ab   :  { %v1275_v38 = vsub.f32 %v4670_v58, %v3891_v63  ;;  %v3893_v39 = vpop.eup %3892 }
 0x6ad   :  { %v1276_v40 = vmul.f32 %v3893_v39, %v1275_v38  ;;  %v3789_v38 = vld [vmem:[#allocation8 + $0x98] ss:$12 sps:$4 sm:$0xff]   ;;  %v3786_v39 = vld [vmem:[#allocation8 + $0x90] ss:$12 sps:$4 sm:$0xff]  }
 0x6af   :  { %v4740_v41 = vadd.f32 %v3891_v63, %v1276_v40  ;;  %v3788_v63 = vld [vmem:[#allocation8 + $0x94] ss:$12 sps:$4 sm:$0xff]   ;;  %v3792_v40 = vld [vmem:[#allocation8 + $0xac] ss:$12 sps:$4 sm:$0xff]  }
 0x6b1   :  { %v1278_v42 = vpack.c.bf16 %v4740_v41, %v4740_v41 }
 0x6b3   :  { %v1280_v44 = vrot.slane %v1278_v42, 4  ;;  %1319 = vmatmul.mubr.bf16.vlgmr.msra.gmra.mrb[40].mxu0 %v1278_v42  ;;  %3458 = vmatmul.mubr.bf16.vlgmr.msra.gmra.mrb[32].mxu1 %v1278_v42  ;;  %v3790_v42 = vld [vmem:[#allocation8 + $0xa8] ss:$12 sps:$4 sm:$0xff]  }
 0x6b4   :  { %1394 = vmatpush1.bf16.msra.mxu0 %v4624_v19  ;;  %3462 = vmatpush3.bf16.msra.mxu1 %v4675_v55  ;;  %v4011_v19 = vld [vmem:[#allocation6 + $0x68] ss:$12 sps:$4 sm:$0xff]  }
 0x6b5   :  { %1282 = vst [vmem:[#allocation2 + $0x10] sm:$0xf0] %v1280_v44  ;;  %1395 = vmatprep.subr.bf16.mxu0 %v4628_v18  ;;  %3463 = vmatprep.subr.bf16.mxu1 %v5317_v5  ;;  %v4012_v18 = vld [vmem:[#allocation6 + $0x80] ss:$12 sps:$4 sm:$0xff]  }
 0x6b6   :  { %1425 = vmatprep.mubr.bf16.mxu0 %v5318_v15  ;;  %3477 = vmatprep.mubr.msk.bf16.mxu1 %vm4143_vm0, %v5317_v5  ;;  %v1501_v44 = vld [vmem:[#allocation2 + $0x8] sm:$0xff] }
 0x6b8   :  { %1396 = vmatpush1.bf16.msra.mxu0 %v4683_v2  ;;  %3464 = vmatpush3.bf16.msra.mxu1 %v4686_v61 }
 0x6b9   :  { %1397 = vmatprep.subr.bf16.mxu0 %v4689_v62  ;;  %3465 = vmatprep.subr.bf16.mxu1 %v5317_v5 }
 0x6bc   :  { %1398 = vmatpush1.bf16.msra.mxu0 %v4693_v0  ;;  %3466 = vmatpush3.bf16.msra.mxu1 %v4696_v3 }
 0x6bd   :  { %1399 = vmatprep.subr.bf16.mxu0 %v4699_v24  ;;  %3467 = vmatprep.subr.bf16.mxu1 %v5317_v5 }
 0x6c0   :  { %1400 = vmatpush1.bf16.msra.mxu0 %v4703_v54  ;;  %3468 = vmatpush3.bf16.msra.mxu1 %v4010_v11  ;;  %v1502_v11 = vld [vmem:[#allocation2 + $0x10] sm:$0xff] }
 0x6c1   :  { %1401 = vmatprep.subr.bf16.mxu0 %v4707_v1  ;;  %3469 = vmatprep.subr.bf16.mxu1 %v5317_v5  ;;  %v5320_v1 = vld [vmem:[#allocation15_spill] sm:$0xff] }
 0x6c4   :  { %1402 = vmatpush1.bf16.msra.mxu0 %v4711_v12  ;;  %3470 = vmatpush3.bf16.msra.mxu1 %v4011_v19  ;;  %v4784_v19 = vld [vmem:[#allocation9 + $0x4] ss:$12 sps:$4 sm:$0xff]  }
 0x6c5   :  { %1403 = vmatprep.subr.bf16.mxu0 %v4715_v8  ;;  %3471 = vmatprep.subr.bf16.mxu1 %v5317_v5 }
 0x6c8   :  { %1404 = vmatpush1.bf16.msra.mxu0 %v4719_v28  ;;  %3472 = vmatpush3.bf16.msra.mxu1 %v4012_v18  ;;  %v4786_v18 = vld [vmem:[#allocation9] ss:$12 sps:$4 sm:$0xff]  }
 0x6c9   :  { %1405 = vmatprep.subr.bf16.mxu0 %v4723_v46  ;;  %3473 = vmatprep.subr.bf16.mxu1 %v5317_v5 }
 0x6cc   :  { %1406 = vmatpush1.bf16.msra.mxu0 %v4013_v45  ;;  %3474 = vmatpush3.bf16.msra.mxu1 %v4014_v23  ;;  %v4790_v45 = vld [vmem:[#allocation9 + $0x1c] ss:$12 sps:$4 sm:$0xff]   ;;  %v4792_v23 = vld [vmem:[#allocation9 + $0x18] ss:$12 sps:$4 sm:$0xff]  }
 0x6cd   :  { %1407 = vmatprep.subr.bf16.mxu0 %v4015_v20  ;;  %3475 = vmatprep.subr.bf16.mxu1 %v5317_v5  ;;  %v4796_v20 = vld [vmem:[#allocation9 + $0x34] ss:$12 sps:$4 sm:$0xff]  }
 0x6d0   :  { %1408 = vmatpush1.bf16.msra.mxu0 %v4016_v57  ;;  %3476 = vmatpush3.bf16.msra.mxu1 %v4378_v53  ;;  %v4798_v57 = vld [vmem:[#allocation9 + $0x30] ss:$12 sps:$4 sm:$0xff]  }
 0x6d1   :  { %1681 = vmatprep.subr.bf16.mxu0 %v3764_v26  ;;  %3481 = vmatprep.subr.bf16.mxu1 %v3765_v27  ;;  %v4802_v26 = vld [vmem:[#allocation9 + $0x4c] ss:$12 sps:$4 sm:$0xff]  }
 0x786   :  { %v1320_v22 = vpop.f32.mrb[40].mxu0  ;;  %v1361_v14 = vpop.f32.mrb[32].mxu1 }
 0x787   :  { %v1367_v13 = vadd.f32 %v1320_v22, %v4473_v17  ;;  %v1322_v25 = vpop.f32.mrb[41].mxu0  ;;  %v3459_v21 = vpop.f32.mrb[33].mxu1  ;;  %v1381_v24 = vadd.f32 %v4484_v59, %v1361_v14  ;;  %v3769_v59 = vld [vmem:[#allocation8 + $0x20] ss:$12 sps:$4 sm:$0xff]   ;;  %v4808_v22 = vld [vmem:[#allocation9 + $0x64] ss:$12 sps:$4 sm:$0xff]  }
 0x788   :  { %v1368_v60 = vadd.f32 %v1322_v25, %v5319_v56  ;;  %v1324_v58 = vpop.f32.mrb[42].mxu0  ;;  %v1364_v36 = vpop.f32.mrb[34].mxu1  ;;  %v4810_v14 = vld [vmem:[#allocation9 + $0x60] ss:$12 sps:$4 sm:$0xff]   ;;  %v4816_v25 = vld [vmem:[#allocation9 + $0x78] ss:$12 sps:$4 sm:$0xff]  }
 0x789   :  { %v3042_v55 = vmul.f32 -1.442695, %v1367_v13  ;;  %v1325_v2 = vpop.f32.mrb[43].mxu0  ;;  %v3460_v61 = vpop.f32.mrb[35].mxu1  ;;  %v4812_v13 = vld [vmem:[#allocation9 + $0x7c] ss:$12 sps:$4 sm:$0xff]  }
 0x78a   :  { %v3043_v62 = vmul.f32 -1.442695, %v1368_v60  ;;  %v4820_v21 = vld [vmem:[#allocation9 + $0x94] ss:$12 sps:$4 sm:$0xff]   ;;  %v4824_v60 = vld [vmem:[#allocation9 + $0x90] ss:$12 sps:$4 sm:$0xff]  }
 0x78b   :  { %3894 = vpow2.f32 %v3042_v55  ;;  %v4822_v56 = vld [vmem:[#allocation9 + $0x8] ss:$12 sps:$4 sm:$0xff]   ;;  %v4826_v58 = vld [vmem:[#allocation9 + $0xac] ss:$12 sps:$4 sm:$0xff]   ;;  %v4844_v61 = vld [vmem:[#allocation9 + $0x50] ss:$12 sps:$4 sm:$0xff]  }
 0x78c   :  { %3896 = vpow2.f32 %v3043_v62  ;;  %v4830_v36 = vld [vmem:[#allocation9 + $0x20] ss:$12 sps:$4 sm:$0xff]   ;;  %v4834_v55 = vld [vmem:[#allocation9 + $0xa8] ss:$12 sps:$4 sm:$0xff]   ;;  %v4840_v2 = vld [vmem:[#allocation9 + $0x38] ss:$12 sps:$4 sm:$0xff]  }
 0x78d   :  { %v4848_v62 = vld [vmem:[#allocation9 + $0x68] ss:$12 sps:$4 sm:$0xff]  }
 0x795   :  { %v3895_v53 = vpop.eup %3894 }
 0x796   :  { %v1375_v0 = vadd.f32 1.0, %v3895_v53  ;;  %v3897_v3 = vpop.eup %3896  ;;  %v4852_v53 = vld [vmem:[#allocation9 + $0x80] ss:$12 sps:$4 sm:$0xff]  }
 0x797   :  { %v1376_v8 = vadd.f32 1.0, %v3897_v3  ;;  %v4860_v3 = vld [vmem:[#allocation9 + $0xb0] ss:$12 sps:$4 sm:$0xff]  }
 0x798   :  { %3898 = vrcp.f32 %v1375_v0  ;;  %v4856_v0 = vld [vmem:[#allocation9 + $0x98] ss:$12 sps:$4 sm:$0xff]  }
 0x7a2   :  { %v3899_v54 = vpop.eup %3898 }
 0x7a3   :  { %v1382_v17 = vmul.f32 %v3899_v54, %v1381_v24 }
 0x7a5   :  { %v1383_v12 = vadd.f32 %v1382_v17, %v5320_v1  ;;  %v5321_v17 = vld [vmem:[#allocation18_spill] sm:$0xff] }
 0x7a7   :  { %3900 = vtanh.f32 %v1383_v12 }
 0x7a8   :  { %3902 = vrcp.f32 %v1376_v8 }
 0x7b1   :  { %v3901_v28 = vpop.eup %3900 }
 0x7b2   :  { %v1385_v46 = vsub.f32 %v4740_v41, %v3901_v28  ;;  %v3903_v49 = vpop.eup %3902  ;;  %v3793_v41 = vld [vmem:[#allocation8 + $0xb0] ss:$12 sps:$4 sm:$0xff]  }
 0x7b4   :  { %v1386_v51 = vmul.f32 %v3903_v49, %v1385_v46 }
 0x7b6   :  { %v4775_v16 = vadd.f32 %v3901_v28, %v1386_v51 }
 0x7b8   :  { %v1388_v47 = vpack.c.bf16 %v4775_v16, %v4775_v16 }
 0x7ba   :  { %1389 = vst [vmem:[#allocation2 + $0x18] sm:$0xf] %v1388_v47  ;;  %1426 = vmatmul.mubr.bf16.vlgmr.msra.gmra.mrb[44].mxu0 %v1388_v47  ;;  %3478 = vmatmul.mubr.bf16.vlgmr.msra.gmra.mrb[36].mxu1 %v1388_v47 }
 0x7bb   :  { %1682 = vmatpush1.bf16.msra.mxu0 %v3762_v4  ;;  %3482 = vmatpush3.bf16.msra.mxu1 %v3765_v27  ;;  %v4804_v27 = vld [vmem:[#allocation9 + $0x48] ss:$12 sps:$4 sm:$0xff]  }
 0x7bc   :  { %3497 = vmatprep.mubr.bf16.mxu1 %v1500_v7  ;;  %1683 = vmatprep.subr.bf16.mxu0 %v3768_v52 }
 0x7bd   :  { %3483 = vmatprep.subr.bf16.mxu1 %v3769_v59  ;;  %1713 = vmatprep.mubr.bf16.mxu0 %v5318_v15 }
 0x7bf   :  { %1684 = vmatpush1.bf16.msra.mxu0 %v3766_v48  ;;  %3484 = vmatpush3.bf16.msra.mxu1 %v3769_v59 }
 0x7c0   :  { %1685 = vmatprep.subr.bf16.mxu0 %v3772_v31  ;;  %3485 = vmatprep.subr.bf16.mxu1 %v3773_v6  ;;  %v4017_v31 = vld [vmem:[%s5295_s4] ss:$0 sm:$0xff] }
 0x7c3   :  { %1686 = vmatpush1.bf16.msra.mxu0 %v3770_v9  ;;  %3486 = vmatpush3.bf16.msra.mxu1 %v3773_v6 }
 0x7c4   :  { %1687 = vmatprep.subr.bf16.mxu0 %v3776_v50  ;;  %3487 = vmatprep.subr.bf16.mxu1 %v3777_v10 }
 0x7c7   :  { %1688 = vmatpush1.bf16.msra.mxu0 %v3774_v30  ;;  %3488 = vmatpush3.bf16.msra.mxu1 %v3777_v10 }
 0x7c8   :  { %1689 = vmatprep.subr.bf16.mxu0 %v3780_v29  ;;  %3489 = vmatprep.subr.bf16.mxu1 %v3781_v32 }
 0x7cb   :  { %1690 = vmatpush1.bf16.msra.mxu0 %v3778_v33  ;;  %3490 = vmatpush3.bf16.msra.mxu1 %v3781_v32 }
 0x7cc   :  { %1691 = vmatprep.subr.bf16.mxu0 %v3784_v35  ;;  %3491 = vmatprep.subr.bf16.mxu1 %v3785_v34 }
 0x7cf   :  { %1692 = vmatpush1.bf16.msra.mxu0 %v3782_v37  ;;  %3492 = vmatpush3.bf16.msra.mxu1 %v3785_v34 }
 0x7d0   :  { %1693 = vmatprep.subr.bf16.mxu0 %v3788_v63  ;;  %3493 = vmatprep.subr.bf16.mxu1 %v3789_v38 }
 0x7d3   :  { %1694 = vmatpush1.bf16.msra.mxu0 %v3786_v39  ;;  %3494 = vmatpush3.bf16.msra.mxu1 %v3789_v38 }
 0x7d4   :  { %1695 = vmatprep.subr.bf16.mxu0 %v3792_v40  ;;  %3495 = vmatprep.subr.bf16.mxu1 %v3793_v41 }
 0x7d7   :  { %1696 = vmatpush1.bf16.msra.mxu0 %v3790_v42  ;;  %3496 = vmatpush3.bf16.msra.mxu1 %v3793_v41 }
 0x7d8   :  { %3505 = vmatprep.subr.bf16.mxu1 %v5317_v5  ;;  %2013 = vmatprep.subr.bf16.mxu0 %v4784_v19 }
 0x7da   :  { %1714 = vmatmul.mubr.bf16.vlgmr.msra.gmra.mrb[48].mxu0 %v1500_v7  ;;  %3498 = vmatmul.mubr.bf16.vlgmr.msra.gmra.mrb[40].mxu1 %v1501_v44 }
 0x7db   :  { %3501 = vmatprep.mubr.bf16.mxu1 %v1502_v11  ;;  %1723 = vmatprep.mubr.bf16.mxu0 %v5318_v15 }
 0x7dc   :  { %2014 = vmatpush1.bf16.msra.mxu0 %v4786_v18  ;;  %3506 = vmatpush3.bf16.msra.mxu1 %v4822_v56 }
 0x7dd   :  { %2015 = vmatprep.subr.bf16.mxu0 %v4790_v45  ;;  %3507 = vmatprep.subr.bf16.mxu1 %v5317_v5 }
 0x7e0   :  { %2016 = vmatpush1.bf16.msra.mxu0 %v4792_v23  ;;  %3508 = vmatpush3.bf16.msra.mxu1 %v4830_v36 }
 0x7e1   :  { %2017 = vmatprep.subr.bf16.mxu0 %v4796_v20  ;;  %3509 = vmatprep.subr.bf16.mxu1 %v5317_v5 }
 0x7e2   :  { %1724 = vmatmul.mubr.bf16.gmra.mrb[52].mxu0 %v1501_v44 }
 0x7e3   :  { %1733 = vmatprep.mubr.bf16.mxu0 %v5318_v15 }
 0x7e4   :  { %2018 = vmatpush1.bf16.msra.mxu0 %v4798_v57  ;;  %3510 = vmatpush3.bf16.msra.mxu1 %v4840_v2 }
 0x7e5   :  { %2019 = vmatprep.subr.bf16.mxu0 %v4802_v26  ;;  %3511 = vmatprep.subr.bf16.mxu1 %v5317_v5 }
 0x7e8   :  { %2020 = vmatpush1.bf16.msra.mxu0 %v4804_v27  ;;  %3512 = vmatpush3.bf16.msra.mxu1 %v4844_v61 }
 0x7e9   :  { %2021 = vmatprep.subr.bf16.mxu0 %v4808_v22  ;;  %3513 = vmatprep.subr.bf16.mxu1 %v5317_v5 }
 0x7ea   :  { %1734 = vmatmul.mubr.bf16.gmra.mrb[56].mxu0 %v1502_v11 }
 0x7eb   :  { %1743 = vmatprep.mubr.bf16.mxu0 %v5318_v15 }
 0x7ec   :  { %2022 = vmatpush1.bf16.msra.mxu0 %v4810_v14  ;;  %3514 = vmatpush3.bf16.msra.mxu1 %v4848_v62 }
 0x7ed   :  { %2023 = vmatprep.subr.bf16.mxu0 %v4812_v13  ;;  %3515 = vmatprep.subr.bf16.mxu1 %v5317_v5 }
 0x7f0   :  { %2024 = vmatpush1.bf16.msra.mxu0 %v4816_v25  ;;  %3516 = vmatpush3.bf16.msra.mxu1 %v4852_v53 }
 0x7f1   :  { %2025 = vmatprep.subr.bf16.mxu0 %v4820_v21  ;;  %3517 = vmatprep.subr.bf16.mxu1 %v5317_v5 }
 0x7f4   :  { %2026 = vmatpush1.bf16.msra.mxu0 %v4824_v60  ;;  %3518 = vmatpush3.bf16.msra.mxu1 %v4856_v0 }
 0x7f5   :  { %2027 = vmatprep.subr.bf16.mxu0 %v4826_v58  ;;  %3519 = vmatprep.subr.bf16.mxu1 %v5317_v5 }
 0x7f8   :  { %2028 = vmatpush1.bf16.msra.mxu0 %v4834_v55  ;;  %3520 = vmatpush3.bf16.msra.mxu1 %v4860_v3 }
 0x7f9   :  { %2119 = vmatprep.subr.bf16.mxu0 %v4784_v19  ;;  %3525 = vmatprep.subr.bf16.mxu1 %v5317_v5 }
 0x88d   :  { %v1427_v24 = vpop.f32.mrb[44].mxu0  ;;  %v1468_v54 = vpop.f32.mrb[36].mxu1 }
 0x88e   :  { %v1474_v1 = vadd.f32 %v1427_v24, %v5321_v17  ;;  %v1429_v12 = vpop.f32.mrb[45].mxu0  ;;  %v3479_v8 = vpop.f32.mrb[37].mxu1  ;;  %v1488_v6 = vadd.f32 %v4017_v31, %v1468_v54  ;;  %v5328_v31 = vld [vmem:[#allocation14_spill] sm:$0xff] }
 0x88f   :  { %v1475_v28 = vadd.f32 %v1429_v12, %v4479_v43  ;;  %v1431_v46 = vpop.f32.mrb[46].mxu0  ;;  %v1471_v49 = vpop.f32.mrb[38].mxu1  ;;  %v5322_v43 = vld [vmem:[#allocation16_spill] sm:$0xff] }
 0x890   :  { %v3044_v51 = vmul.f32 -1.442695, %v1474_v1  ;;  %v1432_v4 = vpop.f32.mrb[47].mxu0  ;;  %v3480_v47 = vpop.f32.mrb[39].mxu1 }
 0x891   :  { %v3045_v52 = vmul.f32 -1.442695, %v1475_v28 }
 0x892   :  { %3904 = vpow2.f32 %v3044_v51 }
 0x893   :  { %3906 = vpow2.f32 %v3045_v52 }
 0x89c   :  { %v3905_v59 = vpop.eup %3904 }
 0x89d   :  { %v1482_v7 = vadd.f32 1.0, %v3905_v59  ;;  %v3907_v48 = vpop.eup %3906 }
 0x89e   :  { %v1483_v30 = vadd.f32 1.0, %v3907_v48 }
 0x89f   :  { %3908 = vrcp.f32 %v1482_v7 }
 0x8a9   :  { %v3909_v9 = vpop.eup %3908 }
 0x8aa   :  { %v1489_v50 = vmul.f32 %v3909_v9, %v1488_v6  ;;  %v5329_v6 = vsub.s32 0, %v5328_v31 }
 0x8ac   :  { %v1490_v10 = vadd.f32 %v1489_v50, %v5322_v43 }
 0x8ad   :  { %v4871_v29 = vpop.f32.mrb[48].mxu0  ;;  %v4873_v32 = vpop.f32.mrb[40].mxu1 }
 0x8ae   :  { %3910 = vtanh.f32 %v1490_v10  ;;  %v4875_v33 = vpop.f32.mrb[49].mxu0  ;;  %v4877_v35 = vpop.f32.mrb[41].mxu1  ;;  %v5331_v10 = vsub.s32 1, %v5328_v31 }
 0x8af   :  { %v4879_v34 = vpop.f32.mrb[50].mxu0  ;;  %v4881_v37 = vpop.f32.mrb[42].mxu1  ;;  %3912 = vrcp.f32 %v1483_v30 }
 0x8b0   :  { %v4883_v63 = vpop.f32.mrb[51].mxu0  ;;  %v4885_v38 = vpop.f32.mrb[43].mxu1 }
 0x8b5   :  { %v4887_v39 = vpop.f32.mrb[52].mxu0 }
 0x8b6   :  { %v4889_v40 = vpop.f32.mrb[53].mxu0 }
 0x8b7   :  { %v4891_v41 = vpop.f32.mrb[54].mxu0 }
 0x8b8   :  { %v3911_v42 = vpop.eup %3910  ;;  %v4893_v44 = vpop.f32.mrb[55].mxu0 }
 0x8b9   :  { %v1492_v11 = vsub.f32 %v4775_v16, %v3911_v42  ;;  %v3913_v24 = vpop.eup %3912  ;;  %v1536_v16 = vld [vmem:[%s5298_s7] sm:$0x7] }
 0x8ba   :  { %v4961_v9 = vrot.slane %v1536_v16, %v5329_v6  ;;  %v4969_v30 = vrot.slane %v1536_v16, %v5331_v10 }
 0x8bb   :  { %v1493_v54 = vmul.f32 %v3913_v24, %v1492_v11 }
 0x8bc   :  { %v1718_v11 = vadd.f32 %v4875_v33, %v4969_v30  ;;  %v5332_v33 = vsub.s32 2, %v5328_v31  ;;  %v1722_v31 = vadd.f32 %v4883_v63, %v4969_v30 }
 0x8bd   :  { %v1494_v17 = vadd.f32 %v3911_v42, %v1493_v54  ;;  %v4896_v1 = vpop.f32.mrb[56].mxu0  ;;  %v1716_v42 = vadd.f32 %v4871_v29, %v4961_v9  ;;  %v4978_v29 = vld [vmem:[%s5299_s8] ss:$0 sm:$0xff] }
 0x8be   :  { %v4898_v12 = vpop.f32.mrb[57].mxu0 }
 0x8bf   :  { %v1495_v8 = vpack.c.bf16 %v1494_v17, %v1494_v17  ;;  %v4900_v28 = vpop.f32.mrb[58].mxu0 }
 0x8c0   :  { %v4902_v46 = vpop.f32.mrb[59].mxu0 }
 0x8c1   :  { %v1497_v49 = vrot.slane %v1495_v8, 4 }
 0x8c3   :  { %1499 = vst [vmem:[#allocation2 + $0x18] sm:$0xf0] %v1497_v49 }
 0x8ca   :  { %v1503_v51 = vld [vmem:[#allocation2 + $0x18] sm:$0xff] }
 0x8cb   :  { %1744 = vmatmul.mubr.bf16.gmra.mrb[60].mxu0 %v1503_v51  ;;  %3502 = vmatmul.mubr.bf16.gmra.mrb[44].mxu1 %v1503_v51 }
 0x8cc   :  { %2045 = vmatprep.mubr.bf16.mxu0 %v5318_v15  ;;  %3521 = vmatprep.mubr.msk.bf16.mxu1 %vm4143_vm0, %v5317_v5 }
 0x8d3   :  { %2046 = vmatmul.mubr.bf16.vlgmr.msra.gmra.mrb[64].mxu0 %v5318_v15  ;;  %3522 = vmatmul.mubr.bf16.vlgmr.msra.gmra.mrb[48].mxu1 %v5318_v15 }
 0x8d4   :  { %2120 = vmatpush1.bf16.msra.mxu0 %v4786_v18  ;;  %3526 = vmatpush3.bf16.msra.mxu1 %v4822_v56 }
 0x8d5   :  { %2121 = vmatprep.subr.bf16.mxu0 %v4790_v45  ;;  %3527 = vmatprep.subr.bf16.mxu1 %v5317_v5 }
 0x8d6   :  { %2151 = vmatprep.mubr.bf16.mxu0 %v5318_v15  ;;  %3541 = vmatprep.mubr.msk.bf16.mxu1 %vm4143_vm0, %v5317_v5 }
 0x8d8   :  { %2122 = vmatpush1.bf16.msra.mxu0 %v4792_v23  ;;  %3528 = vmatpush3.bf16.msra.mxu1 %v4830_v36 }
 0x8d9   :  { %2123 = vmatprep.subr.bf16.mxu0 %v4796_v20  ;;  %3529 = vmatprep.subr.bf16.mxu1 %v5317_v5 }
 0x8dc   :  { %2124 = vmatpush1.bf16.msra.mxu0 %v4798_v57  ;;  %3530 = vmatpush3.bf16.msra.mxu1 %v4840_v2 }
 0x8dd   :  { %2125 = vmatprep.subr.bf16.mxu0 %v4802_v26  ;;  %3531 = vmatprep.subr.bf16.mxu1 %v5317_v5 }
 0x8e0   :  { %2126 = vmatpush1.bf16.msra.mxu0 %v4804_v27  ;;  %3532 = vmatpush3.bf16.msra.mxu1 %v4844_v61 }
 0x8e1   :  { %2127 = vmatprep.subr.bf16.mxu0 %v4808_v22  ;;  %3533 = vmatprep.subr.bf16.mxu1 %v5317_v5 }
 0x8e4   :  { %2128 = vmatpush1.bf16.msra.mxu0 %v4810_v14  ;;  %3534 = vmatpush3.bf16.msra.mxu1 %v4848_v62 }
 0x8e5   :  { %2129 = vmatprep.subr.bf16.mxu0 %v4812_v13  ;;  %3535 = vmatprep.subr.bf16.mxu1 %v5317_v5 }
 0x8e8   :  { %2130 = vmatpush1.bf16.msra.mxu0 %v4816_v25  ;;  %3536 = vmatpush3.bf16.msra.mxu1 %v4852_v53 }
 0x8e9   :  { %2131 = vmatprep.subr.bf16.mxu0 %v4820_v21  ;;  %3537 = vmatprep.subr.bf16.mxu1 %v5317_v5 }
 0x8ec   :  { %2132 = vmatpush1.bf16.msra.mxu0 %v4824_v60  ;;  %3538 = vmatpush3.bf16.msra.mxu1 %v4856_v0 }
 0x8ed   :  { %2133 = vmatprep.subr.bf16.mxu0 %v4826_v58  ;;  %3539 = vmatprep.subr.bf16.mxu1 %v5317_v5 }
 0x8f0   :  { %2134 = vmatpush1.bf16.msra.mxu0 %v4834_v55  ;;  %3540 = vmatpush3.bf16.msra.mxu1 %v4860_v3 }
 0x8f1   :  { %2225 = vmatprep.subr.bf16.mxu0 %v4784_v19  ;;  %3545 = vmatprep.subr.bf16.mxu1 %v5317_v5 }
 0x99e   :  { %v4947_v4 = vpop.f32.mrb[60].mxu0  ;;  %v4949_v47 = vpop.f32.mrb[44].mxu1 }
 0x99f   :  { %5323 = vst [vmem:[#allocation17_spill] sm:$0xff] %v4947_v4  ;;  %5324 = vst [vmem:[#allocation15_spill] sm:$0xff] %v4949_v47  ;;  %v4951_v52 = vpop.f32.mrb[61].mxu0  ;;  %v4953_v59 = vpop.f32.mrb[45].mxu1 }
 0x9a0   :  { %5325 = vst [vmem:[#allocation18_spill] sm:$0xff] %v4951_v52  ;;  %v4955_v7 = vpop.f32.mrb[62].mxu0  ;;  %v4957_v48 = vpop.f32.mrb[46].mxu1 }
 0x9a1   :  { %5326 = vst [vmem:[#allocation16_spill] sm:$0xff] %v4955_v7  ;;  %5327 = vst [vmem:[#allocation19_spill] sm:$0xff] %v4957_v48  ;;  %v4963_v50 = vpop.f32.mrb[63].mxu0  ;;  %v4965_v43 = vpop.f32.mrb[47].mxu1 }
 0x9a2   :  { %5330 = vst [vmem:[#allocation14_spill] sm:$0xff] %v4963_v50 }
 0x9a6   :  { %v2047_v24 = vpop.f32.mrb[64].mxu0  ;;  %v2088_v54 = vpop.f32.mrb[48].mxu1 }
 0x9a7   :  { %v2094_v17 = vadd.f32 %v2047_v24, %v1716_v42  ;;  %v2049_v8 = vpop.f32.mrb[65].mxu0  ;;  %v3523_v49 = vpop.f32.mrb[49].mxu1  ;;  %v4982_v42 = vrot.slane %v1536_v16, %v5332_v33 }
 0x9a8   :  { %v2095_v51 = vadd.f32 %v2049_v8, %v1718_v11  ;;  %v2051_v6 = vpop.f32.mrb[66].mxu0  ;;  %v2091_v48 = vpop.f32.mrb[50].mxu1 }
 0x9a9   :  { %v3095_v50 = vmul.f32 -1.442695, %v2094_v17  ;;  %v2052_v7 = vpop.f32.mrb[67].mxu0  ;;  %v3524_v47 = vpop.f32.mrb[51].mxu1  ;;  %v2108_v48 = vadd.f32 %v4978_v29, %v2088_v54 }
 0x9aa   :  { %v3096_v10 = vmul.f32 -1.442695, %v2095_v51  ;;  %v1789_v47 = vadd.f32 %v4877_v35, %v4982_v42  ;;  %v1720_v35 = vadd.f32 %v4879_v34, %v4961_v9 }
 0x9ab   :  { %3914 = vpow2.f32 %v3095_v50 }
 0x9ac   :  { %3916 = vpow2.f32 %v3096_v10 }
 0x9b5   :  { %v3915_v52 = vpop.eup %3914 }
 0x9b6   :  { %v2102_v4 = vadd.f32 1.0, %v3915_v52  ;;  %v3917_v11 = vpop.eup %3916 }
 0x9b7   :  { %v2103_v52 = vadd.f32 1.0, %v3917_v11 }
 0x9b8   :  { %3918 = vrcp.f32 %v2102_v4 }
 0x9c2   :  { %v3919_v7 = vpop.eup %3918 }
 0x9c3   :  { %v2109_v50 = vmul.f32 %v3919_v7, %v2108_v48 }
 0x9c5   :  { %v2110_v24 = vadd.f32 %v2109_v50, %v1789_v47 }
 0x9c7   :  { %3920 = vtanh.f32 %v2110_v24 }
 0x9c8   :  { %3922 = vrcp.f32 %v2103_v52 }
 0x9d1   :  { %v3921_v4 = vpop.eup %3920 }
 0x9d2   :  { %v2112_v17 = vsub.f32 0.0, %v3921_v4  ;;  %v3923_v8 = vpop.eup %3922 }
 0x9d4   :  { %v2113_v49 = vmul.f32 %v3923_v8, %v2112_v17 }
 0x9d6   :  { %v4987_v51 = vadd.f32 %v3921_v4, %v2113_v49 }
 0x9d8   :  { %v2118_v16 = vpack.c.bf16 %v4987_v51, %v4987_v51 }
 0x9da   :  { %2152 = vmatmul.mubr.bf16.vlgmr.msra.gmra.mrb[68].mxu0 %v2118_v16  ;;  %3542 = vmatmul.mubr.bf16.vlgmr.msra.gmra.mrb[52].mxu1 %v2118_v16  ;;  %v1792_v16 = vadd.f32 %v4885_v38, %v4982_v42  ;;  %v1726_v38 = vadd.f32 %v4887_v39, %v4961_v9 }
 0x9db   :  { %2226 = vmatpush1.bf16.msra.mxu0 %v4786_v18  ;;  %3546 = vmatpush3.bf16.msra.mxu1 %v4822_v56 }
 0x9dc   :  { %2227 = vmatprep.subr.bf16.mxu0 %v4790_v45  ;;  %3547 = vmatprep.subr.bf16.mxu1 %v5317_v5 }
 0x9dd   :  { %2257 = vmatprep.mubr.bf16.mxu0 %v5318_v15  ;;  %3561 = vmatprep.mubr.msk.bf16.mxu1 %vm4143_vm0, %v5317_v5 }
 0x9df   :  { %2228 = vmatpush1.bf16.msra.mxu0 %v4792_v23  ;;  %3548 = vmatpush3.bf16.msra.mxu1 %v4830_v36 }
 0x9e0   :  { %2229 = vmatprep.subr.bf16.mxu0 %v4796_v20  ;;  %3549 = vmatprep.subr.bf16.mxu1 %v5317_v5 }
 0x9e3   :  { %2230 = vmatpush1.bf16.msra.mxu0 %v4798_v57  ;;  %3550 = vmatpush3.bf16.msra.mxu1 %v4840_v2 }
 0x9e4   :  { %2231 = vmatprep.subr.bf16.mxu0 %v4802_v26  ;;  %3551 = vmatprep.subr.bf16.mxu1 %v5317_v5 }
 0x9e7   :  { %2232 = vmatpush1.bf16.msra.mxu0 %v4804_v27  ;;  %3552 = vmatpush3.bf16.msra.mxu1 %v4844_v61 }
 0x9e8   :  { %2233 = vmatprep.subr.bf16.mxu0 %v4808_v22  ;;  %3553 = vmatprep.subr.bf16.mxu1 %v5317_v5 }
 0x9eb   :  { %2234 = vmatpush1.bf16.msra.mxu0 %v4810_v14  ;;  %3554 = vmatpush3.bf16.msra.mxu1 %v4848_v62 }
 0x9ec   :  { %2235 = vmatprep.subr.bf16.mxu0 %v4812_v13  ;;  %3555 = vmatprep.subr.bf16.mxu1 %v5317_v5 }
 0x9ef   :  { %2236 = vmatpush1.bf16.msra.mxu0 %v4816_v25  ;;  %3556 = vmatpush3.bf16.msra.mxu1 %v4852_v53 }
 0x9f0   :  { %2237 = vmatprep.subr.bf16.mxu0 %v4820_v21  ;;  %3557 = vmatprep.subr.bf16.mxu1 %v5317_v5 }
 0x9f3   :  { %2238 = vmatpush1.bf16.msra.mxu0 %v4824_v60  ;;  %3558 = vmatpush3.bf16.msra.mxu1 %v4856_v0 }
 0x9f4   :  { %2239 = vmatprep.subr.bf16.mxu0 %v4826_v58  ;;  %3559 = vmatprep.subr.bf16.mxu1 %v5317_v5 }
 0x9f7   :  { %2240 = vmatpush1.bf16.msra.mxu0 %v4834_v55  ;;  %3560 = vmatpush3.bf16.msra.mxu1 %v4860_v3 }
 0x9f8   :  { %2331 = vmatprep.subr.bf16.mxu0 %v4784_v19  ;;  %3565 = vmatprep.subr.bf16.mxu1 %v5317_v5 }
 0xaad   :  { %v2153_v54 = vpop.f32.mrb[68].mxu0  ;;  %v2194_v6 = vpop.f32.mrb[52].mxu1 }
 0xaae   :  { %v2200_v10 = vadd.f32 %v2153_v54, %v1720_v35  ;;  %v2155_v33 = vpop.f32.mrb[69].mxu0  ;;  %v3543_v48 = vpop.f32.mrb[53].mxu1  ;;  %v2214_v63 = vadd.f32 %v4978_v29, %v2194_v6 }
 0xaaf   :  { %v2201_v11 = vadd.f32 %v2155_v33, %v1722_v31  ;;  %v2157_v7 = vpop.f32.mrb[70].mxu0  ;;  %v2197_v47 = vpop.f32.mrb[54].mxu1 }
 0xab0   :  { %v3097_v50 = vmul.f32 -1.442695, %v2200_v10  ;;  %v2158_v52 = vpop.f32.mrb[71].mxu0  ;;  %v3544_v24 = vpop.f32.mrb[55].mxu1 }
 0xab1   :  { %v3098_v4 = vmul.f32 -1.442695, %v2201_v11 }
 0xab2   :  { %3924 = vpow2.f32 %v3097_v50 }
 0xab3   :  { %3926 = vpow2.f32 %v3098_v4 }
 0xabc   :  { %v3925_v17 = vpop.eup %3924 }
 0xabd   :  { %v2208_v8 = vadd.f32 1.0, %v3925_v17  ;;  %v3927_v34 = vpop.eup %3926 }
 0xabe   :  { %v2209_v54 = vadd.f32 1.0, %v3927_v34 }
 0xabf   :  { %3928 = vrcp.f32 %v2208_v8 }
 0xac9   :  { %v3929_v49 = vpop.eup %3928 }
 0xaca   :  { %v2215_v35 = vmul.f32 %v3929_v49, %v2214_v63 }
 0xacc   :  { %v2216_v31 = vadd.f32 %v2215_v35, %v1792_v16 }
 0xace   :  { %3930 = vtanh.f32 %v2216_v31 }
 0xacf   :  { %3932 = vrcp.f32 %v2209_v54 }
 0xad8   :  { %v3931_v10 = vpop.eup %3930 }
 0xad9   :  { %v2218_v33 = vsub.f32 %v4987_v51, %v3931_v10  ;;  %v3933_v48 = vpop.eup %3932  ;;  %v1728_v51 = vadd.f32 %v4889_v40, %v4969_v30 }
 0xadb   :  { %v2219_v11 = vmul.f32 %v3933_v48, %v2218_v33  ;;  %v1797_v33 = vadd.f32 %v4873_v32, %v4982_v42  ;;  %v1730_v32 = vadd.f32 %v4891_v41, %v4961_v9 }
 0xadd   :  { %v5034_v7 = vadd.f32 %v3931_v10, %v2219_v11 }
 0xadf   :  { %v2224_v47 = vpack.c.bf16 %v5034_v7, %v5034_v7 }
 0xae1   :  { %2258 = vmatmul.mubr.bf16.vlgmr.msra.gmra.mrb[72].mxu0 %v2224_v47  ;;  %3562 = vmatmul.mubr.bf16.vlgmr.msra.gmra.mrb[56].mxu1 %v2224_v47 }
 0xae2   :  { %2332 = vmatpush1.bf16.msra.mxu0 %v4786_v18  ;;  %3566 = vmatpush3.bf16.msra.mxu1 %v4822_v56 }
 0xae3   :  { %2333 = vmatprep.subr.bf16.mxu0 %v4790_v45  ;;  %3567 = vmatprep.subr.bf16.mxu1 %v5317_v5 }
 0xae4   :  { %2363 = vmatprep.mubr.bf16.mxu0 %v5318_v15  ;;  %3581 = vmatprep.mubr.msk.bf16.mxu1 %vm4143_vm0, %v5317_v5 }
 0xae6   :  { %2334 = vmatpush1.bf16.msra.mxu0 %v4792_v23  ;;  %3568 = vmatpush3.bf16.msra.mxu1 %v4830_v36 }
 0xae7   :  { %2335 = vmatprep.subr.bf16.mxu0 %v4796_v20  ;;  %3569 = vmatprep.subr.bf16.mxu1 %v5317_v5 }
 0xaea   :  { %2336 = vmatpush1.bf16.msra.mxu0 %v4798_v57  ;;  %3570 = vmatpush3.bf16.msra.mxu1 %v4840_v2 }
 0xaeb   :  { %2337 = vmatprep.subr.bf16.mxu0 %v4802_v26  ;;  %3571 = vmatprep.subr.bf16.mxu1 %v5317_v5 }
 0xaee   :  { %2338 = vmatpush1.bf16.msra.mxu0 %v4804_v27  ;;  %3572 = vmatpush3.bf16.msra.mxu1 %v4844_v61 }
 0xaef   :  { %2339 = vmatprep.subr.bf16.mxu0 %v4808_v22  ;;  %3573 = vmatprep.subr.bf16.mxu1 %v5317_v5 }
 0xaf2   :  { %2340 = vmatpush1.bf16.msra.mxu0 %v4810_v14  ;;  %3574 = vmatpush3.bf16.msra.mxu1 %v4848_v62 }
 0xaf3   :  { %2341 = vmatprep.subr.bf16.mxu0 %v4812_v13  ;;  %3575 = vmatprep.subr.bf16.mxu1 %v5317_v5 }
 0xaf6   :  { %2342 = vmatpush1.bf16.msra.mxu0 %v4816_v25  ;;  %3576 = vmatpush3.bf16.msra.mxu1 %v4852_v53 }
 0xaf7   :  { %2343 = vmatprep.subr.bf16.mxu0 %v4820_v21  ;;  %3577 = vmatprep.subr.bf16.mxu1 %v5317_v5 }
 0xafa   :  { %2344 = vmatpush1.bf16.msra.mxu0 %v4824_v60  ;;  %3578 = vmatpush3.bf16.msra.mxu1 %v4856_v0 }
 0xafb   :  { %2345 = vmatprep.subr.bf16.mxu0 %v4826_v58  ;;  %3579 = vmatprep.subr.bf16.mxu1 %v5317_v5 }
 0xafe   :  { %2346 = vmatpush1.bf16.msra.mxu0 %v4834_v55  ;;  %3580 = vmatpush3.bf16.msra.mxu1 %v4860_v3 }
 0xaff   :  { %2437 = vmatprep.subr.bf16.mxu0 %v4784_v19  ;;  %3585 = vmatprep.subr.bf16.mxu1 %v5317_v5 }
 0xbb4   :  { %v2259_v6 = vpop.f32.mrb[72].mxu0  ;;  %v2300_v50 = vpop.f32.mrb[56].mxu1 }
 0xbb5   :  { %v2306_v52 = vadd.f32 %v2259_v6, %v1726_v38  ;;  %v2261_v24 = vpop.f32.mrb[73].mxu0  ;;  %v3563_v4 = vpop.f32.mrb[57].mxu1  ;;  %v2320_v40 = vadd.f32 %v4978_v29, %v2300_v50 }
 0xbb6   :  { %v2307_v17 = vadd.f32 %v2261_v24, %v1728_v51  ;;  %v2263_v8 = vpop.f32.mrb[74].mxu0  ;;  %v2303_v34 = vpop.f32.mrb[58].mxu1 }
 0xbb7   :  { %v3099_v63 = vmul.f32 -1.442695, %v2306_v52  ;;  %v2264_v49 = vpop.f32.mrb[75].mxu0  ;;  %v3564_v16 = vpop.f32.mrb[59].mxu1 }
 0xbb8   :  { %v3100_v35 = vmul.f32 -1.442695, %v2307_v17 }
 0xbb9   :  { %3934 = vpow2.f32 %v3099_v63 }
 0xbba   :  { %3936 = vpow2.f32 %v3100_v35 }
 0xbc3   :  { %v3935_v31 = vpop.eup %3934 }
 0xbc4   :  { %v2314_v54 = vadd.f32 1.0, %v3935_v31  ;;  %v3937_v39 = vpop.eup %3936 }
 0xbc5   :  { %v2315_v47 = vadd.f32 1.0, %v3937_v39 }
 0xbc6   :  { %3938 = vrcp.f32 %v2314_v54 }
 0xbd0   :  { %v3939_v10 = vpop.eup %3938 }
 0xbd1   :  { %v2321_v48 = vmul.f32 %v3939_v10, %v2320_v40 }
 0xbd3   :  { %v2322_v11 = vadd.f32 %v2321_v48, %v1797_v33 }
 0xbd5   :  { %3940 = vtanh.f32 %v2322_v11  ;;  %v1800_v11 = vadd.f32 %v4881_v37, %v4982_v42  ;;  %v1736_v37 = vadd.f32 %v4896_v1, %v4961_v9 }
 0xbd6   :  { %3942 = vrcp.f32 %v2315_v47 }
 0xbdf   :  { %v3941_v38 = vpop.eup %3940 }
 0xbe0   :  { %v2324_v51 = vsub.f32 %v5034_v7, %v3941_v38  ;;  %v3943_v6 = vpop.eup %3942  ;;  %v1732_v7 = vadd.f32 %v4893_v44, %v4969_v30 }
 0xbe2   :  { %v2325_v52 = vmul.f32 %v3943_v6, %v2324_v51 }
 0xbe4   :  { %v5081_v24 = vadd.f32 %v3941_v38, %v2325_v52 }
 0xbe6   :  { %v2330_v4 = vpack.c.bf16 %v5081_v24, %v5081_v24 }
 0xbe8   :  { %2364 = vmatmul.mubr.bf16.vlgmr.msra.gmra.mrb[76].mxu0 %v2330_v4  ;;  %3582 = vmatmul.mubr.bf16.vlgmr.msra.gmra.mrb[60].mxu1 %v2330_v4 }
 0xbe9   :  { %2438 = vmatpush1.bf16.msra.mxu0 %v4786_v18  ;;  %3586 = vmatpush3.bf16.msra.mxu1 %v4822_v56 }
 0xbea   :  { %2439 = vmatprep.subr.bf16.mxu0 %v4790_v45  ;;  %3587 = vmatprep.subr.bf16.mxu1 %v5317_v5 }
 0xbeb   :  { %2469 = vmatprep.mubr.bf16.mxu0 %v5318_v15  ;;  %3601 = vmatprep.mubr.msk.bf16.mxu1 %vm4143_vm0, %v5317_v5 }
 0xbed   :  { %2440 = vmatpush1.bf16.msra.mxu0 %v4792_v23  ;;  %3588 = vmatpush3.bf16.msra.mxu1 %v4830_v36 }
 0xbee   :  { %2441 = vmatprep.subr.bf16.mxu0 %v4796_v20  ;;  %3589 = vmatprep.subr.bf16.mxu1 %v5317_v5 }
 0xbf1   :  { %2442 = vmatpush1.bf16.msra.mxu0 %v4798_v57  ;;  %3590 = vmatpush3.bf16.msra.mxu1 %v4840_v2 }
 0xbf2   :  { %2443 = vmatprep.subr.bf16.mxu0 %v4802_v26  ;;  %3591 = vmatprep.subr.bf16.mxu1 %v5317_v5 }
 0xbf5   :  { %2444 = vmatpush1.bf16.msra.mxu0 %v4804_v27  ;;  %3592 = vmatpush3.bf16.msra.mxu1 %v4844_v61 }
 0xbf6   :  { %2445 = vmatprep.subr.bf16.mxu0 %v4808_v22  ;;  %3593 = vmatprep.subr.bf16.mxu1 %v5317_v5 }
 0xbf9   :  { %2446 = vmatpush1.bf16.msra.mxu0 %v4810_v14  ;;  %3594 = vmatpush3.bf16.msra.mxu1 %v4848_v62 }
 0xbfa   :  { %2447 = vmatprep.subr.bf16.mxu0 %v4812_v13  ;;  %3595 = vmatprep.subr.bf16.mxu1 %v5317_v5 }
 0xbfd   :  { %2448 = vmatpush1.bf16.msra.mxu0 %v4816_v25  ;;  %3596 = vmatpush3.bf16.msra.mxu1 %v4852_v53 }
 0xbfe   :  { %2449 = vmatprep.subr.bf16.mxu0 %v4820_v21  ;;  %3597 = vmatprep.subr.bf16.mxu1 %v5317_v5 }
 0xc01   :  { %2450 = vmatpush1.bf16.msra.mxu0 %v4824_v60  ;;  %3598 = vmatpush3.bf16.msra.mxu1 %v4856_v0 }
 0xc02   :  { %2451 = vmatprep.subr.bf16.mxu0 %v4826_v58  ;;  %3599 = vmatprep.subr.bf16.mxu1 %v5317_v5 }
 0xc05   :  { %2452 = vmatpush1.bf16.msra.mxu0 %v4834_v55  ;;  %3600 = vmatpush3.bf16.msra.mxu1 %v4860_v3 }
 0xc06   :  { %2543 = vmatprep.subr.bf16.mxu0 %v4784_v19  ;;  %3605 = vmatprep.subr.bf16.mxu1 %v5317_v5 }
 0xcbb   :  { %v2365_v50 = vpop.f32.mrb[76].mxu0  ;;  %v2406_v17 = vpop.f32.mrb[60].mxu1 }
 0xcbc   :  { %v2412_v8 = vadd.f32 %v2365_v50, %v1730_v32  ;;  %v2367_v34 = vpop.f32.mrb[77].mxu0  ;;  %v3583_v63 = vpop.f32.mrb[61].mxu1  ;;  %v2426_v44 = vadd.f32 %v4978_v29, %v2406_v17 }
 0xcbd   :  { %v2413_v49 = vadd.f32 %v2367_v34, %v1732_v7  ;;  %v2369_v16 = vpop.f32.mrb[78].mxu0  ;;  %v2409_v35 = vpop.f32.mrb[62].mxu1 }
 0xcbe   :  { %v3101_v31 = vmul.f32 -1.442695, %v2412_v8  ;;  %v2370_v54 = vpop.f32.mrb[79].mxu0  ;;  %v3584_v39 = vpop.f32.mrb[63].mxu1 }
 0xcbf   :  { %v3102_v40 = vmul.f32 -1.442695, %v2413_v49 }
 0xcc0   :  { %3944 = vpow2.f32 %v3101_v31 }
 0xcc1   :  { %3946 = vpow2.f32 %v3102_v40 }
 0xcca   :  { %v3945_v10 = vpop.eup %3944 }
 0xccb   :  { %v2420_v33 = vadd.f32 1.0, %v3945_v10  ;;  %v3947_v41 = vpop.eup %3946 }
 0xccc   :  { %v2421_v51 = vadd.f32 1.0, %v3947_v41 }
 0xccd   :  { %3948 = vrcp.f32 %v2420_v33 }
 0xcd7   :  { %v3949_v48 = vpop.eup %3948 }
 0xcd8   :  { %v2427_v47 = vmul.f32 %v3949_v48, %v2426_v44  ;;  %v1805_v48 = vadd.f32 %v4953_v59, %v4982_v42 }
 0xcda   :  { %v2428_v38 = vadd.f32 %v2427_v47, %v1800_v11 }
 0xcdc   :  { %3950 = vtanh.f32 %v2428_v38 }
 0xcdd   :  { %3952 = vrcp.f32 %v2421_v51 }
 0xce6   :  { %v3951_v6 = vpop.eup %3950 }
 0xce7   :  { %v2430_v52 = vsub.f32 %v5081_v24, %v3951_v6  ;;  %v3953_v4 = vpop.eup %3952  ;;  %v1738_v24 = vadd.f32 %v4898_v12, %v4969_v30 }
 0xce9   :  { %v2431_v32 = vmul.f32 %v3953_v4, %v2430_v52 }
 0xceb   :  { %v5128_v7 = vadd.f32 %v3951_v6, %v2431_v32 }
 0xced   :  { %v2436_v50 = vpack.c.bf16 %v5128_v7, %v5128_v7 }
 0xcef   :  { %2470 = vmatmul.mubr.bf16.vlgmr.msra.gmra.mrb[80].mxu0 %v2436_v50  ;;  %3602 = vmatmul.mubr.bf16.vlgmr.msra.gmra.mrb[64].mxu1 %v2436_v50 }
 0xcf0   :  { %2544 = vmatpush1.bf16.msra.mxu0 %v4786_v18  ;;  %3606 = vmatpush3.bf16.msra.mxu1 %v4822_v56 }
 0xcf1   :  { %2545 = vmatprep.subr.bf16.mxu0 %v4790_v45  ;;  %3607 = vmatprep.subr.bf16.mxu1 %v5317_v5 }
 0xcf2   :  { %2575 = vmatprep.mubr.bf16.mxu0 %v5318_v15  ;;  %3621 = vmatprep.mubr.msk.bf16.mxu1 %vm4143_vm0, %v5317_v5 }
 0xcf4   :  { %2546 = vmatpush1.bf16.msra.mxu0 %v4792_v23  ;;  %3608 = vmatpush3.bf16.msra.mxu1 %v4830_v36 }
 0xcf5   :  { %2547 = vmatprep.subr.bf16.mxu0 %v4796_v20  ;;  %3609 = vmatprep.subr.bf16.mxu1 %v5317_v5 }
 0xcf8   :  { %2548 = vmatpush1.bf16.msra.mxu0 %v4798_v57  ;;  %3610 = vmatpush3.bf16.msra.mxu1 %v4840_v2 }
 0xcf9   :  { %2549 = vmatprep.subr.bf16.mxu0 %v4802_v26  ;;  %3611 = vmatprep.subr.bf16.mxu1 %v5317_v5 }
 0xcfc   :  { %2550 = vmatpush1.bf16.msra.mxu0 %v4804_v27  ;;  %3612 = vmatpush3.bf16.msra.mxu1 %v4844_v61 }
 0xcfd   :  { %2551 = vmatprep.subr.bf16.mxu0 %v4808_v22  ;;  %3613 = vmatprep.subr.bf16.mxu1 %v5317_v5 }
 0xd00   :  { %2552 = vmatpush1.bf16.msra.mxu0 %v4810_v14  ;;  %3614 = vmatpush3.bf16.msra.mxu1 %v4848_v62 }
 0xd01   :  { %2553 = vmatprep.subr.bf16.mxu0 %v4812_v13  ;;  %3615 = vmatprep.subr.bf16.mxu1 %v5317_v5 }
 0xd04   :  { %2554 = vmatpush1.bf16.msra.mxu0 %v4816_v25  ;;  %3616 = vmatpush3.bf16.msra.mxu1 %v4852_v53 }
 0xd05   :  { %2555 = vmatprep.subr.bf16.mxu0 %v4820_v21  ;;  %3617 = vmatprep.subr.bf16.mxu1 %v5317_v5 }
 0xd08   :  { %2556 = vmatpush1.bf16.msra.mxu0 %v4824_v60  ;;  %3618 = vmatpush3.bf16.msra.mxu1 %v4856_v0 }
 0xd09   :  { %2557 = vmatprep.subr.bf16.mxu0 %v4826_v58  ;;  %3619 = vmatprep.subr.bf16.mxu1 %v5317_v5 }
 0xd0c   :  { %2558 = vmatpush1.bf16.msra.mxu0 %v4834_v55  ;;  %3620 = vmatpush3.bf16.msra.mxu1 %v4860_v3 }
 0xd0d   :  { %2649 = vmatprep.subr.bf16.mxu0 %v4784_v19  ;;  %3625 = vmatprep.subr.bf16.mxu1 %v5317_v5 }
 0xdc2   :  { %v2471_v17 = vpop.f32.mrb[80].mxu0  ;;  %v2512_v8 = vpop.f32.mrb[64].mxu1 }
 0xdc3   :  { %v2518_v34 = vadd.f32 %v2471_v17, %v1736_v37  ;;  %v2473_v63 = vpop.f32.mrb[81].mxu0  ;;  %v3603_v49 = vpop.f32.mrb[65].mxu1  ;;  %v2532_v12 = vadd.f32 %v4978_v29, %v2512_v8  ;;  %v4020_v17 = vld [vmem:[#allocation9 + $0x1c] ss:$12 sps:$4 sm:$0xff]   ;;  %v4021_v8 = vld [vmem:[#allocation9 + $0x18] ss:$12 sps:$4 sm:$0xff]  }
 0xdc4   :  { %v2519_v16 = vadd.f32 %v2473_v63, %v1738_v24  ;;  %v2475_v35 = vpop.f32.mrb[82].mxu0  ;;  %v2515_v31 = vpop.f32.mrb[66].mxu1  ;;  %v4018_v24 = vld [vmem:[#allocation9] ss:$12 sps:$4 sm:$0xff]   ;;  %v4024_v49 = vld [vmem:[#allocation9 + $0x30] ss:$12 sps:$4 sm:$0xff]  }
 0xdc5   :  { %v3103_v54 = vmul.f32 -1.442695, %v2518_v34  ;;  %v2476_v39 = vpop.f32.mrb[83].mxu0  ;;  %v3604_v40 = vpop.f32.mrb[67].mxu1  ;;  %v4022_v34 = vld [vmem:[#allocation9 + $0x20] ss:$12 sps:$4 sm:$0xff]  }
 0xdc6   :  { %v3104_v10 = vmul.f32 -1.442695, %v2519_v16  ;;  %v4023_v63 = vld [vmem:[#allocation9 + $0x34] ss:$12 sps:$4 sm:$0xff]   ;;  %v4025_v16 = vld [vmem:[#allocation9 + $0x38] ss:$12 sps:$4 sm:$0xff]  }
 0xdc7   :  { %3954 = vpow2.f32 %v3103_v54  ;;  %v4026_v35 = vld [vmem:[#allocation9 + $0x4c] ss:$12 sps:$4 sm:$0xff]   ;;  %v4028_v31 = vld [vmem:[#allocation9 + $0x50] ss:$12 sps:$4 sm:$0xff]   ;;  %v4031_v40 = vld [vmem:[#allocation9 + $0x68] ss:$12 sps:$4 sm:$0xff]  }
 0xdc8   :  { %3956 = vpow2.f32 %v3104_v10  ;;  %v4029_v54 = vld [vmem:[#allocation9 + $0x64] ss:$12 sps:$4 sm:$0xff]   ;;  %v4030_v39 = vld [vmem:[#allocation9 + $0x60] ss:$12 sps:$4 sm:$0xff]   ;;  %v4032_v10 = vld [vmem:[#allocation9 + $0x7c] ss:$12 sps:$4 sm:$0xff]  }
 0xdd1   :  { %v3955_v33 = vpop.eup %3954 }
 0xdd2   :  { %v2526_v41 = vadd.f32 1.0, %v3955_v33  ;;  %v3957_v1 = vpop.eup %3956  ;;  %v4033_v33 = vld [vmem:[#allocation9 + $0x78] ss:$12 sps:$4 sm:$0xff]  }
 0xdd3   :  { %v2527_v38 = vadd.f32 1.0, %v3957_v1  ;;  %v4035_v1 = vld [vmem:[#allocation9 + $0x94] ss:$12 sps:$4 sm:$0xff]  }
 0xdd4   :  { %3958 = vrcp.f32 %v2526_v41  ;;  %v4034_v41 = vld [vmem:[#allocation9 + $0x80] ss:$12 sps:$4 sm:$0xff]  }
 0xdde   :  { %v3959_v44 = vpop.eup %3958 }
 0xddf   :  { %v2533_v11 = vmul.f32 %v3959_v44, %v2532_v12  ;;  %v4036_v12 = vld [vmem:[#allocation9 + $0x90] ss:$12 sps:$4 sm:$0xff]   ;;  %v4037_v44 = vld [vmem:[#allocation9 + $0x98] ss:$12 sps:$4 sm:$0xff]  }
 0xde1   :  { %v2534_v47 = vadd.f32 %v2533_v11, %v1805_v48  ;;  %v4038_v48 = vld [vmem:[#allocation9 + $0xac] ss:$12 sps:$4 sm:$0xff]   ;;  %v4039_v11 = vld [vmem:[#allocation9 + $0xa8] ss:$12 sps:$4 sm:$0xff]  }
 0xde3   :  { %3960 = vtanh.f32 %v2534_v47  ;;  %v4040_v47 = vld [vmem:[#allocation9 + $0xb0] ss:$12 sps:$4 sm:$0xff]  }
 0xde4   :  { %3962 = vrcp.f32 %v2527_v38  ;;  %v5333_v38 = vld [vmem:[#allocation17_spill] sm:$0xff] }
 0xded   :  { %v3961_v51 = vpop.eup %3960 }
 0xdee   :  { %v2536_v6 = vsub.f32 %v5128_v7, %v3961_v51  ;;  %v3963_v52 = vpop.eup %3962 }
 0xdf0   :  { %v2537_v4 = vmul.f32 %v3963_v52, %v2536_v6  ;;  %v5334_v6 = vld [vmem:[#allocation18_spill] sm:$0xff] }
 0xdf1   :  { %v1748_v52 = vadd.f32 %v5334_v6, %v4969_v30 }
 0xdf2   :  { %v5175_v32 = vadd.f32 %v3961_v51, %v2537_v4  ;;  %v1746_v51 = vadd.f32 %v5333_v38, %v4961_v9 }
 0xdf4   :  { %v2542_v50 = vpack.c.bf16 %v5175_v32, %v5175_v32 }
 0xdf6   :  { %2576 = vmatmul.mubr.bf16.vlgmr.msra.gmra.mrb[84].mxu0 %v2542_v50  ;;  %3622 = vmatmul.mubr.bf16.vlgmr.msra.gmra.mrb[68].mxu1 %v2542_v50 }
 0xdf7   :  { %2650 = vmatpush1.bf16.msra.mxu0 %v4786_v18  ;;  %3626 = vmatpush3.bf16.msra.mxu1 %v4822_v56  ;;  %v1740_v18 = vadd.f32 %v4900_v28, %v4961_v9 }
 0xdf8   :  { %2651 = vmatprep.subr.bf16.mxu0 %v4790_v45  ;;  %3627 = vmatprep.subr.bf16.mxu1 %v5317_v5  ;;  %v1742_v45 = vadd.f32 %v4902_v46, %v4969_v30 }
 0xdf9   :  { %2681 = vmatprep.mubr.bf16.mxu0 %v5318_v15  ;;  %3641 = vmatprep.mubr.msk.bf16.mxu1 %vm4143_vm0, %v5317_v5 }
 0xdfb   :  { %2652 = vmatpush1.bf16.msra.mxu0 %v4792_v23  ;;  %3628 = vmatpush3.bf16.msra.mxu1 %v4830_v36 }
 0xdfc   :  { %2653 = vmatprep.subr.bf16.mxu0 %v4796_v20  ;;  %3629 = vmatprep.subr.bf16.mxu1 %v5317_v5 }
 0xdff   :  { %2654 = vmatpush1.bf16.msra.mxu0 %v4798_v57  ;;  %3630 = vmatpush3.bf16.msra.mxu1 %v4840_v2 }
 0xe00   :  { %2655 = vmatprep.subr.bf16.mxu0 %v4802_v26  ;;  %3631 = vmatprep.subr.bf16.mxu1 %v5317_v5 }
 0xe03   :  { %2656 = vmatpush1.bf16.msra.mxu0 %v4804_v27  ;;  %3632 = vmatpush3.bf16.msra.mxu1 %v4844_v61  ;;  %v1808_v61 = vadd.f32 %v4965_v43, %v4982_v42  ;;  %v4019_v43 = vld [vmem:[#allocation9 + $0x8] ss:$12 sps:$4 sm:$0xff]  }
 0xe04   :  { %2657 = vmatprep.subr.bf16.mxu0 %v4808_v22  ;;  %3633 = vmatprep.subr.bf16.mxu1 %v5317_v5 }
 0xe07   :  { %2658 = vmatpush1.bf16.msra.mxu0 %v4810_v14  ;;  %3634 = vmatpush3.bf16.msra.mxu1 %v4848_v62 }
 0xe08   :  { %2659 = vmatprep.subr.bf16.mxu0 %v4812_v13  ;;  %3635 = vmatprep.subr.bf16.mxu1 %v5317_v5 }
 0xe0b   :  { %2660 = vmatpush1.bf16.msra.mxu0 %v4816_v25  ;;  %3636 = vmatpush3.bf16.msra.mxu1 %v4852_v53 }
 0xe0c   :  { %2661 = vmatprep.subr.bf16.mxu0 %v4820_v21  ;;  %3637 = vmatprep.subr.bf16.mxu1 %v5317_v5 }
 0xe0f   :  { %2662 = vmatpush1.bf16.msra.mxu0 %v4824_v60  ;;  %3638 = vmatpush3.bf16.msra.mxu1 %v4856_v0 }
 0xe10   :  { %2663 = vmatprep.subr.bf16.mxu0 %v4826_v58  ;;  %3639 = vmatprep.subr.bf16.mxu1 %v5317_v5 }
 0xe13   :  { %2664 = vmatpush1.bf16.msra.mxu0 %v4834_v55  ;;  %3640 = vmatpush3.bf16.msra.mxu1 %v4860_v3 }
 0xe14   :  { %2755 = vmatprep.subr.bf16.mxu0 %v4784_v19  ;;  %3645 = vmatprep.subr.bf16.mxu1 %v5317_v5 }
 0xec9   :  { %v2577_v23 = vpop.f32.mrb[84].mxu0  ;;  %v2618_v20 = vpop.f32.mrb[68].mxu1 }
 0xeca   :  { %v2624_v57 = vadd.f32 %v2577_v23, %v1740_v18  ;;  %v2579_v26 = vpop.f32.mrb[85].mxu0  ;;  %v3623_v27 = vpop.f32.mrb[69].mxu1  ;;  %v2638_v55 = vadd.f32 %v4978_v29, %v2618_v20 }
 0xecb   :  { %v2625_v22 = vadd.f32 %v2579_v26, %v1742_v45  ;;  %v2581_v14 = vpop.f32.mrb[86].mxu0  ;;  %v2621_v13 = vpop.f32.mrb[70].mxu1 }
 0xecc   :  { %v3105_v25 = vmul.f32 -1.442695, %v2624_v57  ;;  %v2582_v21 = vpop.f32.mrb[87].mxu0  ;;  %v3624_v56 = vpop.f32.mrb[71].mxu1 }
 0xecd   :  { %v3106_v19 = vmul.f32 -1.442695, %v2625_v22 }
 0xece   :  { %3964 = vpow2.f32 %v3105_v25 }
 0xecf   :  { %3966 = vpow2.f32 %v3106_v19 }
 0xed8   :  { %v3965_v60 = vpop.eup %3964 }
 0xed9   :  { %v2632_v58 = vadd.f32 1.0, %v3965_v60  ;;  %v3967_v36 = vpop.eup %3966  ;;  %v5335_v60 = vld [vmem:[#allocation15_spill] sm:$0xff] }
 0xeda   :  { %v2633_v0 = vadd.f32 1.0, %v3967_v36 }
 0xedb   :  { %3968 = vrcp.f32 %v2632_v58  ;;  %v1813_v58 = vadd.f32 %v5335_v60, %v4982_v42 }
 0xee5   :  { %v3969_v2 = vpop.eup %3968 }
 0xee6   :  { %v2639_v62 = vmul.f32 %v3969_v2, %v2638_v55 }
 0xee8   :  { %v2640_v53 = vadd.f32 %v2639_v62, %v1808_v61 }
 0xeea   :  { %3970 = vtanh.f32 %v2640_v53 }
 0xeeb   :  { %3972 = vrcp.f32 %v2633_v0 }
 0xef4   :  { %v3971_v3 = vpop.eup %3970 }
 0xef5   :  { %v2642_v28 = vsub.f32 %v5175_v32, %v3971_v3  ;;  %v3973_v46 = vpop.eup %3972 }
 0xef7   :  { %v2643_v59 = vmul.f32 %v3973_v46, %v2642_v28  ;;  %v3826_v46 = vld [vmem:[%s5300_s9] sm:$0xff]  }
 0xef9   :  { %v5222_v7 = vadd.f32 %v3971_v3, %v2643_v59  ;;  %v3827_v59 = vld [vmem:[%s5300_s9 + $0x8] sm:$0xff]  }
 0xefb   :  { %v2648_v37 = vpack.c.bf16 %v5222_v7, %v5222_v7 }
 0xefd   :  { %2682 = vmatmul.mubr.bf16.vlgmr.msra.gmra.mrb[88].mxu0 %v2648_v37  ;;  %3642 = vmatmul.mubr.bf16.vlgmr.msra.gmra.mrb[72].mxu1 %v2648_v37  ;;  %v3829_v37 = vld [vmem:[%s5300_s9 + $0x18] sm:$0xff]  }
 0xefe   :  { %2756 = vmatpush1.bf16.msra.mxu0 %v4018_v24  ;;  %3646 = vmatpush3.bf16.msra.mxu1 %v4019_v43  ;;  %v3830_v24 = vld [vmem:[%s5300_s9 + $0x20] sm:$0xff]   ;;  %v3831_v43 = vld [vmem:[%s5300_s9 + $0x28] sm:$0xff]  }
 0xeff   :  { %2757 = vmatprep.subr.bf16.mxu0 %v4020_v17  ;;  %3647 = vmatprep.subr.bf16.mxu1 %v5317_v5  ;;  %v3832_v17 = vld [vmem:[%s5300_s9 + $0x30] sm:$0xff]  }
 0xf00   :  { %2787 = vmatprep.mubr.bf16.mxu0 %v5318_v15  ;;  %3661 = vmatprep.mubr.msk.bf16.mxu1 %vm4143_vm0, %v5317_v5  ;;  %v4027_v15 = vld [vmem:[#allocation9 + $0x48] ss:$12 sps:$4 sm:$0xff]  }
 0xf02   :  { %2758 = vmatpush1.bf16.msra.mxu0 %v4021_v8  ;;  %3648 = vmatpush3.bf16.msra.mxu1 %v4022_v34  ;;  %v3833_v8 = vld [vmem:[%s5300_s9 + $0x38] sm:$0xff]   ;;  %v5336_v34 = vld [vmem:[#allocation16_spill] sm:$0xff] }
 0xf03   :  { %2759 = vmatprep.subr.bf16.mxu0 %v4023_v63  ;;  %3649 = vmatprep.subr.bf16.mxu1 %v5317_v5  ;;  %v1750_v63 = vadd.f32 %v5336_v34, %v4961_v9 }
 0xf06   :  { %2760 = vmatpush1.bf16.msra.mxu0 %v4024_v49  ;;  %3650 = vmatpush3.bf16.msra.mxu1 %v4025_v16  ;;  %v5337_v49 = vld [vmem:[#allocation14_spill] sm:$0xff] }
 0xf07   :  { %2761 = vmatprep.subr.bf16.mxu0 %v4026_v35  ;;  %3651 = vmatprep.subr.bf16.mxu1 %v5317_v5  ;;  %v1752_v16 = vadd.f32 %v5337_v49, %v4969_v30 }
 0xf0a   :  { %2762 = vmatpush1.bf16.msra.mxu0 %v4027_v15  ;;  %3652 = vmatpush3.bf16.msra.mxu1 %v4028_v31 }
 0xf0b   :  { %2763 = vmatprep.subr.bf16.mxu0 %v4029_v54  ;;  %3653 = vmatprep.subr.bf16.mxu1 %v5317_v5 }
 0xf0e   :  { %2764 = vmatpush1.bf16.msra.mxu0 %v4030_v39  ;;  %3654 = vmatpush3.bf16.msra.mxu1 %v4031_v40 }
 0xf0f   :  { %2765 = vmatprep.subr.bf16.mxu0 %v4032_v10  ;;  %3655 = vmatprep.subr.bf16.mxu1 %v5317_v5 }
 0xf12   :  { %2766 = vmatpush1.bf16.msra.mxu0 %v4033_v33  ;;  %3656 = vmatpush3.bf16.msra.mxu1 %v4034_v41 }
 0xf13   :  { %2767 = vmatprep.subr.bf16.mxu0 %v4035_v1  ;;  %3657 = vmatprep.subr.bf16.mxu1 %v5317_v5 }
 0xf16   :  { %2768 = vmatpush1.bf16.msra.mxu0 %v4036_v12  ;;  %3658 = vmatpush3.bf16.msra.mxu1 %v4037_v44 }
 0xf17   :  { %2769 = vmatprep.subr.bf16.mxu0 %v4038_v48  ;;  %3659 = vmatprep.subr.bf16.mxu1 %v5317_v5 }
 0xf1a   :  { %2770 = vmatpush1.bf16.msra.mxu0 %v4039_v11  ;;  %3660 = vmatpush3.bf16.msra.mxu1 %v4040_v47  ;;  %v5338_v47 = vld [vmem:[#allocation19_spill] sm:$0xff] }
 0xf1b   :  { %3665 = vmatprep.subr.bf16.mxu0 %v5317_v5  ;;  %v1816_v38 = vadd.f32 %v5338_v47, %v4982_v42 }
 0xfd0   :  { %v2683_v4 = vpop.f32.mrb[88].mxu0  ;;  %v2724_v32 = vpop.f32.mrb[72].mxu1 }
 0xfd1   :  { %v2730_v50 = vadd.f32 %v2683_v4, %v1746_v51  ;;  %v2685_v18 = vpop.f32.mrb[89].mxu0  ;;  %v3643_v45 = vpop.f32.mrb[73].mxu1  ;;  %v2744_v56 = vadd.f32 %v4978_v29, %v2724_v32 }
 0xfd2   :  { %v2731_v23 = vadd.f32 %v2685_v18, %v1748_v52  ;;  %v2687_v20 = vpop.f32.mrb[90].mxu0  ;;  %v2727_v57 = vpop.f32.mrb[74].mxu1 }
 0xfd3   :  { %v3107_v26 = vmul.f32 -1.442695, %v2730_v50  ;;  %v2688_v27 = vpop.f32.mrb[91].mxu0  ;;  %v3644_v22 = vpop.f32.mrb[75].mxu1 }
 0xfd4   :  { %v3108_v14 = vmul.f32 -1.442695, %v2731_v23 }
 0xfd5   :  { %3974 = vpow2.f32 %v3107_v26 }
 0xfd6   :  { %3976 = vpow2.f32 %v3108_v14 }
 0xfdf   :  { %v3975_v13 = vpop.eup %3974 }
 0xfe0   :  { %v2738_v25 = vadd.f32 1.0, %v3975_v13  ;;  %v3977_v21 = vpop.eup %3976 }
 0xfe1   :  { %v2739_v2 = vadd.f32 1.0, %v3977_v21 }
 0xfe2   :  { %3978 = vrcp.f32 %v2738_v25 }
 0xfec   :  { %v3979_v19 = vpop.eup %3978 }
 0xfed   :  { %v2745_v36 = vmul.f32 %v3979_v19, %v2744_v56 }
 0xfef   :  { %v2746_v55 = vadd.f32 %v2745_v36, %v1813_v58 }
 0xff1   :  { %3980 = vtanh.f32 %v2746_v55 }
 0xff2   :  { %3982 = vrcp.f32 %v2739_v2 }
 0xffb   :  { %v3981_v61 = vpop.eup %3980 }
 0xffc   :  { %v2748_v62 = vsub.f32 %v5222_v7, %v3981_v61  ;;  %v3983_v53 = vpop.eup %3982  ;;  %v3828_v7 = vld [vmem:[%s5300_s9 + $0x10] sm:$0xff]  }
 0xffe   :  { %v2749_v0 = vmul.f32 %v3983_v53, %v2748_v62 }
0x1000   :  { %v2750_v3 = vadd.f32 %v3981_v61, %v2749_v0 }
0x1002   :  { %v2754_v28 = vpack.c.bf16 %v2750_v3, %v2750_v3 }
0x1004   :  { %2788 = vmatmul.mubr.bf16.vlgmr.msra.gmra.mrb[92].mxu0 %v2754_v28  ;;  %3662 = vmatmul.mubr.bf16.vlgmr.msra.gmra.mrb[76].mxu1 %v2754_v28 }
0x1005   :  { %3681 = vmatprep.mubr.msk.bf16.mxu0 %vm4143_vm0, %v5317_v5  ;;  %3666 = vmatpush3.bf16.msra.mxu0 %v3826_v46 }
0x1006   :  { %3667 = vmatprep.subr.bf16.mxu0 %v5317_v5 }
0x1009   :  { %3668 = vmatpush3.bf16.msra.mxu0 %v3827_v59 }
0x100a   :  { %3669 = vmatprep.subr.bf16.mxu0 %v5317_v5 }
0x100d   :  { %3670 = vmatpush3.bf16.msra.mxu0 %v3828_v7 }
0x100e   :  { %3671 = vmatprep.subr.bf16.mxu0 %v5317_v5 }
0x1011   :  { %3672 = vmatpush3.bf16.msra.mxu0 %v3829_v37 }
0x1012   :  { %3673 = vmatprep.subr.bf16.mxu0 %v5317_v5 }
0x1015   :  { %3674 = vmatpush3.bf16.msra.mxu0 %v3830_v24 }
0x1016   :  { %3675 = vmatprep.subr.bf16.mxu0 %v5317_v5 }
0x1019   :  { %3676 = vmatpush3.bf16.msra.mxu0 %v3831_v43 }
0x101a   :  { %3677 = vmatprep.subr.bf16.mxu0 %v5317_v5 }
0x101d   :  { %3678 = vmatpush3.bf16.msra.mxu0 %v3832_v17 }
0x101e   :  { %3679 = vmatprep.subr.bf16.mxu0 %v5317_v5 }
0x1021   :  { %3680 = vmatpush3.bf16.msra.mxu0 %v3833_v8 }
0x10d7   :  { %v2789_v35 = vpop.f32.mrb[92].mxu0  ;;  %v2830_v15 = vpop.f32.mrb[76].mxu1 }
0x10d8   :  { %v2836_v31 = vadd.f32 %v2789_v35, %v1750_v63  ;;  %v2791_v54 = vpop.f32.mrb[93].mxu0  ;;  %v3663_v39 = vpop.f32.mrb[77].mxu1  ;;  %v2850_v30 = vadd.f32 %v4978_v29, %v2830_v15  ;;  %v3111_v29 = vld [vmem:[%s5301_s10] ss:$0 sm:$0xff] }
0x10d9   :  { %v2837_v40 = vadd.f32 %v2791_v54, %v1752_v16  ;;  %v2793_v10 = vpop.f32.mrb[94].mxu0  ;;  %v2833_v33 = vpop.f32.mrb[78].mxu1 }
0x10da   :  { %v3109_v41 = vmul.f32 -1.442695, %v2836_v31  ;;  %v2794_v1 = vpop.f32.mrb[95].mxu0  ;;  %v3664_v12 = vpop.f32.mrb[79].mxu1 }
0x10db   :  { %v3110_v5 = vmul.f32 -1.442695, %v2837_v40 }
0x10dc   :  { %3984 = vpow2.f32 %v3109_v41 }
0x10dd   :  { %3986 = vpow2.f32 %v3110_v5 }
0x10e6   :  { %v3985_v44 = vpop.eup %3984 }
0x10e7   :  { %v2844_v48 = vadd.f32 1.0, %v3985_v44  ;;  %v3987_v9 = vpop.eup %3986 }
0x10e8   :  { %v2845_v52 = vadd.f32 1.0, %v3987_v9 }
0x10e9   :  { %3988 = vrcp.f32 %v2844_v48 }
0x10f3   :  { %v3989_v11 = vpop.eup %3988 }
0x10f4   :  { %v2851_v51 = vmul.f32 %v3989_v11, %v2850_v30 }
0x10f6   :  { %v2852_v6 = vadd.f32 %v2851_v51, %v1816_v38 }
0x10f8   :  { %3990 = vtanh.f32 %v2852_v6 }
0x10f9   :  { %3992 = vrcp.f32 %v2845_v52 }
0x1102   :  { %v3991_v4 = vpop.eup %3990 }
0x1103   :  { %v2854_v32 = vsub.f32 %v2750_v3, %v3991_v4  ;;  %v3993_v50 = vpop.eup %3992 }
0x1105   :  { %v2855_v18 = vmul.f32 %v3993_v50, %v2854_v32 }
0x1107   :  { %v2856_v45 = vadd.f32 %v3991_v4, %v2855_v18 }
0x1109   :  { %v2857_v23 = vpack.c.bf16 %v2856_v45, %v2856_v45 }
0x110b   :  { %3682 = vmatmul.mubr.bf16.vlgmr.msra.gmra.mrb[96].mxu0 %v2857_v23 }
0x11de   :  { %v2963_v20 = vpop.f32.mrb[96].mxu0 }
0x11df   :  { %v2964_v57 = vadd.f32 %v3111_v29, %v2963_v20  ;;  %v3683_v26 = vpop.f32.mrb[97].mxu0 }
0x11e0   :  { %v2966_v42 = vpop.f32.mrb[98].mxu0 }
0x11e1   :  { %2969 = vst [vmem:[%s5302_s11] sm:$0xff] %v2964_v57  ;;  %v3684_v27 = vpop.f32.mrb[99].mxu0 }
0x11e2   :  { %2974 = vsyncpa [#allocation5], 1 }
0x11e3   :  { %2975 = vsyncpa [#allocation7], 1 }
0x11e4   :  { %2976 = vsyncpa [#allocation10], 1 }

</bundles_post_ra>
